<compile_context>
chip_gen: v6e
topology: v6e:2x2x1
jax: 0.10.0
libtpu: 0.0.40
codegen_flags: <defaults>
</compile_context>

<pallas_src>
import numpy as np
import jax
import jax.numpy as jnp
from jax import lax
from jax.experimental import pallas as pl
from jax.experimental.pallas import tpu as pltpu


# ---------------------------------------------------------------------------
# Fused Pallas kernel: one grid step = full forward pass for one sample.
# Activation layout everywhere: (channels on sublanes, spatial positions on lanes).
# ---------------------------------------------------------------------------
def _duelq_fused_kernel(
    p1_ref, w1_ref, b1_ref,          # conv1: pre-extracted im2col patches + folded weights
    s2_ref, w2_ref, b2_ref,          # conv2: per-tap lane-selection matrices + folded weights
    s3_ref, w3_ref, b3_ref,          # conv3
    s4_ref, w4_ref, b4_ref,          # conv4
    wf_ref, bf_ref,                  # ffn weights regrouped per conv4 channel
    wh_ref, bh_ref,                  # merged dueling head [state | advantage]
    o_ref,                           # (1, 1, A) output block
):
    f32 = jnp.float32

    # ---- conv1 + folded BN + ReLU: (Cout, 9*Cin) @ (9*Cin, n1) -------------------------
    a = jnp.dot(w1_ref[...], p1_ref[0], preferred_element_type=f32) + b1_ref[...]
    a = jnp.maximum(a, 0.0)

    # ---- conv2..conv4 + folded BN + ReLU: gather-by-matmul over the 9 taps -------------
    def conv_block(a_in, s_ref, w_ref, b_ref):
        cout = w_ref.shape[1]
        n_out = s_ref.shape[2]
        acc = jnp.zeros((cout, n_out), f32)
        for p in range(9):                                    # static unroll, 3x3 taps
            g = jnp.dot(a_in, s_ref[p], preferred_element_type=f32)        # lane gather
            acc = acc + jnp.dot(w_ref[p], g, preferred_element_type=f32)   # tap matmul
        return jnp.maximum(acc + b_ref[...], 0.0)

    a = conv_block(a, s2_ref, w2_ref, b2_ref)
    a = conv_block(a, s3_ref, w3_ref, b3_ref)
    a = conv_block(a, s4_ref, w4_ref, b4_ref)        # (C4, n4) == torch x.view(B,-1) order

    # ---- ffn + ReLU: contract the (C4, n4) activation row by row -----------------------
    # wf_ref is (C4, n4, 64), pre-permuted so no in-kernel flatten/transpose is needed.
    h = bf_ref[...]                                   # (1, 64)
    for c in range(wf_ref.shape[0]):                  # static unroll over C4 channels
        h = h + jnp.dot(a[c:c + 1, :], wf_ref[c], preferred_element_type=f32)
    h = jnp.maximum(h, 0.0)

    # ---- merged dueling head: one (1,64)@(64,1+A) dot, combine in-register -------------
    y = jnp.dot(h, wh_ref[...], preferred_element_type=f32) + bh_ref[...]   # (1, 1+A)
    state = y[:, 0:1]
    adv = y[:, 1:]                                    # exactly A columns -> unpadded mean
    o_ref[0] = state + (adv - jnp.mean(adv, axis=1, keepdims=True))


# ---------------------------------------------------------------------------
# Wrapper: XLA-side conv1 im2col + the single pallas_call.
# ---------------------------------------------------------------------------
def _const_spec(arr):
    zero = (0,) * arr.ndim
    return pl.BlockSpec(arr.shape, lambda b, _z=zero: _z)


def duel_qnet_forward(prep, x_nchw, conv1_stride):
    """Fused forward. x_nchw: (B, C, H, W) float32 -> (B, num_actions) float32."""
    f32 = jnp.float32
    x = x_nchw.astype(f32)
    B, C, H, W = x.shape
    s = conv1_stride
    Ho = (H - 3) // s + 1
    Wo = (W - 3) // s + 1
    taps = []
    for kh in range(3):
        for kw in range(3):
            taps.append(x[:, :, kh:kh + s * Ho:s, kw:kw + s * Wo:s])
    # rows ordered (tap p, channel ci), spatial flattened on lanes; matches w1 columns.
    patches = jnp.stack(taps, axis=1).reshape(B, 9 * C, Ho * Wo)
    n1 = Ho * Wo
    A = prep["wh"].shape[1] - 1

    args = (patches,
            prep["w1"], prep["b1"],
            prep["s2"], prep["w2"], prep["b2"],
            prep["s3"], prep["w3"], prep["b3"],
            prep["s4"], prep["w4"], prep["b4"],
            prep["wf"], prep["bf"],
            prep["wh"], prep["bh"])

    in_specs = [pl.BlockSpec((1, 9 * C, n1), lambda b: (b, 0, 0))]
    in_specs += [_const_spec(a) for a in args[1:]]

    out = pl.pallas_call(
        _duelq_fused_kernel,
        out_shape=jax.ShapeDtypeStruct((B, 1, A), f32),
        grid=(B,),
        in_specs=in_specs,
        out_specs=pl.BlockSpec((1, 1, A), lambda b: (b, 0, 0)),
        compiler_params=pltpu.CompilerParams(dimension_semantics=("parallel",)),
    )(*args)
    return out.reshape(B, A)


# ---------------------------------------------------------------------------
# Parameter prep: fold BN, permute weights, build per-tap lane-selection matrices.
# ---------------------------------------------------------------------------
def _selection_matrices(h_in, w_in, stride):
    """(9, n_in, n_out) 0/1 matrices: S[p] gathers tap p's input lanes for every output."""
    h_out = (h_in - 3) // stride + 1
    w_out = (w_in - 3) // stride + 1
    n_in, n_out = h_in * w_in, h_out * w_out
    S = np.zeros((9, n_in, n_out), np.float32)
    for kh in range(3):
        for kw in range(3):
            p = kh * 3 + kw
            for ho in range(h_out):
                for wo in range(w_out):
                    col = ho * w_out + wo
                    row = (ho * stride + kh) * w_in + (wo * stride + kw)
                    S[p, row, col] = 1.0
    return jnp.asarray(S), h_out, w_out


def prepare_kernel_inputs(params, h, w):
    prep = {}
    # conv1: im2col stays in XLA; weight columns ordered (kh, kw, ci), BN scale folded.
    c1 = params["conv1"]
    cout1 = c1["w"].shape[0]
    prep["w1"] = (jnp.transpose(c1["w"], (0, 2, 3, 1)).reshape(cout1, -1)
                  * c1["scale"][:, None])
    prep["b1"] = c1["bias"].reshape(-1, 1)
    h_cur = (h - 3) // c1["stride"] + 1
    w_cur = (w - 3) // c1["stride"] + 1

    for idx in (2, 3, 4):
        c = params[f"conv{idx}"]
        cout, cin = c["w"].shape[0], c["w"].shape[1]
        S, h_out, w_out = _selection_matrices(h_cur, w_cur, c["stride"])
        prep[f"s{idx}"] = S                                         # (9, n_in, n_out)
        prep[f"w{idx}"] = (jnp.transpose(c["w"], (2, 3, 0, 1)).reshape(9, cout, cin)
                           * c["scale"][None, :, None])             # (9, cout, cin)
        prep[f"b{idx}"] = c["bias"].reshape(-1, 1)                  # (cout, 1)
        h_cur, w_cur = h_out, w_out

    # ffn: torch flatten order is channel-major (c*H4*W4 + spatial), which is exactly the
    # row-major order of the kernel's (C4, n4) conv4 activation -> regroup to (C4, n4, 64).
    cout4 = params["conv4"]["w"].shape[0]
    n4 = h_cur * w_cur
    wffn = params["ffn"]["w"]                                       # (64, cout4*n4)
    prep["wf"] = jnp.transpose(wffn.reshape(wffn.shape[0], cout4, n4), (1, 2, 0))
    prep["bf"] = params["ffn"]["b"].reshape(1, -1)

    # merged dueling head: columns = [state | advantage_0..A-1]
    ws, bs = params["state_fc"]["w"], params["state_fc"]["b"]            # (1,64), (1,)
    wa, ba = params["advantage_fc"]["w"], params["advantage_fc"]["b"]    # (A,64), (A,)
    prep["wh"] = jnp.concatenate([ws, wa], axis=0).T                     # (64, 1+A)
    prep["bh"] = jnp.concatenate([bs, ba]).reshape(1, -1)                # (1, 1+A)
    return prep


# ---------------------------------------------------------------------------
# Synthetic, deterministic parameters (inference-mode BN folded to scale/bias).
# ---------------------------------------------------------------------------
def make_params(key, num_channel, h, w, num_actions):
    eps = 1e-5
    keys = jax.random.split(key, 16)
    params = {}
    conv_defs = [(num_channel, 8, 2), (8, 8, 2), (8, 8, 1), (8, 16, 1)]
    ho, wo = h, w
    for idx, (cin, cout, stride) in enumerate(conv_defs):
        kw_, kb_, km_, kv_, kg_ = jax.random.split(keys[idx], 5)
        wgt = 0.1 * jax.random.normal(kw_, (cout, cin, 3, 3), jnp.float32)
        gamma = 1.0 + 0.1 * jax.random.normal(kg_, (cout,), jnp.float32)
        beta = 0.05 * jax.random.normal(kb_, (cout,), jnp.float32)
        rmean = 0.05 * jax.random.normal(km_, (cout,), jnp.float32)
        rvar = jax.random.uniform(kv_, (cout,), jnp.float32, minval=0.5, maxval=1.5)
        scale = gamma / jnp.sqrt(rvar + eps)
        bias = beta - rmean * scale
        params[f"conv{idx + 1}"] = dict(w=wgt, scale=scale, bias=bias, stride=stride)
        ho = (ho - 3) // stride + 1
        wo = (wo - 3) // stride + 1
    conv_out_dim = conv_defs[-1][1] * ho * wo

    k_ffn_w, k_ffn_b, k_s_w, k_s_b, k_a_w, k_a_b = jax.random.split(keys[10], 6)
    params["ffn"] = dict(
        w=0.1 * jax.random.normal(k_ffn_w, (64, conv_out_dim), jnp.float32),
        b=0.05 * jax.random.normal(k_ffn_b, (64,), jnp.float32),
    )
    params["state_fc"] = dict(
        w=0.1 * jax.random.normal(k_s_w, (1, 64), jnp.float32),
        b=0.05 * jax.random.normal(k_s_b, (1,), jnp.float32),
    )
    params["advantage_fc"] = dict(
        w=0.1 * jax.random.normal(k_a_w, (num_actions, 64), jnp.float32),
        b=0.05 * jax.random.normal(k_a_b, (num_actions,), jnp.float32),
    )
    return params


# ---------------------------------------------------------------------------
# Pure-JAX reference (matches the PyTorch module) for correctness checking.
# ---------------------------------------------------------------------------
def reference_forward(params, x_nchw):
    x = x_nchw
    for name in ("conv1", "conv2", "conv3", "conv4"):
        p = params[name]
        x = lax.conv_general_dilated(
            x, p["w"], window_strides=(p["stride"], p["stride"]), padding="VALID",
            dimension_numbers=("NCHW", "OIHW", "NCHW"))
        x = x * p["scale"][None, :, None, None] + p["bias"][None, :, None, None]
        x = jnp.maximum(x, 0.0)
    flat = x.reshape(x.shape[0], -1)
    h = jnp.maximum(flat @ params["ffn"]["w"].T + params["ffn"]["b"][None, :], 0.0)
    state = h @ params["state_fc"]["w"].T + params["state_fc"]["b"][None, :]
    adv = h @ params["advantage_fc"]["w"].T + params["advantage_fc"]["b"][None, :]
    return state + (adv - adv.mean(axis=1, keepdims=True))


if __name__ == "__main__":
    # Spatial must be >= 23 for this conv stack to produce a non-empty feature map.
    B, C, H, W = 2, 4, 32, 32
    NUM_ACTIONS = 8
    CONV1_STRIDE = 2

    key = jax.random.PRNGKey(0)
    k_params, k_x = jax.random.split(key)
    params = make_params(k_params, C, H, W, NUM_ACTIONS)
    prep = prepare_kernel_inputs(params, H, W)
    x = jax.random.normal(k_x, (B, C, H, W), jnp.float32)

    fwd = jax.jit(duel_qnet_forward, static_argnums=(2,))
    out = jax.block_until_ready(fwd(prep, x, CONV1_STRIDE))

    assert out.shape == (B, NUM_ACTIONS)
    assert bool(jnp.all(jnp.isfinite(out)))

    ref = reference_forward(params, x)
    assert bool(jnp.allclose(out, ref, rtol=5e-2, atol=2e-2)), (
        f"max abs diff {float(jnp.max(jnp.abs(out - ref)))}")
    print("KERNEL_OK")
</pallas_src>

<mosaic_0001>
module attributes {stable_mosaic.version = 11 : i64} {
  func.func @_duelq_fused_kernel(%arg0: i32, %arg1: memref<1x36x225xf32, #tpu.memory_space<vmem>>, %arg2: memref<8x36xf32, #tpu.memory_space<vmem>>, %arg3: memref<8x1xf32, #tpu.memory_space<vmem>>, %arg4: memref<9x225x49xf32, #tpu.memory_space<vmem>>, %arg5: memref<9x8x8xf32, #tpu.memory_space<vmem>>, %arg6: memref<8x1xf32, #tpu.memory_space<vmem>>, %arg7: memref<9x49x25xf32, #tpu.memory_space<vmem>>, %arg8: memref<9x8x8xf32, #tpu.memory_space<vmem>>, %arg9: memref<8x1xf32, #tpu.memory_space<vmem>>, %arg10: memref<9x25x9xf32, #tpu.memory_space<vmem>>, %arg11: memref<9x16x8xf32, #tpu.memory_space<vmem>>, %arg12: memref<16x1xf32, #tpu.memory_space<vmem>>, %arg13: memref<16x9x64xf32, #tpu.memory_space<vmem>>, %arg14: memref<1x64xf32, #tpu.memory_space<vmem>>, %arg15: memref<64x9xf32, #tpu.memory_space<vmem>>, %arg16: memref<1x9xf32, #tpu.memory_space<vmem>>, %arg17: memref<1x1x8xf32, #tpu.memory_space<vmem>>) attributes {dimension_semantics = [#tpu.dimension_semantics<parallel>], iteration_bounds = array<i64: 2>, scalar_prefetch = 0 : i64, scratch_operands = 0 : i64, tpu.core_type = #tpu.core_type<tc>, window_params = [{transform_indices = @transform_0, window_bounds = array<i64: 1, 36, 225>}, {pipeline_mode = #tpu.pipeline_mode<synchronous>, transform_indices = @transform_1, window_bounds = array<i64: 8, 36>}, {pipeline_mode = #tpu.pipeline_mode<synchronous>, transform_indices = @transform_2, window_bounds = array<i64: 8, 1>}, {pipeline_mode = #tpu.pipeline_mode<synchronous>, transform_indices = @transform_3, window_bounds = array<i64: 9, 225, 49>}, {pipeline_mode = #tpu.pipeline_mode<synchronous>, transform_indices = @transform_4, window_bounds = array<i64: 9, 8, 8>}, {pipeline_mode = #tpu.pipeline_mode<synchronous>, transform_indices = @transform_5, window_bounds = array<i64: 8, 1>}, {pipeline_mode = #tpu.pipeline_mode<synchronous>, transform_indices = @transform_6, window_bounds = array<i64: 9, 49, 25>}, {pipeline_mode = #tpu.pipeline_mode<synchronous>, transform_indices = @transform_7, window_bounds = array<i64: 9, 8, 8>}, {pipeline_mode = #tpu.pipeline_mode<synchronous>, transform_indices = @transform_8, window_bounds = array<i64: 8, 1>}, {pipeline_mode = #tpu.pipeline_mode<synchronous>, transform_indices = @transform_9, window_bounds = array<i64: 9, 25, 9>}, {pipeline_mode = #tpu.pipeline_mode<synchronous>, transform_indices = @transform_10, window_bounds = array<i64: 9, 16, 8>}, {pipeline_mode = #tpu.pipeline_mode<synchronous>, transform_indices = @transform_11, window_bounds = array<i64: 16, 1>}, {pipeline_mode = #tpu.pipeline_mode<synchronous>, transform_indices = @transform_12, window_bounds = array<i64: 16, 9, 64>}, {pipeline_mode = #tpu.pipeline_mode<synchronous>, transform_indices = @transform_13, window_bounds = array<i64: 1, 64>}, {pipeline_mode = #tpu.pipeline_mode<synchronous>, transform_indices = @transform_14, window_bounds = array<i64: 64, 9>}, {pipeline_mode = #tpu.pipeline_mode<synchronous>, transform_indices = @transform_15, window_bounds = array<i64: 1, 9>}, {transform_indices = @transform_16, window_bounds = array<i64: 1, 1, 8>}]} {
    %c0 = arith.constant 0 : index
    %c0_0 = arith.constant 0 : index
    %0 = vector.load %arg2[%c0, %c0_0] : memref<8x36xf32, #tpu.memory_space<vmem>>, vector<8x36xf32>
    %c0_1 = arith.constant 0 : index
    %c0_2 = arith.constant 0 : index
    %c0_3 = arith.constant 0 : index
    %1 = vector.load %arg1[%c0_1, %c0_2, %c0_3] : memref<1x36x225xf32, #tpu.memory_space<vmem>>, vector<1x36x225xf32>
    %2 = vector.shape_cast %1 : vector<1x36x225xf32> to vector<36x225xf32>
    %cst = arith.constant dense<0.000000e+00> : vector<8x225xf32>
    %3 = tpu.matmul %0, %2, %cst {dimension_numbers = #tpu.dot_dimension_numbers<[1], [0], [0], [1], [0, 0, 1, 1], [], []>} : vector<8x36xf32>, vector<36x225xf32>, vector<8x225xf32> -> vector<8x225xf32>
    %c0_4 = arith.constant 0 : index
    %c0_5 = arith.constant 0 : index
    %4 = vector.load %arg3[%c0_4, %c0_5] : memref<8x1xf32, #tpu.memory_space<vmem>>, vector<8x1xf32>
    %5 = vector.broadcast %4 : vector<8x1xf32> to vector<8x225xf32>
    %6 = arith.addf %3, %5 : vector<8x225xf32>
    %cst_6 = arith.constant 0.000000e+00 : f32
    %7 = vector.broadcast %cst_6 : f32 to vector<8x225xf32>
    %8 = arith.maximumf %6, %7 : vector<8x225xf32>
    %cst_7 = arith.constant 0.000000e+00 : f32
    %9 = vector.broadcast %cst_7 : f32 to vector<8x49xf32>
    %c0_8 = arith.constant 0 : index
    %c0_9 = arith.constant 0 : index
    %c0_10 = arith.constant 0 : index
    %10 = vector.load %arg4[%c0_8, %c0_9, %c0_10] : memref<9x225x49xf32, #tpu.memory_space<vmem>>, vector<1x225x49xf32>
    %11 = vector.shape_cast %10 : vector<1x225x49xf32> to vector<225x49xf32>
    %cst_11 = arith.constant dense<0.000000e+00> : vector<8x49xf32>
    %12 = tpu.matmul %8, %11, %cst_11 {dimension_numbers = #tpu.dot_dimension_numbers<[1], [0], [0], [1], [0, 0, 1, 1], [], []>} : vector<8x225xf32>, vector<225x49xf32>, vector<8x49xf32> -> vector<8x49xf32>
    %c0_12 = arith.constant 0 : index
    %c0_13 = arith.constant 0 : index
    %c0_14 = arith.constant 0 : index
    %13 = vector.load %arg5[%c0_12, %c0_13, %c0_14] : memref<9x8x8xf32, #tpu.memory_space<vmem>>, vector<1x8x8xf32>
    %14 = vector.shape_cast %13 : vector<1x8x8xf32> to vector<8x8xf32>
    %cst_15 = arith.constant dense<0.000000e+00> : vector<8x49xf32>
    %15 = tpu.matmul %14, %12, %cst_15 {dimension_numbers = #tpu.dot_dimension_numbers<[1], [0], [0], [1], [0, 0, 1, 1], [], []>} : vector<8x8xf32>, vector<8x49xf32>, vector<8x49xf32> -> vector<8x49xf32>
    %16 = arith.addf %9, %15 : vector<8x49xf32>
    %c1 = arith.constant 1 : index
    %c0_16 = arith.constant 0 : index
    %c0_17 = arith.constant 0 : index
    %17 = vector.load %arg4[%c1, %c0_16, %c0_17] : memref<9x225x49xf32, #tpu.memory_space<vmem>>, vector<1x225x49xf32>
    %18 = vector.shape_cast %17 : vector<1x225x49xf32> to vector<225x49xf32>
    %cst_18 = arith.constant dense<0.000000e+00> : vector<8x49xf32>
    %19 = tpu.matmul %8, %18, %cst_18 {dimension_numbers = #tpu.dot_dimension_numbers<[1], [0], [0], [1], [0, 0, 1, 1], [], []>} : vector<8x225xf32>, vector<225x49xf32>, vector<8x49xf32> -> vector<8x49xf32>
    %c1_19 = arith.constant 1 : index
    %c0_20 = arith.constant 0 : index
    %c0_21 = arith.constant 0 : index
    %20 = vector.load %arg5[%c1_19, %c0_20, %c0_21] : memref<9x8x8xf32, #tpu.memory_space<vmem>>, vector<1x8x8xf32>
    %21 = vector.shape_cast %20 : vector<1x8x8xf32> to vector<8x8xf32>
    %cst_22 = arith.constant dense<0.000000e+00> : vector<8x49xf32>
    %22 = tpu.matmul %21, %19, %cst_22 {dimension_numbers = #tpu.dot_dimension_numbers<[1], [0], [0], [1], [0, 0, 1, 1], [], []>} : vector<8x8xf32>, vector<8x49xf32>, vector<8x49xf32> -> vector<8x49xf32>
    %23 = arith.addf %16, %22 : vector<8x49xf32>
    %c2 = arith.constant 2 : index
    %c0_23 = arith.constant 0 : index
    %c0_24 = arith.constant 0 : index
    %24 = vector.load %arg4[%c2, %c0_23, %c0_24] : memref<9x225x49xf32, #tpu.memory_space<vmem>>, vector<1x225x49xf32>
    %25 = vector.shape_cast %24 : vector<1x225x49xf32> to vector<225x49xf32>
    %cst_25 = arith.constant dense<0.000000e+00> : vector<8x49xf32>
    %26 = tpu.matmul %8, %25, %cst_25 {dimension_numbers = #tpu.dot_dimension_numbers<[1], [0], [0], [1], [0, 0, 1, 1], [], []>} : vector<8x225xf32>, vector<225x49xf32>, vector<8x49xf32> -> vector<8x49xf32>
    %c2_26 = arith.constant 2 : index
    %c0_27 = arith.constant 0 : index
    %c0_28 = arith.constant 0 : index
    %27 = vector.load %arg5[%c2_26, %c0_27, %c0_28] : memref<9x8x8xf32, #tpu.memory_space<vmem>>, vector<1x8x8xf32>
    %28 = vector.shape_cast %27 : vector<1x8x8xf32> to vector<8x8xf32>
    %cst_29 = arith.constant dense<0.000000e+00> : vector<8x49xf32>
    %29 = tpu.matmul %28, %26, %cst_29 {dimension_numbers = #tpu.dot_dimension_numbers<[1], [0], [0], [1], [0, 0, 1, 1], [], []>} : vector<8x8xf32>, vector<8x49xf32>, vector<8x49xf32> -> vector<8x49xf32>
    %30 = arith.addf %23, %29 : vector<8x49xf32>
    %c3 = arith.constant 3 : index
    %c0_30 = arith.constant 0 : index
    %c0_31 = arith.constant 0 : index
    %31 = vector.load %arg4[%c3, %c0_30, %c0_31] : memref<9x225x49xf32, #tpu.memory_space<vmem>>, vector<1x225x49xf32>
    %32 = vector.shape_cast %31 : vector<1x225x49xf32> to vector<225x49xf32>
    %cst_32 = arith.constant dense<0.000000e+00> : vector<8x49xf32>
    %33 = tpu.matmul %8, %32, %cst_32 {dimension_numbers = #tpu.dot_dimension_numbers<[1], [0], [0], [1], [0, 0, 1, 1], [], []>} : vector<8x225xf32>, vector<225x49xf32>, vector<8x49xf32> -> vector<8x49xf32>
    %c3_33 = arith.constant 3 : index
    %c0_34 = arith.constant 0 : index
    %c0_35 = arith.constant 0 : index
    %34 = vector.load %arg5[%c3_33, %c0_34, %c0_35] : memref<9x8x8xf32, #tpu.memory_space<vmem>>, vector<1x8x8xf32>
    %35 = vector.shape_cast %34 : vector<1x8x8xf32> to vector<8x8xf32>
    %cst_36 = arith.constant dense<0.000000e+00> : vector<8x49xf32>
    %36 = tpu.matmul %35, %33, %cst_36 {dimension_numbers = #tpu.dot_dimension_numbers<[1], [0], [0], [1], [0, 0, 1, 1], [], []>} : vector<8x8xf32>, vector<8x49xf32>, vector<8x49xf32> -> vector<8x49xf32>
    %37 = arith.addf %30, %36 : vector<8x49xf32>
    %c4 = arith.constant 4 : index
    %c0_37 = arith.constant 0 : index
    %c0_38 = arith.constant 0 : index
    %38 = vector.load %arg4[%c4, %c0_37, %c0_38] : memref<9x225x49xf32, #tpu.memory_space<vmem>>, vector<1x225x49xf32>
    %39 = vector.shape_cast %38 : vector<1x225x49xf32> to vector<225x49xf32>
    %cst_39 = arith.constant dense<0.000000e+00> : vector<8x49xf32>
    %40 = tpu.matmul %8, %39, %cst_39 {dimension_numbers = #tpu.dot_dimension_numbers<[1], [0], [0], [1], [0, 0, 1, 1], [], []>} : vector<8x225xf32>, vector<225x49xf32>, vector<8x49xf32> -> vector<8x49xf32>
    %c4_40 = arith.constant 4 : index
    %c0_41 = arith.constant 0 : index
    %c0_42 = arith.constant 0 : index
    %41 = vector.load %arg5[%c4_40, %c0_41, %c0_42] : memref<9x8x8xf32, #tpu.memory_space<vmem>>, vector<1x8x8xf32>
    %42 = vector.shape_cast %41 : vector<1x8x8xf32> to vector<8x8xf32>
    %cst_43 = arith.constant dense<0.000000e+00> : vector<8x49xf32>
    %43 = tpu.matmul %42, %40, %cst_43 {dimension_numbers = #tpu.dot_dimension_numbers<[1], [0], [0], [1], [0, 0, 1, 1], [], []>} : vector<8x8xf32>, vector<8x49xf32>, vector<8x49xf32> -> vector<8x49xf32>
    %44 = arith.addf %37, %43 : vector<8x49xf32>
    %c5 = arith.constant 5 : index
    %c0_44 = arith.constant 0 : index
    %c0_45 = arith.constant 0 : index
    %45 = vector.load %arg4[%c5, %c0_44, %c0_45] : memref<9x225x49xf32, #tpu.memory_space<vmem>>, vector<1x225x49xf32>
    %46 = vector.shape_cast %45 : vector<1x225x49xf32> to vector<225x49xf32>
    %cst_46 = arith.constant dense<0.000000e+00> : vector<8x49xf32>
    %47 = tpu.matmul %8, %46, %cst_46 {dimension_numbers = #tpu.dot_dimension_numbers<[1], [0], [0], [1], [0, 0, 1, 1], [], []>} : vector<8x225xf32>, vector<225x49xf32>, vector<8x49xf32> -> vector<8x49xf32>
    %c5_47 = arith.constant 5 : index
    %c0_48 = arith.constant 0 : index
    %c0_49 = arith.constant 0 : index
    %48 = vector.load %arg5[%c5_47, %c0_48, %c0_49] : memref<9x8x8xf32, #tpu.memory_space<vmem>>, vector<1x8x8xf32>
    %49 = vector.shape_cast %48 : vector<1x8x8xf32> to vector<8x8xf32>
    %cst_50 = arith.constant dense<0.000000e+00> : vector<8x49xf32>
    %50 = tpu.matmul %49, %47, %cst_50 {dimension_numbers = #tpu.dot_dimension_numbers<[1], [0], [0], [1], [0, 0, 1, 1], [], []>} : vector<8x8xf32>, vector<8x49xf32>, vector<8x49xf32> -> vector<8x49xf32>
    %51 = arith.addf %44, %50 : vector<8x49xf32>
    %c6 = arith.constant 6 : index
    %c0_51 = arith.constant 0 : index
    %c0_52 = arith.constant 0 : index
    %52 = vector.load %arg4[%c6, %c0_51, %c0_52] : memref<9x225x49xf32, #tpu.memory_space<vmem>>, vector<1x225x49xf32>
    %53 = vector.shape_cast %52 : vector<1x225x49xf32> to vector<225x49xf32>
    %cst_53 = arith.constant dense<0.000000e+00> : vector<8x49xf32>
    %54 = tpu.matmul %8, %53, %cst_53 {dimension_numbers = #tpu.dot_dimension_numbers<[1], [0], [0], [1], [0, 0, 1, 1], [], []>} : vector<8x225xf32>, vector<225x49xf32>, vector<8x49xf32> -> vector<8x49xf32>
    %c6_54 = arith.constant 6 : index
    %c0_55 = arith.constant 0 : index
    %c0_56 = arith.constant 0 : index
    %55 = vector.load %arg5[%c6_54, %c0_55, %c0_56] : memref<9x8x8xf32, #tpu.memory_space<vmem>>, vector<1x8x8xf32>
    %56 = vector.shape_cast %55 : vector<1x8x8xf32> to vector<8x8xf32>
    %cst_57 = arith.constant dense<0.000000e+00> : vector<8x49xf32>
    %57 = tpu.matmul %56, %54, %cst_57 {dimension_numbers = #tpu.dot_dimension_numbers<[1], [0], [0], [1], [0, 0, 1, 1], [], []>} : vector<8x8xf32>, vector<8x49xf32>, vector<8x49xf32> -> vector<8x49xf32>
    %58 = arith.addf %51, %57 : vector<8x49xf32>
    %c7 = arith.constant 7 : index
    %c0_58 = arith.constant 0 : index
    %c0_59 = arith.constant 0 : index
    %59 = vector.load %arg4[%c7, %c0_58, %c0_59] : memref<9x225x49xf32, #tpu.memory_space<vmem>>, vector<1x225x49xf32>
    %60 = vector.shape_cast %59 : vector<1x225x49xf32> to vector<225x49xf32>
    %cst_60 = arith.constant dense<0.000000e+00> : vector<8x49xf32>
    %61 = tpu.matmul %8, %60, %cst_60 {dimension_numbers = #tpu.dot_dimension_numbers<[1], [0], [0], [1], [0, 0, 1, 1], [], []>} : vector<8x225xf32>, vector<225x49xf32>, vector<8x49xf32> -> vector<8x49xf32>
    %c7_61 = arith.constant 7 : index
    %c0_62 = arith.constant 0 : index
    %c0_63 = arith.constant 0 : index
    %62 = vector.load %arg5[%c7_61, %c0_62, %c0_63] : memref<9x8x8xf32, #tpu.memory_space<vmem>>, vector<1x8x8xf32>
    %63 = vector.shape_cast %62 : vector<1x8x8xf32> to vector<8x8xf32>
    %cst_64 = arith.constant dense<0.000000e+00> : vector<8x49xf32>
    %64 = tpu.matmul %63, %61, %cst_64 {dimension_numbers = #tpu.dot_dimension_numbers<[1], [0], [0], [1], [0, 0, 1, 1], [], []>} : vector<8x8xf32>, vector<8x49xf32>, vector<8x49xf32> -> vector<8x49xf32>
    %65 = arith.addf %58, %64 : vector<8x49xf32>
    %c8 = arith.constant 8 : index
    %c0_65 = arith.constant 0 : index
    %c0_66 = arith.constant 0 : index
    %66 = vector.load %arg4[%c8, %c0_65, %c0_66] : memref<9x225x49xf32, #tpu.memory_space<vmem>>, vector<1x225x49xf32>
    %67 = vector.shape_cast %66 : vector<1x225x49xf32> to vector<225x49xf32>
    %cst_67 = arith.constant dense<0.000000e+00> : vector<8x49xf32>
    %68 = tpu.matmul %8, %67, %cst_67 {dimension_numbers = #tpu.dot_dimension_numbers<[1], [0], [0], [1], [0, 0, 1, 1], [], []>} : vector<8x225xf32>, vector<225x49xf32>, vector<8x49xf32> -> vector<8x49xf32>
    %c8_68 = arith.constant 8 : index
    %c0_69 = arith.constant 0 : index
    %c0_70 = arith.constant 0 : index
    %69 = vector.load %arg5[%c8_68, %c0_69, %c0_70] : memref<9x8x8xf32, #tpu.memory_space<vmem>>, vector<1x8x8xf32>
    %70 = vector.shape_cast %69 : vector<1x8x8xf32> to vector<8x8xf32>
    %cst_71 = arith.constant dense<0.000000e+00> : vector<8x49xf32>
    %71 = tpu.matmul %70, %68, %cst_71 {dimension_numbers = #tpu.dot_dimension_numbers<[1], [0], [0], [1], [0, 0, 1, 1], [], []>} : vector<8x8xf32>, vector<8x49xf32>, vector<8x49xf32> -> vector<8x49xf32>
    %72 = arith.addf %65, %71 : vector<8x49xf32>
    %c0_72 = arith.constant 0 : index
    %c0_73 = arith.constant 0 : index
    %73 = vector.load %arg6[%c0_72, %c0_73] : memref<8x1xf32, #tpu.memory_space<vmem>>, vector<8x1xf32>
    %74 = vector.broadcast %73 : vector<8x1xf32> to vector<8x49xf32>
    %75 = arith.addf %72, %74 : vector<8x49xf32>
    %cst_74 = arith.constant 0.000000e+00 : f32
    %76 = vector.broadcast %cst_74 : f32 to vector<8x49xf32>
    %77 = arith.maximumf %75, %76 : vector<8x49xf32>
    %cst_75 = arith.constant 0.000000e+00 : f32
    %78 = vector.broadcast %cst_75 : f32 to vector<8x25xf32>
    %c0_76 = arith.constant 0 : index
    %c0_77 = arith.constant 0 : index
    %c0_78 = arith.constant 0 : index
    %79 = vector.load %arg7[%c0_76, %c0_77, %c0_78] : memref<9x49x25xf32, #tpu.memory_space<vmem>>, vector<1x49x25xf32>
    %80 = vector.shape_cast %79 : vector<1x49x25xf32> to vector<49x25xf32>
    %cst_79 = arith.constant dense<0.000000e+00> : vector<8x25xf32>
    %81 = tpu.matmul %77, %80, %cst_79 {dimension_numbers = #tpu.dot_dimension_numbers<[1], [0], [0], [1], [0, 0, 1, 1], [], []>} : vector<8x49xf32>, vector<49x25xf32>, vector<8x25xf32> -> vector<8x25xf32>
    %c0_80 = arith.constant 0 : index
    %c0_81 = arith.constant 0 : index
    %c0_82 = arith.constant 0 : index
    %82 = vector.load %arg8[%c0_80, %c0_81, %c0_82] : memref<9x8x8xf32, #tpu.memory_space<vmem>>, vector<1x8x8xf32>
    %83 = vector.shape_cast %82 : vector<1x8x8xf32> to vector<8x8xf32>
    %cst_83 = arith.constant dense<0.000000e+00> : vector<8x25xf32>
    %84 = tpu.matmul %83, %81, %cst_83 {dimension_numbers = #tpu.dot_dimension_numbers<[1], [0], [0], [1], [0, 0, 1, 1], [], []>} : vector<8x8xf32>, vector<8x25xf32>, vector<8x25xf32> -> vector<8x25xf32>
    %85 = arith.addf %78, %84 : vector<8x25xf32>
    %c1_84 = arith.constant 1 : index
    %c0_85 = arith.constant 0 : index
    %c0_86 = arith.constant 0 : index
    %86 = vector.load %arg7[%c1_84, %c0_85, %c0_86] : memref<9x49x25xf32, #tpu.memory_space<vmem>>, vector<1x49x25xf32>
    %87 = vector.shape_cast %86 : vector<1x49x25xf32> to vector<49x25xf32>
    %cst_87 = arith.constant dense<0.000000e+00> : vector<8x25xf32>
    %88 = tpu.matmul %77, %87, %cst_87 {dimension_numbers = #tpu.dot_dimension_numbers<[1], [0], [0], [1], [0, 0, 1, 1], [], []>} : vector<8x49xf32>, vector<49x25xf32>, vector<8x25xf32> -> vector<8x25xf32>
    %c1_88 = arith.constant 1 : index
    %c0_89 = arith.constant 0 : index
    %c0_90 = arith.constant 0 : index
    %89 = vector.load %arg8[%c1_88, %c0_89, %c0_90] : memref<9x8x8xf32, #tpu.memory_space<vmem>>, vector<1x8x8xf32>
    %90 = vector.shape_cast %89 : vector<1x8x8xf32> to vector<8x8xf32>
    %cst_91 = arith.constant dense<0.000000e+00> : vector<8x25xf32>
    %91 = tpu.matmul %90, %88, %cst_91 {dimension_numbers = #tpu.dot_dimension_numbers<[1], [0], [0], [1], [0, 0, 1, 1], [], []>} : vector<8x8xf32>, vector<8x25xf32>, vector<8x25xf32> -> vector<8x25xf32>
    %92 = arith.addf %85, %91 : vector<8x25xf32>
    %c2_92 = arith.constant 2 : index
    %c0_93 = arith.constant 0 : index
    %c0_94 = arith.constant 0 : index
    %93 = vector.load %arg7[%c2_92, %c0_93, %c0_94] : memref<9x49x25xf32, #tpu.memory_space<vmem>>, vector<1x49x25xf32>
    %94 = vector.shape_cast %93 : vector<1x49x25xf32> to vector<49x25xf32>
    %cst_95 = arith.constant dense<0.000000e+00> : vector<8x25xf32>
    %95 = tpu.matmul %77, %94, %cst_95 {dimension_numbers = #tpu.dot_dimension_numbers<[1], [0], [0], [1], [0, 0, 1, 1], [], []>} : vector<8x49xf32>, vector<49x25xf32>, vector<8x25xf32> -> vector<8x25xf32>
    %c2_96 = arith.constant 2 : index
    %c0_97 = arith.constant 0 : index
    %c0_98 = arith.constant 0 : index
    %96 = vector.load %arg8[%c2_96, %c0_97, %c0_98] : memref<9x8x8xf32, #tpu.memory_space<vmem>>, vector<1x8x8xf32>
    %97 = vector.shape_cast %96 : vector<1x8x8xf32> to vector<8x8xf32>
    %cst_99 = arith.constant dense<0.000000e+00> : vector<8x25xf32>
    %98 = tpu.matmul %97, %95, %cst_99 {dimension_numbers = #tpu.dot_dimension_numbers<[1], [0], [0], [1], [0, 0, 1, 1], [], []>} : vector<8x8xf32>, vector<8x25xf32>, vector<8x25xf32> -> vector<8x25xf32>
    %99 = arith.addf %92, %98 : vector<8x25xf32>
    %c3_100 = arith.constant 3 : index
    %c0_101 = arith.constant 0 : index
    %c0_102 = arith.constant 0 : index
    %100 = vector.load %arg7[%c3_100, %c0_101, %c0_102] : memref<9x49x25xf32, #tpu.memory_space<vmem>>, vector<1x49x25xf32>
    %101 = vector.shape_cast %100 : vector<1x49x25xf32> to vector<49x25xf32>
    %cst_103 = arith.constant dense<0.000000e+00> : vector<8x25xf32>
    %102 = tpu.matmul %77, %101, %cst_103 {dimension_numbers = #tpu.dot_dimension_numbers<[1], [0], [0], [1], [0, 0, 1, 1], [], []>} : vector<8x49xf32>, vector<49x25xf32>, vector<8x25xf32> -> vector<8x25xf32>
    %c3_104 = arith.constant 3 : index
    %c0_105 = arith.constant 0 : index
    %c0_106 = arith.constant 0 : index
    %103 = vector.load %arg8[%c3_104, %c0_105, %c0_106] : memref<9x8x8xf32, #tpu.memory_space<vmem>>, vector<1x8x8xf32>
    %104 = vector.shape_cast %103 : vector<1x8x8xf32> to vector<8x8xf32>
    %cst_107 = arith.constant dense<0.000000e+00> : vector<8x25xf32>
    %105 = tpu.matmul %104, %102, %cst_107 {dimension_numbers = #tpu.dot_dimension_numbers<[1], [0], [0], [1], [0, 0, 1, 1], [], []>} : vector<8x8xf32>, vector<8x25xf32>, vector<8x25xf32> -> vector<8x25xf32>
    %106 = arith.addf %99, %105 : vector<8x25xf32>
    %c4_108 = arith.constant 4 : index
    %c0_109 = arith.constant 0 : index
    %c0_110 = arith.constant 0 : index
    %107 = vector.load %arg7[%c4_108, %c0_109, %c0_110] : memref<9x49x25xf32, #tpu.memory_space<vmem>>, vector<1x49x25xf32>
    %108 = vector.shape_cast %107 : vector<1x49x25xf32> to vector<49x25xf32>
    %cst_111 = arith.constant dense<0.000000e+00> : vector<8x25xf32>
    %109 = tpu.matmul %77, %108, %cst_111 {dimension_numbers = #tpu.dot_dimension_numbers<[1], [0], [0], [1], [0, 0, 1, 1], [], []>} : vector<8x49xf32>, vector<49x25xf32>, vector<8x25xf32> -> vector<8x25xf32>
    %c4_112 = arith.constant 4 : index
    %c0_113 = arith.constant 0 : index
    %c0_114 = arith.constant 0 : index
    %110 = vector.load %arg8[%c4_112, %c0_113, %c0_114] : memref<9x8x8xf32, #tpu.memory_space<vmem>>, vector<1x8x8xf32>
    %111 = vector.shape_cast %110 : vector<1x8x8xf32> to vector<8x8xf32>
    %cst_115 = arith.constant dense<0.000000e+00> : vector<8x25xf32>
    %112 = tpu.matmul %111, %109, %cst_115 {dimension_numbers = #tpu.dot_dimension_numbers<[1], [0], [0], [1], [0, 0, 1, 1], [], []>} : vector<8x8xf32>, vector<8x25xf32>, vector<8x25xf32> -> vector<8x25xf32>
    %113 = arith.addf %106, %112 : vector<8x25xf32>
    %c5_116 = arith.constant 5 : index
    %c0_117 = arith.constant 0 : index
    %c0_118 = arith.constant 0 : index
    %114 = vector.load %arg7[%c5_116, %c0_117, %c0_118] : memref<9x49x25xf32, #tpu.memory_space<vmem>>, vector<1x49x25xf32>
    %115 = vector.shape_cast %114 : vector<1x49x25xf32> to vector<49x25xf32>
    %cst_119 = arith.constant dense<0.000000e+00> : vector<8x25xf32>
    %116 = tpu.matmul %77, %115, %cst_119 {dimension_numbers = #tpu.dot_dimension_numbers<[1], [0], [0], [1], [0, 0, 1, 1], [], []>} : vector<8x49xf32>, vector<49x25xf32>, vector<8x25xf32> -> vector<8x25xf32>
    %c5_120 = arith.constant 5 : index
    %c0_121 = arith.constant 0 : index
    %c0_122 = arith.constant 0 : index
    %117 = vector.load %arg8[%c5_120, %c0_121, %c0_122] : memref<9x8x8xf32, #tpu.memory_space<vmem>>, vector<1x8x8xf32>
    %118 = vector.shape_cast %117 : vector<1x8x8xf32> to vector<8x8xf32>
    %cst_123 = arith.constant dense<0.000000e+00> : vector<8x25xf32>
    %119 = tpu.matmul %118, %116, %cst_123 {dimension_numbers = #tpu.dot_dimension_numbers<[1], [0], [0], [1], [0, 0, 1, 1], [], []>} : vector<8x8xf32>, vector<8x25xf32>, vector<8x25xf32> -> vector<8x25xf32>
    %120 = arith.addf %113, %119 : vector<8x25xf32>
    %c6_124 = arith.constant 6 : index
    %c0_125 = arith.constant 0 : index
    %c0_126 = arith.constant 0 : index
    %121 = vector.load %arg7[%c6_124, %c0_125, %c0_126] : memref<9x49x25xf32, #tpu.memory_space<vmem>>, vector<1x49x25xf32>
    %122 = vector.shape_cast %121 : vector<1x49x25xf32> to vector<49x25xf32>
    %cst_127 = arith.constant dense<0.000000e+00> : vector<8x25xf32>
    %123 = tpu.matmul %77, %122, %cst_127 {dimension_numbers = #tpu.dot_dimension_numbers<[1], [0], [0], [1], [0, 0, 1, 1], [], []>} : vector<8x49xf32>, vector<49x25xf32>, vector<8x25xf32> -> vector<8x25xf32>
    %c6_128 = arith.constant 6 : index
    %c0_129 = arith.constant 0 : index
    %c0_130 = arith.constant 0 : index
    %124 = vector.load %arg8[%c6_128, %c0_129, %c0_130] : memref<9x8x8xf32, #tpu.memory_space<vmem>>, vector<1x8x8xf32>
    %125 = vector.shape_cast %124 : vector<1x8x8xf32> to vector<8x8xf32>
    %cst_131 = arith.constant dense<0.000000e+00> : vector<8x25xf32>
    %126 = tpu.matmul %125, %123, %cst_131 {dimension_numbers = #tpu.dot_dimension_numbers<[1], [0], [0], [1], [0, 0, 1, 1], [], []>} : vector<8x8xf32>, vector<8x25xf32>, vector<8x25xf32> -> vector<8x25xf32>
    %127 = arith.addf %120, %126 : vector<8x25xf32>
    %c7_132 = arith.constant 7 : index
    %c0_133 = arith.constant 0 : index
    %c0_134 = arith.constant 0 : index
    %128 = vector.load %arg7[%c7_132, %c0_133, %c0_134] : memref<9x49x25xf32, #tpu.memory_space<vmem>>, vector<1x49x25xf32>
    %129 = vector.shape_cast %128 : vector<1x49x25xf32> to vector<49x25xf32>
    %cst_135 = arith.constant dense<0.000000e+00> : vector<8x25xf32>
    %130 = tpu.matmul %77, %129, %cst_135 {dimension_numbers = #tpu.dot_dimension_numbers<[1], [0], [0], [1], [0, 0, 1, 1], [], []>} : vector<8x49xf32>, vector<49x25xf32>, vector<8x25xf32> -> vector<8x25xf32>
    %c7_136 = arith.constant 7 : index
    %c0_137 = arith.constant 0 : index
    %c0_138 = arith.constant 0 : index
    %131 = vector.load %arg8[%c7_136, %c0_137, %c0_138] : memref<9x8x8xf32, #tpu.memory_space<vmem>>, vector<1x8x8xf32>
    %132 = vector.shape_cast %131 : vector<1x8x8xf32> to vector<8x8xf32>
    %cst_139 = arith.constant dense<0.000000e+00> : vector<8x25xf32>
    %133 = tpu.matmul %132, %130, %cst_139 {dimension_numbers = #tpu.dot_dimension_numbers<[1], [0], [0], [1], [0, 0, 1, 1], [], []>} : vector<8x8xf32>, vector<8x25xf32>, vector<8x25xf32> -> vector<8x25xf32>
    %134 = arith.addf %127, %133 : vector<8x25xf32>
    %c8_140 = arith.constant 8 : index
    %c0_141 = arith.constant 0 : index
    %c0_142 = arith.constant 0 : index
    %135 = vector.load %arg7[%c8_140, %c0_141, %c0_142] : memref<9x49x25xf32, #tpu.memory_space<vmem>>, vector<1x49x25xf32>
    %136 = vector.shape_cast %135 : vector<1x49x25xf32> to vector<49x25xf32>
    %cst_143 = arith.constant dense<0.000000e+00> : vector<8x25xf32>
    %137 = tpu.matmul %77, %136, %cst_143 {dimension_numbers = #tpu.dot_dimension_numbers<[1], [0], [0], [1], [0, 0, 1, 1], [], []>} : vector<8x49xf32>, vector<49x25xf32>, vector<8x25xf32> -> vector<8x25xf32>
    %c8_144 = arith.constant 8 : index
    %c0_145 = arith.constant 0 : index
    %c0_146 = arith.constant 0 : index
    %138 = vector.load %arg8[%c8_144, %c0_145, %c0_146] : memref<9x8x8xf32, #tpu.memory_space<vmem>>, vector<1x8x8xf32>
    %139 = vector.shape_cast %138 : vector<1x8x8xf32> to vector<8x8xf32>
    %cst_147 = arith.constant dense<0.000000e+00> : vector<8x25xf32>
    %140 = tpu.matmul %139, %137, %cst_147 {dimension_numbers = #tpu.dot_dimension_numbers<[1], [0], [0], [1], [0, 0, 1, 1], [], []>} : vector<8x8xf32>, vector<8x25xf32>, vector<8x25xf32> -> vector<8x25xf32>
    %141 = arith.addf %134, %140 : vector<8x25xf32>
    %c0_148 = arith.constant 0 : index
    %c0_149 = arith.constant 0 : index
    %142 = vector.load %arg9[%c0_148, %c0_149] : memref<8x1xf32, #tpu.memory_space<vmem>>, vector<8x1xf32>
    %143 = vector.broadcast %142 : vector<8x1xf32> to vector<8x25xf32>
    %144 = arith.addf %141, %143 : vector<8x25xf32>
    %cst_150 = arith.constant 0.000000e+00 : f32
    %145 = vector.broadcast %cst_150 : f32 to vector<8x25xf32>
    %146 = arith.maximumf %144, %145 : vector<8x25xf32>
    %cst_151 = arith.constant 0.000000e+00 : f32
    %147 = vector.broadcast %cst_151 : f32 to vector<16x9xf32>
    %c0_152 = arith.constant 0 : index
    %c0_153 = arith.constant 0 : index
    %c0_154 = arith.constant 0 : index
    %148 = vector.load %arg10[%c0_152, %c0_153, %c0_154] : memref<9x25x9xf32, #tpu.memory_space<vmem>>, vector<1x25x9xf32>
    %149 = vector.shape_cast %148 : vector<1x25x9xf32> to vector<25x9xf32>
    %cst_155 = arith.constant dense<0.000000e+00> : vector<8x9xf32>
    %150 = tpu.matmul %146, %149, %cst_155 {dimension_numbers = #tpu.dot_dimension_numbers<[1], [0], [0], [1], [0, 0, 1, 1], [], []>} : vector<8x25xf32>, vector<25x9xf32>, vector<8x9xf32> -> vector<8x9xf32>
    %c0_156 = arith.constant 0 : index
    %c0_157 = arith.constant 0 : index
    %c0_158 = arith.constant 0 : index
    %151 = vector.load %arg11[%c0_156, %c0_157, %c0_158] : memref<9x16x8xf32, #tpu.memory_space<vmem>>, vector<1x16x8xf32>
    %152 = vector.shape_cast %151 : vector<1x16x8xf32> to vector<16x8xf32>
    %cst_159 = arith.constant dense<0.000000e+00> : vector<16x9xf32>
    %153 = tpu.matmul %152, %150, %cst_159 {dimension_numbers = #tpu.dot_dimension_numbers<[1], [0], [0], [1], [0, 0, 1, 1], [], []>} : vector<16x8xf32>, vector<8x9xf32>, vector<16x9xf32> -> vector<16x9xf32>
    %154 = arith.addf %147, %153 : vector<16x9xf32>
    %c1_160 = arith.constant 1 : index
    %c0_161 = arith.constant 0 : index
    %c0_162 = arith.constant 0 : index
    %155 = vector.load %arg10[%c1_160, %c0_161, %c0_162] : memref<9x25x9xf32, #tpu.memory_space<vmem>>, vector<1x25x9xf32>
    %156 = vector.shape_cast %155 : vector<1x25x9xf32> to vector<25x9xf32>
    %cst_163 = arith.constant dense<0.000000e+00> : vector<8x9xf32>
    %157 = tpu.matmul %146, %156, %cst_163 {dimension_numbers = #tpu.dot_dimension_numbers<[1], [0], [0], [1], [0, 0, 1, 1], [], []>} : vector<8x25xf32>, vector<25x9xf32>, vector<8x9xf32> -> vector<8x9xf32>
    %c1_164 = arith.constant 1 : index
    %c0_165 = arith.constant 0 : index
    %c0_166 = arith.constant 0 : index
    %158 = vector.load %arg11[%c1_164, %c0_165, %c0_166] : memref<9x16x8xf32, #tpu.memory_space<vmem>>, vector<1x16x8xf32>
    %159 = vector.shape_cast %158 : vector<1x16x8xf32> to vector<16x8xf32>
    %cst_167 = arith.constant dense<0.000000e+00> : vector<16x9xf32>
    %160 = tpu.matmul %159, %157, %cst_167 {dimension_numbers = #tpu.dot_dimension_numbers<[1], [0], [0], [1], [0, 0, 1, 1], [], []>} : vector<16x8xf32>, vector<8x9xf32>, vector<16x9xf32> -> vector<16x9xf32>
    %161 = arith.addf %154, %160 : vector<16x9xf32>
    %c2_168 = arith.constant 2 : index
    %c0_169 = arith.constant 0 : index
    %c0_170 = arith.constant 0 : index
    %162 = vector.load %arg10[%c2_168, %c0_169, %c0_170] : memref<9x25x9xf32, #tpu.memory_space<vmem>>, vector<1x25x9xf32>
    %163 = vector.shape_cast %162 : vector<1x25x9xf32> to vector<25x9xf32>
    %cst_171 = arith.constant dense<0.000000e+00> : vector<8x9xf32>
    %164 = tpu.matmul %146, %163, %cst_171 {dimension_numbers = #tpu.dot_dimension_numbers<[1], [0], [0], [1], [0, 0, 1, 1], [], []>} : vector<8x25xf32>, vector<25x9xf32>, vector<8x9xf32> -> vector<8x9xf32>
    %c2_172 = arith.constant 2 : index
    %c0_173 = arith.constant 0 : index
    %c0_174 = arith.constant 0 : index
    %165 = vector.load %arg11[%c2_172, %c0_173, %c0_174] : memref<9x16x8xf32, #tpu.memory_space<vmem>>, vector<1x16x8xf32>
    %166 = vector.shape_cast %165 : vector<1x16x8xf32> to vector<16x8xf32>
    %cst_175 = arith.constant dense<0.000000e+00> : vector<16x9xf32>
    %167 = tpu.matmul %166, %164, %cst_175 {dimension_numbers = #tpu.dot_dimension_numbers<[1], [0], [0], [1], [0, 0, 1, 1], [], []>} : vector<16x8xf32>, vector<8x9xf32>, vector<16x9xf32> -> vector<16x9xf32>
    %168 = arith.addf %161, %167 : vector<16x9xf32>
    %c3_176 = arith.constant 3 : index
    %c0_177 = arith.constant 0 : index
    %c0_178 = arith.constant 0 : index
    %169 = vector.load %arg10[%c3_176, %c0_177, %c0_178] : memref<9x25x9xf32, #tpu.memory_space<vmem>>, vector<1x25x9xf32>
    %170 = vector.shape_cast %169 : vector<1x25x9xf32> to vector<25x9xf32>
    %cst_179 = arith.constant dense<0.000000e+00> : vector<8x9xf32>
    %171 = tpu.matmul %146, %170, %cst_179 {dimension_numbers = #tpu.dot_dimension_numbers<[1], [0], [0], [1], [0, 0, 1, 1], [], []>} : vector<8x25xf32>, vector<25x9xf32>, vector<8x9xf32> -> vector<8x9xf32>
    %c3_180 = arith.constant 3 : index
    %c0_181 = arith.constant 0 : index
    %c0_182 = arith.constant 0 : index
    %172 = vector.load %arg11[%c3_180, %c0_181, %c0_182] : memref<9x16x8xf32, #tpu.memory_space<vmem>>, vector<1x16x8xf32>
    %173 = vector.shape_cast %172 : vector<1x16x8xf32> to vector<16x8xf32>
    %cst_183 = arith.constant dense<0.000000e+00> : vector<16x9xf32>
    %174 = tpu.matmul %173, %171, %cst_183 {dimension_numbers = #tpu.dot_dimension_numbers<[1], [0], [0], [1], [0, 0, 1, 1], [], []>} : vector<16x8xf32>, vector<8x9xf32>, vector<16x9xf32> -> vector<16x9xf32>
    %175 = arith.addf %168, %174 : vector<16x9xf32>
    %c4_184 = arith.constant 4 : index
    %c0_185 = arith.constant 0 : index
    %c0_186 = arith.constant 0 : index
    %176 = vector.load %arg10[%c4_184, %c0_185, %c0_186] : memref<9x25x9xf32, #tpu.memory_space<vmem>>, vector<1x25x9xf32>
    %177 = vector.shape_cast %176 : vector<1x25x9xf32> to vector<25x9xf32>
    %cst_187 = arith.constant dense<0.000000e+00> : vector<8x9xf32>
    %178 = tpu.matmul %146, %177, %cst_187 {dimension_numbers = #tpu.dot_dimension_numbers<[1], [0], [0], [1], [0, 0, 1, 1], [], []>} : vector<8x25xf32>, vector<25x9xf32>, vector<8x9xf32> -> vector<8x9xf32>
    %c4_188 = arith.constant 4 : index
    %c0_189 = arith.constant 0 : index
    %c0_190 = arith.constant 0 : index
    %179 = vector.load %arg11[%c4_188, %c0_189, %c0_190] : memref<9x16x8xf32, #tpu.memory_space<vmem>>, vector<1x16x8xf32>
    %180 = vector.shape_cast %179 : vector<1x16x8xf32> to vector<16x8xf32>
    %cst_191 = arith.constant dense<0.000000e+00> : vector<16x9xf32>
    %181 = tpu.matmul %180, %178, %cst_191 {dimension_numbers = #tpu.dot_dimension_numbers<[1], [0], [0], [1], [0, 0, 1, 1], [], []>} : vector<16x8xf32>, vector<8x9xf32>, vector<16x9xf32> -> vector<16x9xf32>
    %182 = arith.addf %175, %181 : vector<16x9xf32>
    %c5_192 = arith.constant 5 : index
    %c0_193 = arith.constant 0 : index
    %c0_194 = arith.constant 0 : index
    %183 = vector.load %arg10[%c5_192, %c0_193, %c0_194] : memref<9x25x9xf32, #tpu.memory_space<vmem>>, vector<1x25x9xf32>
    %184 = vector.shape_cast %183 : vector<1x25x9xf32> to vector<25x9xf32>
    %cst_195 = arith.constant dense<0.000000e+00> : vector<8x9xf32>
    %185 = tpu.matmul %146, %184, %cst_195 {dimension_numbers = #tpu.dot_dimension_numbers<[1], [0], [0], [1], [0, 0, 1, 1], [], []>} : vector<8x25xf32>, vector<25x9xf32>, vector<8x9xf32> -> vector<8x9xf32>
    %c5_196 = arith.constant 5 : index
    %c0_197 = arith.constant 0 : index
    %c0_198 = arith.constant 0 : index
    %186 = vector.load %arg11[%c5_196, %c0_197, %c0_198] : memref<9x16x8xf32, #tpu.memory_space<vmem>>, vector<1x16x8xf32>
    %187 = vector.shape_cast %186 : vector<1x16x8xf32> to vector<16x8xf32>
    %cst_199 = arith.constant dense<0.000000e+00> : vector<16x9xf32>
    %188 = tpu.matmul %187, %185, %cst_199 {dimension_numbers = #tpu.dot_dimension_numbers<[1], [0], [0], [1], [0, 0, 1, 1], [], []>} : vector<16x8xf32>, vector<8x9xf32>, vector<16x9xf32> -> vector<16x9xf32>
    %189 = arith.addf %182, %188 : vector<16x9xf32>
    %c6_200 = arith.constant 6 : index
    %c0_201 = arith.constant 0 : index
    %c0_202 = arith.constant 0 : index
    %190 = vector.load %arg10[%c6_200, %c0_201, %c0_202] : memref<9x25x9xf32, #tpu.memory_space<vmem>>, vector<1x25x9xf32>
    %191 = vector.shape_cast %190 : vector<1x25x9xf32> to vector<25x9xf32>
    %cst_203 = arith.constant dense<0.000000e+00> : vector<8x9xf32>
    %192 = tpu.matmul %146, %191, %cst_203 {dimension_numbers = #tpu.dot_dimension_numbers<[1], [0], [0], [1], [0, 0, 1, 1], [], []>} : vector<8x25xf32>, vector<25x9xf32>, vector<8x9xf32> -> vector<8x9xf32>
    %c6_204 = arith.constant 6 : index
    %c0_205 = arith.constant 0 : index
    %c0_206 = arith.constant 0 : index
    %193 = vector.load %arg11[%c6_204, %c0_205, %c0_206] : memref<9x16x8xf32, #tpu.memory_space<vmem>>, vector<1x16x8xf32>
    %194 = vector.shape_cast %193 : vector<1x16x8xf32> to vector<16x8xf32>
    %cst_207 = arith.constant dense<0.000000e+00> : vector<16x9xf32>
    %195 = tpu.matmul %194, %192, %cst_207 {dimension_numbers = #tpu.dot_dimension_numbers<[1], [0], [0], [1], [0, 0, 1, 1], [], []>} : vector<16x8xf32>, vector<8x9xf32>, vector<16x9xf32> -> vector<16x9xf32>
    %196 = arith.addf %189, %195 : vector<16x9xf32>
    %c7_208 = arith.constant 7 : index
    %c0_209 = arith.constant 0 : index
    %c0_210 = arith.constant 0 : index
    %197 = vector.load %arg10[%c7_208, %c0_209, %c0_210] : memref<9x25x9xf32, #tpu.memory_space<vmem>>, vector<1x25x9xf32>
    %198 = vector.shape_cast %197 : vector<1x25x9xf32> to vector<25x9xf32>
    %cst_211 = arith.constant dense<0.000000e+00> : vector<8x9xf32>
    %199 = tpu.matmul %146, %198, %cst_211 {dimension_numbers = #tpu.dot_dimension_numbers<[1], [0], [0], [1], [0, 0, 1, 1], [], []>} : vector<8x25xf32>, vector<25x9xf32>, vector<8x9xf32> -> vector<8x9xf32>
    %c7_212 = arith.constant 7 : index
    %c0_213 = arith.constant 0 : index
    %c0_214 = arith.constant 0 : index
    %200 = vector.load %arg11[%c7_212, %c0_213, %c0_214] : memref<9x16x8xf32, #tpu.memory_space<vmem>>, vector<1x16x8xf32>
    %201 = vector.shape_cast %200 : vector<1x16x8xf32> to vector<16x8xf32>
    %cst_215 = arith.constant dense<0.000000e+00> : vector<16x9xf32>
    %202 = tpu.matmul %201, %199, %cst_215 {dimension_numbers = #tpu.dot_dimension_numbers<[1], [0], [0], [1], [0, 0, 1, 1], [], []>} : vector<16x8xf32>, vector<8x9xf32>, vector<16x9xf32> -> vector<16x9xf32>
    %203 = arith.addf %196, %202 : vector<16x9xf32>
    %c8_216 = arith.constant 8 : index
    %c0_217 = arith.constant 0 : index
    %c0_218 = arith.constant 0 : index
    %204 = vector.load %arg10[%c8_216, %c0_217, %c0_218] : memref<9x25x9xf32, #tpu.memory_space<vmem>>, vector<1x25x9xf32>
    %205 = vector.shape_cast %204 : vector<1x25x9xf32> to vector<25x9xf32>
    %cst_219 = arith.constant dense<0.000000e+00> : vector<8x9xf32>
    %206 = tpu.matmul %146, %205, %cst_219 {dimension_numbers = #tpu.dot_dimension_numbers<[1], [0], [0], [1], [0, 0, 1, 1], [], []>} : vector<8x25xf32>, vector<25x9xf32>, vector<8x9xf32> -> vector<8x9xf32>
    %c8_220 = arith.constant 8 : index
    %c0_221 = arith.constant 0 : index
    %c0_222 = arith.constant 0 : index
    %207 = vector.load %arg11[%c8_220, %c0_221, %c0_222] : memref<9x16x8xf32, #tpu.memory_space<vmem>>, vector<1x16x8xf32>
    %208 = vector.shape_cast %207 : vector<1x16x8xf32> to vector<16x8xf32>
    %cst_223 = arith.constant dense<0.000000e+00> : vector<16x9xf32>
    %209 = tpu.matmul %208, %206, %cst_223 {dimension_numbers = #tpu.dot_dimension_numbers<[1], [0], [0], [1], [0, 0, 1, 1], [], []>} : vector<16x8xf32>, vector<8x9xf32>, vector<16x9xf32> -> vector<16x9xf32>
    %210 = arith.addf %203, %209 : vector<16x9xf32>
    %c0_224 = arith.constant 0 : index
    %c0_225 = arith.constant 0 : index
    %211 = vector.load %arg12[%c0_224, %c0_225] : memref<16x1xf32, #tpu.memory_space<vmem>>, vector<16x1xf32>
    %212 = vector.broadcast %211 : vector<16x1xf32> to vector<16x9xf32>
    %213 = arith.addf %210, %212 : vector<16x9xf32>
    %cst_226 = arith.constant 0.000000e+00 : f32
    %214 = vector.broadcast %cst_226 : f32 to vector<16x9xf32>
    %215 = arith.maximumf %213, %214 : vector<16x9xf32>
    %c0_227 = arith.constant 0 : index
    %c0_228 = arith.constant 0 : index
    %216 = vector.load %arg14[%c0_227, %c0_228] : memref<1x64xf32, #tpu.memory_space<vmem>>, vector<1x64xf32>
    %217 = vector.extract_strided_slice %215 {offsets = [0, 0], sizes = [1, 9], strides = [1, 1]} : vector<16x9xf32> to vector<1x9xf32>
    %c0_229 = arith.constant 0 : index
    %c0_230 = arith.constant 0 : index
    %c0_231 = arith.constant 0 : index
    %218 = vector.load %arg13[%c0_229, %c0_230, %c0_231] : memref<16x9x64xf32, #tpu.memory_space<vmem>>, vector<1x9x64xf32>
    %219 = vector.shape_cast %218 : vector<1x9x64xf32> to vector<9x64xf32>
    %cst_232 = arith.constant dense<0.000000e+00> : vector<1x64xf32>
    %220 = tpu.matmul %217, %219, %cst_232 {dimension_numbers = #tpu.dot_dimension_numbers<[1], [0], [0], [1], [0, 0, 1, 1], [], []>} : vector<1x9xf32>, vector<9x64xf32>, vector<1x64xf32> -> vector<1x64xf32>
    %221 = arith.addf %216, %220 : vector<1x64xf32>
    %222 = vector.extract_strided_slice %215 {offsets = [1, 0], sizes = [1, 9], strides = [1, 1]} : vector<16x9xf32> to vector<1x9xf32>
    %c1_233 = arith.constant 1 : index
    %c0_234 = arith.constant 0 : index
    %c0_235 = arith.constant 0 : index
    %223 = vector.load %arg13[%c1_233, %c0_234, %c0_235] : memref<16x9x64xf32, #tpu.memory_space<vmem>>, vector<1x9x64xf32>
    %224 = vector.shape_cast %223 : vector<1x9x64xf32> to vector<9x64xf32>
    %cst_236 = arith.constant dense<0.000000e+00> : vector<1x64xf32>
    %225 = tpu.matmul %222, %224, %cst_236 {dimension_numbers = #tpu.dot_dimension_numbers<[1], [0], [0], [1], [0, 0, 1, 1], [], []>} : vector<1x9xf32>, vector<9x64xf32>, vector<1x64xf32> -> vector<1x64xf32>
    %226 = arith.addf %221, %225 : vector<1x64xf32>
    %227 = vector.extract_strided_slice %215 {offsets = [2, 0], sizes = [1, 9], strides = [1, 1]} : vector<16x9xf32> to vector<1x9xf32>
    %c2_237 = arith.constant 2 : index
    %c0_238 = arith.constant 0 : index
    %c0_239 = arith.constant 0 : index
    %228 = vector.load %arg13[%c2_237, %c0_238, %c0_239] : memref<16x9x64xf32, #tpu.memory_space<vmem>>, vector<1x9x64xf32>
    %229 = vector.shape_cast %228 : vector<1x9x64xf32> to vector<9x64xf32>
    %cst_240 = arith.constant dense<0.000000e+00> : vector<1x64xf32>
    %230 = tpu.matmul %227, %229, %cst_240 {dimension_numbers = #tpu.dot_dimension_numbers<[1], [0], [0], [1], [0, 0, 1, 1], [], []>} : vector<1x9xf32>, vector<9x64xf32>, vector<1x64xf32> -> vector<1x64xf32>
    %231 = arith.addf %226, %230 : vector<1x64xf32>
    %232 = vector.extract_strided_slice %215 {offsets = [3, 0], sizes = [1, 9], strides = [1, 1]} : vector<16x9xf32> to vector<1x9xf32>
    %c3_241 = arith.constant 3 : index
    %c0_242 = arith.constant 0 : index
    %c0_243 = arith.constant 0 : index
    %233 = vector.load %arg13[%c3_241, %c0_242, %c0_243] : memref<16x9x64xf32, #tpu.memory_space<vmem>>, vector<1x9x64xf32>
    %234 = vector.shape_cast %233 : vector<1x9x64xf32> to vector<9x64xf32>
    %cst_244 = arith.constant dense<0.000000e+00> : vector<1x64xf32>
    %235 = tpu.matmul %232, %234, %cst_244 {dimension_numbers = #tpu.dot_dimension_numbers<[1], [0], [0], [1], [0, 0, 1, 1], [], []>} : vector<1x9xf32>, vector<9x64xf32>, vector<1x64xf32> -> vector<1x64xf32>
    %236 = arith.addf %231, %235 : vector<1x64xf32>
    %237 = vector.extract_strided_slice %215 {offsets = [4, 0], sizes = [1, 9], strides = [1, 1]} : vector<16x9xf32> to vector<1x9xf32>
    %c4_245 = arith.constant 4 : index
    %c0_246 = arith.constant 0 : index
    %c0_247 = arith.constant 0 : index
    %238 = vector.load %arg13[%c4_245, %c0_246, %c0_247] : memref<16x9x64xf32, #tpu.memory_space<vmem>>, vector<1x9x64xf32>
    %239 = vector.shape_cast %238 : vector<1x9x64xf32> to vector<9x64xf32>
    %cst_248 = arith.constant dense<0.000000e+00> : vector<1x64xf32>
    %240 = tpu.matmul %237, %239, %cst_248 {dimension_numbers = #tpu.dot_dimension_numbers<[1], [0], [0], [1], [0, 0, 1, 1], [], []>} : vector<1x9xf32>, vector<9x64xf32>, vector<1x64xf32> -> vector<1x64xf32>
    %241 = arith.addf %236, %240 : vector<1x64xf32>
    %242 = vector.extract_strided_slice %215 {offsets = [5, 0], sizes = [1, 9], strides = [1, 1]} : vector<16x9xf32> to vector<1x9xf32>
    %c5_249 = arith.constant 5 : index
    %c0_250 = arith.constant 0 : index
    %c0_251 = arith.constant 0 : index
    %243 = vector.load %arg13[%c5_249, %c0_250, %c0_251] : memref<16x9x64xf32, #tpu.memory_space<vmem>>, vector<1x9x64xf32>
    %244 = vector.shape_cast %243 : vector<1x9x64xf32> to vector<9x64xf32>
    %cst_252 = arith.constant dense<0.000000e+00> : vector<1x64xf32>
    %245 = tpu.matmul %242, %244, %cst_252 {dimension_numbers = #tpu.dot_dimension_numbers<[1], [0], [0], [1], [0, 0, 1, 1], [], []>} : vector<1x9xf32>, vector<9x64xf32>, vector<1x64xf32> -> vector<1x64xf32>
    %246 = arith.addf %241, %245 : vector<1x64xf32>
    %247 = vector.extract_strided_slice %215 {offsets = [6, 0], sizes = [1, 9], strides = [1, 1]} : vector<16x9xf32> to vector<1x9xf32>
    %c6_253 = arith.constant 6 : index
    %c0_254 = arith.constant 0 : index
    %c0_255 = arith.constant 0 : index
    %248 = vector.load %arg13[%c6_253, %c0_254, %c0_255] : memref<16x9x64xf32, #tpu.memory_space<vmem>>, vector<1x9x64xf32>
    %249 = vector.shape_cast %248 : vector<1x9x64xf32> to vector<9x64xf32>
    %cst_256 = arith.constant dense<0.000000e+00> : vector<1x64xf32>
    %250 = tpu.matmul %247, %249, %cst_256 {dimension_numbers = #tpu.dot_dimension_numbers<[1], [0], [0], [1], [0, 0, 1, 1], [], []>} : vector<1x9xf32>, vector<9x64xf32>, vector<1x64xf32> -> vector<1x64xf32>
    %251 = arith.addf %246, %250 : vector<1x64xf32>
    %252 = vector.extract_strided_slice %215 {offsets = [7, 0], sizes = [1, 9], strides = [1, 1]} : vector<16x9xf32> to vector<1x9xf32>
    %c7_257 = arith.constant 7 : index
    %c0_258 = arith.constant 0 : index
    %c0_259 = arith.constant 0 : index
    %253 = vector.load %arg13[%c7_257, %c0_258, %c0_259] : memref<16x9x64xf32, #tpu.memory_space<vmem>>, vector<1x9x64xf32>
    %254 = vector.shape_cast %253 : vector<1x9x64xf32> to vector<9x64xf32>
    %cst_260 = arith.constant dense<0.000000e+00> : vector<1x64xf32>
    %255 = tpu.matmul %252, %254, %cst_260 {dimension_numbers = #tpu.dot_dimension_numbers<[1], [0], [0], [1], [0, 0, 1, 1], [], []>} : vector<1x9xf32>, vector<9x64xf32>, vector<1x64xf32> -> vector<1x64xf32>
    %256 = arith.addf %251, %255 : vector<1x64xf32>
    %257 = vector.extract_strided_slice %215 {offsets = [8, 0], sizes = [1, 9], strides = [1, 1]} : vector<16x9xf32> to vector<1x9xf32>
    %c8_261 = arith.constant 8 : index
    %c0_262 = arith.constant 0 : index
    %c0_263 = arith.constant 0 : index
    %258 = vector.load %arg13[%c8_261, %c0_262, %c0_263] : memref<16x9x64xf32, #tpu.memory_space<vmem>>, vector<1x9x64xf32>
    %259 = vector.shape_cast %258 : vector<1x9x64xf32> to vector<9x64xf32>
    %cst_264 = arith.constant dense<0.000000e+00> : vector<1x64xf32>
    %260 = tpu.matmul %257, %259, %cst_264 {dimension_numbers = #tpu.dot_dimension_numbers<[1], [0], [0], [1], [0, 0, 1, 1], [], []>} : vector<1x9xf32>, vector<9x64xf32>, vector<1x64xf32> -> vector<1x64xf32>
    %261 = arith.addf %256, %260 : vector<1x64xf32>
    %262 = vector.extract_strided_slice %215 {offsets = [9, 0], sizes = [1, 9], strides = [1, 1]} : vector<16x9xf32> to vector<1x9xf32>
    %c9 = arith.constant 9 : index
    %c0_265 = arith.constant 0 : index
    %c0_266 = arith.constant 0 : index
    %263 = vector.load %arg13[%c9, %c0_265, %c0_266] : memref<16x9x64xf32, #tpu.memory_space<vmem>>, vector<1x9x64xf32>
    %264 = vector.shape_cast %263 : vector<1x9x64xf32> to vector<9x64xf32>
    %cst_267 = arith.constant dense<0.000000e+00> : vector<1x64xf32>
    %265 = tpu.matmul %262, %264, %cst_267 {dimension_numbers = #tpu.dot_dimension_numbers<[1], [0], [0], [1], [0, 0, 1, 1], [], []>} : vector<1x9xf32>, vector<9x64xf32>, vector<1x64xf32> -> vector<1x64xf32>
    %266 = arith.addf %261, %265 : vector<1x64xf32>
    %267 = vector.extract_strided_slice %215 {offsets = [10, 0], sizes = [1, 9], strides = [1, 1]} : vector<16x9xf32> to vector<1x9xf32>
    %c10 = arith.constant 10 : index
    %c0_268 = arith.constant 0 : index
    %c0_269 = arith.constant 0 : index
    %268 = vector.load %arg13[%c10, %c0_268, %c0_269] : memref<16x9x64xf32, #tpu.memory_space<vmem>>, vector<1x9x64xf32>
    %269 = vector.shape_cast %268 : vector<1x9x64xf32> to vector<9x64xf32>
    %cst_270 = arith.constant dense<0.000000e+00> : vector<1x64xf32>
    %270 = tpu.matmul %267, %269, %cst_270 {dimension_numbers = #tpu.dot_dimension_numbers<[1], [0], [0], [1], [0, 0, 1, 1], [], []>} : vector<1x9xf32>, vector<9x64xf32>, vector<1x64xf32> -> vector<1x64xf32>
    %271 = arith.addf %266, %270 : vector<1x64xf32>
    %272 = vector.extract_strided_slice %215 {offsets = [11, 0], sizes = [1, 9], strides = [1, 1]} : vector<16x9xf32> to vector<1x9xf32>
    %c11 = arith.constant 11 : index
    %c0_271 = arith.constant 0 : index
    %c0_272 = arith.constant 0 : index
    %273 = vector.load %arg13[%c11, %c0_271, %c0_272] : memref<16x9x64xf32, #tpu.memory_space<vmem>>, vector<1x9x64xf32>
    %274 = vector.shape_cast %273 : vector<1x9x64xf32> to vector<9x64xf32>
    %cst_273 = arith.constant dense<0.000000e+00> : vector<1x64xf32>
    %275 = tpu.matmul %272, %274, %cst_273 {dimension_numbers = #tpu.dot_dimension_numbers<[1], [0], [0], [1], [0, 0, 1, 1], [], []>} : vector<1x9xf32>, vector<9x64xf32>, vector<1x64xf32> -> vector<1x64xf32>
    %276 = arith.addf %271, %275 : vector<1x64xf32>
    %277 = vector.extract_strided_slice %215 {offsets = [12, 0], sizes = [1, 9], strides = [1, 1]} : vector<16x9xf32> to vector<1x9xf32>
    %c12 = arith.constant 12 : index
    %c0_274 = arith.constant 0 : index
    %c0_275 = arith.constant 0 : index
    %278 = vector.load %arg13[%c12, %c0_274, %c0_275] : memref<16x9x64xf32, #tpu.memory_space<vmem>>, vector<1x9x64xf32>
    %279 = vector.shape_cast %278 : vector<1x9x64xf32> to vector<9x64xf32>
    %cst_276 = arith.constant dense<0.000000e+00> : vector<1x64xf32>
    %280 = tpu.matmul %277, %279, %cst_276 {dimension_numbers = #tpu.dot_dimension_numbers<[1], [0], [0], [1], [0, 0, 1, 1], [], []>} : vector<1x9xf32>, vector<9x64xf32>, vector<1x64xf32> -> vector<1x64xf32>
    %281 = arith.addf %276, %280 : vector<1x64xf32>
    %282 = vector.extract_strided_slice %215 {offsets = [13, 0], sizes = [1, 9], strides = [1, 1]} : vector<16x9xf32> to vector<1x9xf32>
    %c13 = arith.constant 13 : index
    %c0_277 = arith.constant 0 : index
    %c0_278 = arith.constant 0 : index
    %283 = vector.load %arg13[%c13, %c0_277, %c0_278] : memref<16x9x64xf32, #tpu.memory_space<vmem>>, vector<1x9x64xf32>
    %284 = vector.shape_cast %283 : vector<1x9x64xf32> to vector<9x64xf32>
    %cst_279 = arith.constant dense<0.000000e+00> : vector<1x64xf32>
    %285 = tpu.matmul %282, %284, %cst_279 {dimension_numbers = #tpu.dot_dimension_numbers<[1], [0], [0], [1], [0, 0, 1, 1], [], []>} : vector<1x9xf32>, vector<9x64xf32>, vector<1x64xf32> -> vector<1x64xf32>
    %286 = arith.addf %281, %285 : vector<1x64xf32>
    %287 = vector.extract_strided_slice %215 {offsets = [14, 0], sizes = [1, 9], strides = [1, 1]} : vector<16x9xf32> to vector<1x9xf32>
    %c14 = arith.constant 14 : index
    %c0_280 = arith.constant 0 : index
    %c0_281 = arith.constant 0 : index
    %288 = vector.load %arg13[%c14, %c0_280, %c0_281] : memref<16x9x64xf32, #tpu.memory_space<vmem>>, vector<1x9x64xf32>
    %289 = vector.shape_cast %288 : vector<1x9x64xf32> to vector<9x64xf32>
    %cst_282 = arith.constant dense<0.000000e+00> : vector<1x64xf32>
    %290 = tpu.matmul %287, %289, %cst_282 {dimension_numbers = #tpu.dot_dimension_numbers<[1], [0], [0], [1], [0, 0, 1, 1], [], []>} : vector<1x9xf32>, vector<9x64xf32>, vector<1x64xf32> -> vector<1x64xf32>
    %291 = arith.addf %286, %290 : vector<1x64xf32>
    %292 = vector.extract_strided_slice %215 {offsets = [15, 0], sizes = [1, 9], strides = [1, 1]} : vector<16x9xf32> to vector<1x9xf32>
    %c15 = arith.constant 15 : index
    %c0_283 = arith.constant 0 : index
    %c0_284 = arith.constant 0 : index
    %293 = vector.load %arg13[%c15, %c0_283, %c0_284] : memref<16x9x64xf32, #tpu.memory_space<vmem>>, vector<1x9x64xf32>
    %294 = vector.shape_cast %293 : vector<1x9x64xf32> to vector<9x64xf32>
    %cst_285 = arith.constant dense<0.000000e+00> : vector<1x64xf32>
    %295 = tpu.matmul %292, %294, %cst_285 {dimension_numbers = #tpu.dot_dimension_numbers<[1], [0], [0], [1], [0, 0, 1, 1], [], []>} : vector<1x9xf32>, vector<9x64xf32>, vector<1x64xf32> -> vector<1x64xf32>
    %296 = arith.addf %291, %295 : vector<1x64xf32>
    %cst_286 = arith.constant 0.000000e+00 : f32
    %297 = vector.broadcast %cst_286 : f32 to vector<1x64xf32>
    %298 = arith.maximumf %296, %297 : vector<1x64xf32>
    %c0_287 = arith.constant 0 : index
    %c0_288 = arith.constant 0 : index
    %299 = vector.load %arg15[%c0_287, %c0_288] : memref<64x9xf32, #tpu.memory_space<vmem>>, vector<64x9xf32>
    %cst_289 = arith.constant dense<0.000000e+00> : vector<1x9xf32>
    %300 = tpu.matmul %298, %299, %cst_289 {dimension_numbers = #tpu.dot_dimension_numbers<[1], [0], [0], [1], [0, 0, 1, 1], [], []>} : vector<1x64xf32>, vector<64x9xf32>, vector<1x9xf32> -> vector<1x9xf32>
    %c0_290 = arith.constant 0 : index
    %c0_291 = arith.constant 0 : index
    %301 = vector.load %arg16[%c0_290, %c0_291] : memref<1x9xf32, #tpu.memory_space<vmem>>, vector<1x9xf32>
    %302 = arith.addf %300, %301 : vector<1x9xf32>
    %303 = vector.extract_strided_slice %302 {offsets = [0, 0], sizes = [1, 1], strides = [1, 1]} : vector<1x9xf32> to vector<1x1xf32>
    %304 = vector.extract_strided_slice %302 {offsets = [0, 1], sizes = [1, 8], strides = [1, 1]} : vector<1x9xf32> to vector<1x8xf32>
    %cst_292 = arith.constant dense<0.000000e+00> : vector<1xf32>
    %305 = vector.multi_reduction <add>, %304, %cst_292 [1] : vector<1x8xf32> to vector<1xf32>
    %306 = vector.shape_cast %305 : vector<1xf32> to vector<1x1xf32>
    %cst_293 = arith.constant 8.000000e+00 : f32
    %307 = vector.broadcast %cst_293 : f32 to vector<1x1xf32>
    %308 = arith.divf %306, %307 : vector<1x1xf32>
    %309 = vector.broadcast %308 : vector<1x1xf32> to vector<1x8xf32>
    %310 = arith.subf %304, %309 : vector<1x8xf32>
    %311 = vector.broadcast %303 : vector<1x1xf32> to vector<1x8xf32>
    %312 = arith.addf %311, %310 : vector<1x8xf32>
    %c0_294 = arith.constant 0 : index
    %c0_295 = arith.constant 0 : index
    %c0_296 = arith.constant 0 : index
    %313 = vector.load %arg17[%c0_294, %c0_295, %c0_296] : memref<1x1x8xf32, #tpu.memory_space<vmem>>, vector<1x1x8xf32>
    %314 = vector.shape_cast %313 : vector<1x1x8xf32> to vector<1x8xf32>
    %315 = vector.shape_cast %312 : vector<1x8xf32> to vector<1x1x8xf32>
    tpu.vector_store %arg17[%c0_294, %c0_295, %c0_296], %315 {strides = array<i32>} : memref<1x1x8xf32, #tpu.memory_space<vmem>>, vector<1x1x8xf32>,
    return
  }
  func.func @transform_0(%arg0: i32) -> (i32, i32, i32) {
    %c0_i32 = arith.constant 0 : i32
    %c0_i32_0 = arith.constant 0 : i32
    %c0_i32_1 = arith.constant 0 : i32
    return %arg0, %c0_i32, %c0_i32_0 : i32, i32, i32
  }
  func.func @transform_1(%arg0: i32) -> (i32, i32) {
    %c0_i32 = arith.constant 0 : i32
    %c0_i32_0 = arith.constant 0 : i32
    %c0_i32_1 = arith.constant 0 : i32
    return %c0_i32, %c0_i32_0 : i32, i32
  }
  func.func @transform_2(%arg0: i32) -> (i32, i32) {
    %c0_i32 = arith.constant 0 : i32
    %c0_i32_0 = arith.constant 0 : i32
    %c0_i32_1 = arith.constant 0 : i32
    return %c0_i32, %c0_i32_0 : i32, i32
  }
  func.func @transform_3(%arg0: i32) -> (i32, i32, i32) {
    %c0_i32 = arith.constant 0 : i32
    %c0_i32_0 = arith.constant 0 : i32
    %c0_i32_1 = arith.constant 0 : i32
    %c0_i32_2 = arith.constant 0 : i32
    return %c0_i32, %c0_i32_0, %c0_i32_1 : i32, i32, i32
  }
  func.func @transform_4(%arg0: i32) -> (i32, i32, i32) {
    %c0_i32 = arith.constant 0 : i32
    %c0_i32_0 = arith.constant 0 : i32
    %c0_i32_1 = arith.constant 0 : i32
    %c0_i32_2 = arith.constant 0 : i32
    return %c0_i32, %c0_i32_0, %c0_i32_1 : i32, i32, i32
  }
  func.func @transform_5(%arg0: i32) -> (i32, i32) {
    %c0_i32 = arith.constant 0 : i32
    %c0_i32_0 = arith.constant 0 : i32
    %c0_i32_1 = arith.constant 0 : i32
    return %c0_i32, %c0_i32_0 : i32, i32
  }
  func.func @transform_6(%arg0: i32) -> (i32, i32, i32) {
    %c0_i32 = arith.constant 0 : i32
    %c0_i32_0 = arith.constant 0 : i32
    %c0_i32_1 = arith.constant 0 : i32
    %c0_i32_2 = arith.constant 0 : i32
    return %c0_i32, %c0_i32_0, %c0_i32_1 : i32, i32, i32
  }
  func.func @transform_7(%arg0: i32) -> (i32, i32, i32) {
    %c0_i32 = arith.constant 0 : i32
    %c0_i32_0 = arith.constant 0 : i32
    %c0_i32_1 = arith.constant 0 : i32
    %c0_i32_2 = arith.constant 0 : i32
    return %c0_i32, %c0_i32_0, %c0_i32_1 : i32, i32, i32
  }
  func.func @transform_8(%arg0: i32) -> (i32, i32) {
    %c0_i32 = arith.constant 0 : i32
    %c0_i32_0 = arith.constant 0 : i32
    %c0_i32_1 = arith.constant 0 : i32
    return %c0_i32, %c0_i32_0 : i32, i32
  }
  func.func @transform_9(%arg0: i32) -> (i32, i32, i32) {
    %c0_i32 = arith.constant 0 : i32
    %c0_i32_0 = arith.constant 0 : i32
    %c0_i32_1 = arith.constant 0 : i32
    %c0_i32_2 = arith.constant 0 : i32
    return %c0_i32, %c0_i32_0, %c0_i32_1 : i32, i32, i32
  }
  func.func @transform_10(%arg0: i32) -> (i32, i32, i32) {
    %c0_i32 = arith.constant 0 : i32
    %c0_i32_0 = arith.constant 0 : i32
    %c0_i32_1 = arith.constant 0 : i32
    %c0_i32_2 = arith.constant 0 : i32
    return %c0_i32, %c0_i32_0, %c0_i32_1 : i32, i32, i32
  }
  func.func @transform_11(%arg0: i32) -> (i32, i32) {
    %c0_i32 = arith.constant 0 : i32
    %c0_i32_0 = arith.constant 0 : i32
    %c0_i32_1 = arith.constant 0 : i32
    return %c0_i32, %c0_i32_0 : i32, i32
  }
  func.func @transform_12(%arg0: i32) -> (i32, i32, i32) {
    %c0_i32 = arith.constant 0 : i32
    %c0_i32_0 = arith.constant 0 : i32
    %c0_i32_1 = arith.constant 0 : i32
    %c0_i32_2 = arith.constant 0 : i32
    return %c0_i32, %c0_i32_0, %c0_i32_1 : i32, i32, i32
  }
  func.func @transform_13(%arg0: i32) -> (i32, i32) {
    %c0_i32 = arith.constant 0 : i32
    %c0_i32_0 = arith.constant 0 : i32
    %c0_i32_1 = arith.constant 0 : i32
    return %c0_i32, %c0_i32_0 : i32, i32
  }
  func.func @transform_14(%arg0: i32) -> (i32, i32) {
    %c0_i32 = arith.constant 0 : i32
    %c0_i32_0 = arith.constant 0 : i32
    %c0_i32_1 = arith.constant 0 : i32
    return %c0_i32, %c0_i32_0 : i32, i32
  }
  func.func @transform_15(%arg0: i32) -> (i32, i32) {
    %c0_i32 = arith.constant 0 : i32
    %c0_i32_0 = arith.constant 0 : i32
    %c0_i32_1 = arith.constant 0 : i32
    return %c0_i32, %c0_i32_0 : i32, i32
  }
  func.func @transform_16(%arg0: i32) -> (i32, i32, i32) {
    %c0_i32 = arith.constant 0 : i32
    %c0_i32_0 = arith.constant 0 : i32
    %c0_i32_1 = arith.constant 0 : i32
    return %arg0, %c0_i32, %c0_i32_0 : i32, i32, i32
  }
}

</mosaic_0001>

<bundles_post_ra>
// kernel: duel_qnet_forward.1
= control target key start
LH: loop header
LB: loop body
LE: loop exit
PB: predicated region body
PF: predicated region fallthrough
CT: control target
= control target key end

     0   :  { %s10246_s0 = inlined_call_operand.vmem [shape: f32[2,36,225], index: 0, kind: input, shape index: {}]   ;;  %s10247_s1 = inlined_call_operand.vmem [shape: f32[8,36], index: 1, kind: input, shape index: {}]   ;;  %s10248_s2 = inlined_call_operand.vmem [shape: f32[8,1], index: 2, kind: input, shape index: {}]   ;;  %s10249_s3 = inlined_call_operand.vmem [shape: f32[9,225,49], index: 3, kind: input, shape index: {}]   ;;  %s10250_s4 = inlined_call_operand.vmem [shape: f32[9,8,8], index: 4, kind: input, shape index: {}]   ;;  %s10251_s5 = inlined_call_operand.vmem [shape: f32[8,1], index: 5, kind: input, shape index: {}]   ;;  %s10252_s6 = inlined_call_operand.vmem [shape: f32[9,49,25], index: 6, kind: input, shape index: {}]   ;;  %s10253_s7 = inlined_call_operand.vmem [shape: f32[9,8,8], index: 7, kind: input, shape index: {}]   ;;  %s10254_s8 = inlined_call_operand.vmem [shape: f32[8,1], index: 8, kind: input, shape index: {}]   ;;  %s10255_s9 = inlined_call_operand.vmem [shape: f32[9,25,9], index: 9, kind: input, shape index: {}]   ;;  %s10256_s10 = inlined_call_operand.vmem [shape: f32[9,16,8], index: 10, kind: input, shape index: {}]   ;;  %s10257_s11 = inlined_call_operand.vmem [shape: f32[16,1], index: 11, kind: input, shape index: {}]   ;;  %s10258_s12 = inlined_call_operand.vmem [shape: f32[16,9,64], index: 12, kind: input, shape index: {}]   ;;  %s10259_s13 = inlined_call_operand.vmem [shape: f32[1,64], index: 13, kind: input, shape index: {}]   ;;  %s10260_s14 = inlined_call_operand.vmem [shape: f32[64,9], index: 14, kind: input, shape index: {}]   ;;  %s10261_s15 = inlined_call_operand.vmem [shape: f32[1,9], index: 15, kind: input, shape index: {}]   ;;  %s10262_s16 = inlined_call_operand.hbm [shape: f32[2,1,8], index: 16, kind: output, shape index: {}]  }
   0x1   :  { %10267 = sst [smem:[#allocation9_spill]] %s10246_s0 }
   0x2   :  { %10268 = sst [smem:[#allocation10_spill]] %s10248_s2 }
   0x3   :  { %21 = vsyncpa [#allocation3], 0 }
   0x4   :  { %23 = vsyncpa [#allocation3 + $0x1], 0  ;;  %s8075_s21 = smov 0   ;;  %s8077_s22 = smov 0  }
   0x5   :  { %s8079_s23 = smov 0   ;;  %s8081_s24 = smov 0  }
   0x6 LB: > { %10269 = sst [smem:[#allocation5_spill]] %s7979_s23  ;;  %s8096_s25 = sadd.s32 4294967295, %s7983_s24   ;;  %s7983_s24 = sphi %s8081_s24, %s10278_s24   ;;  %s7979_s23 = sphi %s8079_s23, %s10280_s23   ;;  %s7975_s22 = sphi %s8077_s22, %s10282_s22   ;;  %s7971_s21 = sphi %s8075_s21, %s10281_s21  }
   0x7   : > { %s6606_s26 = sadd.s32 4294967294, %s7983_s24   ;;  %s8100_s27 = sadd.s32 1, %s7983_s24  }
   0x8   : > { %10270 = sst [smem:[#allocation6_spill]] %s8100_s27  ;;  %s377_s28 = sadd.s32 1, %s7979_s23 }
   0x9   : > { %s374_s29 = ssub.s32 %s7983_s24, %s8100_s27  ;;  %p387_p0 = scmp.ne.s32.totalorder %s7979_s23, %s7975_s22 }
   0xa   : > { %p375_p1 = scmp.eq.s32.totalorder %s374_s29, 0  ;;  %p388_p2 = scmp.eq.s32.totalorder %s8096_s25, 1 }
   0xb   : > { %p393_p3 = scmp.ne.s32.totalorder %s7975_s22, %s7971_s21  ;;  %p394_p4 = scmp.eq.s32.totalorder %s6606_s26, 1 }
   0xc   : > { %s8111_s30 = scalar_select %p375_p1, %s7979_s23, %s377_s28  }
   0xd   : > { %p8113_p5 = por %p388_p2, %p387_p0  ;;  %p8117_p6 = por %p394_p4, %p393_p3 }
   0xe   : > { %10271 = sst [smem:[#allocation7_spill]] %s8111_s30  ;;  %p6609_p7 = scmp.ge.s32.totalorder %s7983_s24, 1 }
   0xf   : > { %s10273_s17 = scalar_select %p8117_p6, 1, 0 }
  0x10   : > { %p465_p8 = scmp.lt.s32.totalorder %s7983_s24, 3 }
  0x11   : > { %10274 = sst [smem:[#allocation8_spill]] %s10273_s17 }
  0x12   : > { %p466_p9 = pnand %p6609_p7, %p465_p8 }
  0x13   : > { %p514_p10 = scmp.lt.s32.totalorder (!%p466_p9), %s8096_s25, 1  ;;  %s10275_s2 = sld [smem:[#allocation10_spill]] (!%p466_p9) }
  0x14   : > { %469 = sbr.rel (%p466_p9) target bundleno = 6713 (0x1a39), region = 84  ;;  %s10276_s17 = sld [smem:[#allocation9_spill]] (!%p466_p9) }
  0x15   : > { %s7988_s28 = smov (!%p466_p9), 127   ;;  %s512_s23 = sand.u32 (!%p466_p9), 1, %s7975_s22  }
  0x16   : > { %s7119_s27 = sshll.u32 (!%p466_p9), %s8096_s25, 4  ;;  %s7989_s26 = smov (!%p466_p9), [#allocation2]  }
  0x19   : > { %v7985_v0 = vmov 0.0   ;;  %v7986_v1 = vmov 0   ;;  %v530_v2 = vld [vmem:[%s10275_s2] sm:$0xff]  ;;  %s515_s20 = scalar_select %p514_p10, %s8096_s25, 1  ;;  %v635_v3 = vld [vmem:[%s10249_s3 + $0x78] sm:$0xff]  ;;  %v634_v4 = vld [vmem:[%s10249_s3 + $0x70] sm:$0xff] }
  0x1a   : > { %611 = vmatprep.mubr.f32.mxu0 %v7985_v0  ;;  %7921 = vset.pattern.permute.xlu0 %v7986_v1  ;;  %v2233_v5 = vld [vmem:[%s10251_s5] sm:$0xff]  ;;  %v633_v6 = vld [vmem:[%s10249_s3 + $0x68] sm:$0xff]  ;;  %vm540_vm0 = vcmask 1043456   ;;  %v631_v14 = vld [vmem:[%s10249_s3 + $0x58] sm:$0xff]  ;;  %vm536_vm1 = vcmask 293888   ;;  %vm653_vm2 = vcmask 1040384  }
  0x1b   : > { %533 = vperm.xlu0 %7921, %v530_v2   ;;  %657 = vmatprep.subr.mxu1 %v7985_v0  ;;  %s7877_s18 = smul.u32 80, %s515_s20  ;;  %v5137_v7 = vld [vmem:[%s10257_s11 + $0x8] sm:$0xff]  ;;  %v632_v8 = vld [vmem:[%s10249_s3 + $0x60] sm:$0xff]  ;;  %v630_v17 = vld [vmem:[%s10249_s3 + $0x50] sm:$0xff]  ;;  %vm649_vm3 = vcmask 793600   ;;  %vm7987_vm4 = vmmov 0  }
  0x1c   : > { %658 = vmatpush1.msra.mxu1 %v635_v3  ;;  %7922 = vset.pattern.permute.xlu1 %v7986_v1  ;;  %v629_v20 = vld [vmem:[%s10249_s3 + $0x48] sm:$0xff]  ;;  %v519_v22 = vld [vmem:[%s10247_s1] sm:$0xff]  ;;  %v6630_v25 = vld [vmem:[%s10249_s3 + $0x158] sm:$0xff]  ;;  %vm833_vm5 = vcmask 64512   ;;  %vm2248_vm6 = vcmask 400384   ;;  %vm3666_vm7 = vcmask 203776  }
  0x1d   : > { %659 = vmatprep.subr.mxu1 %v7985_v0  ;;  %s8146_s30 = scalar_lea.vmem %s10276_s17, %s7877_s18  ;;  %v6631_v23 = vld [vmem:[%s10249_s3 + $0x160] sm:$0xff]  ;;  %v627_v26 = vld [vmem:[%s10249_s3 + $0x38] sm:$0xff]  ;;  %v6629_v27 = vld [vmem:[%s10249_s3 + $0x150] sm:$0xff]  ;;  %vm5155_vm8 = vcmask 72704   ;;  %vm6443_vm9 = vcmask 523264   ;;  %vm6521_vm10 = vcmask 57344  }
  0x1e   : > { %660 = vmatpush1.msra.mxu1 %v634_v4  ;;  %v529_v9 = vld [vmem:[%s8146_s30 + $0x48] sm:$0xf]  ;;  %v528_v10 = vld [vmem:[%s8146_s30 + $0x40] sm:$0xf]  ;;  %v527_v11 = vld [vmem:[%s8146_s30 + $0x38] sm:$0xff]  ;;  %s513_s2 = scalar_lea.vmem [#allocation2], %s512_s23 }
  0x1f   : > { %2236 = vperm.xlu0 %7921, %v2233_v5   ;;  %661 = vmatprep.subr.mxu1 %v7985_v0  ;;  %v526_v12 = vld [vmem:[%s8146_s30 + $0x30] sm:$0xff]  ;;  %v525_v13 = vld [vmem:[%s8146_s30 + $0x28] sm:$0xff]  ;;  %v524_v15 = vld [vmem:[%s8146_s30 + $0x20] sm:$0xff]  ;;  %s6551_s20 = sshll.u32 %s513_s2, 4  ;;  %s6539_s18 = scalar_lea.sflag [#allocation3], %s512_s23  ;;  %s6552_s20 = int_to_ptr.vmem [resolvable:$true] %s6551_s20 }
  0x20   : > { %662 = vmatpush1.msra.mxu1 %v633_v6  ;;  %6611 = vmatprep.subr.msk.mxu0 %vm540_vm0, %v529_v9  ;;  %v523_v16 = vld [vmem:[%s8146_s30 + $0x18] sm:$0xff]  ;;  %v522_v18 = vld [vmem:[%s8146_s30 + $0x10] sm:$0xff]  ;;  %v521_v19 = vld [vmem:[%s8146_s30 + $0x8] sm:$0xff]  ;;  %s7923_s19 = scalar_lea.vmem %s6552_s20, 16 }
  0x21   : > { %663 = vmatprep.subr.mxu1 %v7985_v0  ;;  %6612 = vmatpush1.msk.msra.mxu0 %vm540_vm0, %v528_v10  ;;  %v520_v21 = vld [vmem:[%s8146_s30] sm:$0xff]  ;;  %v626_v28 = vld [vmem:[%s10249_s3 + $0x30] sm:$0xff]  ;;  %v6628_v29 = vld [vmem:[%s10249_s3 + $0x148] sm:$0xff]  ;;  %s10210_s30 = scalar_lea.hbm %s10262_s16, %s7119_s27  ;;  %p7924_p11 = scmp.ne.s32.totalorder %s6552_s20, %s7923_s19 }
  0x22   : > { %664 = vmatpush1.msra.mxu1 %v632_v8  ;;  %571 = vmatprep.subr.mxu0 %v527_v11  ;;  %v628_v24 = vld [vmem:[%s10249_s3 + $0x40] sm:$0xff]  ;;  %v625_v30 = vld [vmem:[%s10249_s3 + $0x28] sm:$0xff]  ;;  %v6626_v33 = vld [vmem:[%s10249_s3 + $0x138] sm:$0xff] }
  0x23   : > { %5145 = vperm.xlu0 %7921, %v5137_v7   ;;  %572 = vmatpush1.msra.mxu0 %v526_v12  ;;  %v6627_v31 = vld [vmem:[%s10249_s3 + $0x140] sm:$0xff]  ;;  %v623_v34 = vld [vmem:[%s10249_s3 + $0x18] sm:$0xff]  ;;  %v6625_v35 = vld [vmem:[%s10249_s3 + $0x130] sm:$0xff]  ;;  %p7925_p12 = pnand %p7924_p11, %p8113_p5 }
  0x24   : > { %665 = vmatprep.subr.mxu1 %v7985_v0  ;;  %573 = vmatprep.subr.mxu0 %v525_v13  ;;  %v624_v32 = vld [vmem:[%s10249_s3 + $0x20] sm:$0xff]  ;;  %v622_v36 = vld [vmem:[%s10249_s3 + $0x10] sm:$0xff]  ;;  %v6624_v37 = vld [vmem:[%s10249_s3 + $0x128] sm:$0xff] }
  0x25   : > { %666 = vmatpush1.msra.mxu1 %v631_v14  ;;  %574 = vmatpush1.msra.mxu0 %v524_v15  ;;  %v621_v38 = vld [vmem:[%s10249_s3 + $0x8] sm:$0xff]  ;;  %v6623_v39 = vld [vmem:[%s10249_s3 + $0x120] sm:$0xff]  ;;  %v6622_v41 = vld [vmem:[%s10249_s3 + $0x118] sm:$0xff]  ;;  %p7926_p13 = pneg %p7925_p12 }
  0x26   : > { %667 = vmatprep.subr.mxu1 %v7985_v0  ;;  %575 = vmatprep.subr.mxu0 %v523_v16  ;;  %v620_v40 = vld [vmem:[%s10249_s3] sm:$0xff]  ;;  %v6621_v43 = vld [vmem:[%s10249_s3 + $0x110] sm:$0xff]  ;;  %v647_v44 = vld [vmem:[%s10249_s3 + $0xd8] sm:$0xff] }
  0x27   : > { %668 = vmatpush1.msra.mxu1 %v630_v17  ;;  %576 = vmatpush1.msra.mxu0 %v522_v18  ;;  %v648_v42 = vld [vmem:[%s10249_s3 + $0xe0] sm:$0x1]  ;;  %v6620_v45 = vld [vmem:[%s10249_s3 + $0x108] sm:$0xff]  ;;  %v646_v46 = vld [vmem:[%s10249_s3 + $0xd0] sm:$0xff] }
  0x28   : > { %669 = vmatprep.subr.mxu1 %v7985_v0  ;;  %577 = vmatprep.subr.mxu0 %v521_v19  ;;  %v6619_v47 = vld [vmem:[%s10249_s3 + $0x100] sm:$0xff]  ;;  %v645_v48 = vld [vmem:[%s10249_s3 + $0xc8] sm:$0xff]  ;;  %v6618_v49 = vld [vmem:[%s10249_s3 + $0xf8] sm:$0xff] }
  0x29   : > { %670 = vmatpush1.msra.mxu1 %v629_v20  ;;  %578 = vmatpush1.msra.mxu0 %v520_v21  ;;  %v644_v50 = vld [vmem:[%s10249_s3 + $0xc0] sm:$0xff]  ;;  %v6617_v51 = vld [vmem:[%s10249_s3 + $0xf0] sm:$0xff]  ;;  %v643_v52 = vld [vmem:[%s10249_s3 + $0xb8] sm:$0xff] }
  0x2a   : > { %671 = vmatprep.subr.mxu1 %v7985_v0  ;;  %6613 = vmatmul.mubr.msk.f32.vlgmr.msra.gmra.mxu0 %vm536_vm1, %v519_v22  ;;  %v6616_v53 = vld [vmem:[%s10249_s3 + $0xe8] sm:$0xff]  ;;  %v642_v54 = vld [vmem:[%s10249_s3 + $0xb0] sm:$0xff]  ;;  %v6643_v57 = vld [vmem:[%s10249_s3 + $0x1c0] sm:$0xff] }
  0x2b   : > { %761 = vmatprep.subr.mxu0 %v7985_v0  ;;  %672 = vmatpush1.msra.mxu1 %v628_v24  ;;  %v6644_v55 = vld [vmem:[%s10249_s3 + $0x1c8] sm:$0x1]  ;;  %v640_v58 = vld [vmem:[%s10249_s3 + $0xa0] sm:$0xff]  ;;  %v6642_v59 = vld [vmem:[%s10249_s3 + $0x1b8] sm:$0xff] }
  0x2c   : > { %762 = vmatpush1.msra.mxu0 %v6631_v23  ;;  %673 = vmatprep.subr.mxu1 %v7985_v0  ;;  %v641_v56 = vld [vmem:[%s10249_s3 + $0xa8] sm:$0xff]  ;;  %v6641_v60 = vld [vmem:[%s10249_s3 + $0x1b0] sm:$0xff]  ;;  %v6639_v62 = vld [vmem:[%s10249_s3 + $0x1a0] sm:$0xff] }
  0x2d   : > { %763 = vmatprep.subr.mxu0 %v7985_v0  ;;  %674 = vmatpush1.msra.mxu1 %v627_v26  ;;  %v6640_v61 = vld [vmem:[%s10249_s3 + $0x1a8] sm:$0xff]  ;;  %v6638_v63 = vld [vmem:[%s10249_s3 + $0x198] sm:$0xff]  ;;  %v6637_v1 = vld [vmem:[%s10249_s3 + $0x190] sm:$0xff] }
  0x2e   : > { %764 = vmatpush1.msra.mxu0 %v6630_v25  ;;  %675 = vmatprep.subr.mxu1 %v7985_v0  ;;  %v6636_v2 = vld [vmem:[%s10249_s3 + $0x188] sm:$0xff]  ;;  %v639_v3 = vld [vmem:[%s10249_s3 + $0x98] sm:$0xff]  ;;  %v6635_v4 = vld [vmem:[%s10249_s3 + $0x180] sm:$0xff] }
  0x2f   : > { %765 = vmatprep.subr.mxu0 %v7985_v0  ;;  %676 = vmatpush1.msra.mxu1 %v626_v28  ;;  %v638_v5 = vld [vmem:[%s10249_s3 + $0x90] sm:$0xff]  ;;  %v6634_v6 = vld [vmem:[%s10249_s3 + $0x178] sm:$0xff]  ;;  %v637_v7 = vld [vmem:[%s10249_s3 + $0x88] sm:$0xff] }
  0x30   : > { %766 = vmatpush1.msra.mxu0 %v6629_v27  ;;  %677 = vmatprep.subr.mxu1 %v7985_v0  ;;  %v6633_v8 = vld [vmem:[%s10249_s3 + $0x170] sm:$0xff]  ;;  %v636_v9 = vld [vmem:[%s10249_s3 + $0x80] sm:$0xff]  ;;  %v6632_v10 = vld [vmem:[%s10249_s3 + $0x168] sm:$0xff] }
  0x31   : > { %767 = vmatprep.subr.mxu0 %v7985_v0  ;;  %678 = vmatpush1.msra.mxu1 %v625_v30  ;;  %v6647_v18 = vld [vmem:[%s10250_s4 + $0x8] sm:$0xff]  ;;  %v727_v23 = vld [vmem:[%s10250_s4] sm:$0xff]  ;;  %v6663_v26 = vld [vmem:[%s10249_s3 + $0x238] sm:$0xff] }
  0x32   : > { %768 = vmatpush1.msra.mxu0 %v6628_v29  ;;  %679 = vmatprep.subr.mxu1 %v7985_v0  ;;  %v6665_v24 = vld [vmem:[%s10249_s3 + $0x248] sm:$0xff]  ;;  %v6664_v25 = vld [vmem:[%s10249_s3 + $0x240] sm:$0xff]  ;;  %v6662_v27 = vld [vmem:[%s10249_s3 + $0x230] sm:$0xff] }
  0x33   : > { %769 = vmatprep.subr.mxu0 %v7985_v0  ;;  %680 = vmatpush1.msra.mxu1 %v624_v32  ;;  %v6661_v28 = vld [vmem:[%s10249_s3 + $0x228] sm:$0xff]  ;;  %v6660_v29 = vld [vmem:[%s10249_s3 + $0x220] sm:$0xff]  ;;  %v6659_v30 = vld [vmem:[%s10249_s3 + $0x218] sm:$0xff] }
  0x34   : > { %770 = vmatpush1.msra.mxu0 %v6627_v31  ;;  %681 = vmatprep.subr.mxu1 %v7985_v0  ;;  %v6658_v31 = vld [vmem:[%s10249_s3 + $0x210] sm:$0xff]  ;;  %v6657_v32 = vld [vmem:[%s10249_s3 + $0x208] sm:$0xff] }
  0x35   : > { %771 = vmatprep.subr.mxu0 %v7985_v0  ;;  %682 = vmatpush1.msra.mxu1 %v623_v34  ;;  %v6655_v34 = vld [vmem:[%s10249_s3 + $0x1f8] sm:$0xff] }
  0x36   : > { %772 = vmatpush1.msra.mxu0 %v6626_v33  ;;  %683 = vmatprep.subr.mxu1 %v7985_v0  ;;  %v6656_v33 = vld [vmem:[%s10249_s3 + $0x200] sm:$0xff] }
  0x37   : > { %773 = vmatprep.subr.mxu0 %v7985_v0  ;;  %684 = vmatpush1.msra.mxu1 %v622_v36  ;;  %v6653_v36 = vld [vmem:[%s10249_s3 + $0x1e8] sm:$0xff] }
  0x38   : > { %774 = vmatpush1.msra.mxu0 %v6625_v35  ;;  %685 = vmatprep.subr.mxu1 %v7985_v0  ;;  %v6654_v35 = vld [vmem:[%s10249_s3 + $0x1f0] sm:$0xff] }
  0x39   : > { %775 = vmatprep.subr.mxu0 %v7985_v0  ;;  %686 = vmatpush1.msra.mxu1 %v621_v38  ;;  %v6651_v38 = vld [vmem:[%s10249_s3 + $0x1d8] sm:$0xff] }
  0x3a   : > { %776 = vmatpush1.msra.mxu0 %v6624_v37  ;;  %687 = vmatprep.subr.mxu1 %v7985_v0  ;;  %v6652_v37 = vld [vmem:[%s10249_s3 + $0x1e0] sm:$0xff] }
  0x3b   : > { %777 = vmatprep.subr.mxu0 %v7985_v0  ;;  %688 = vmatpush1.msra.mxu1 %v620_v40  ;;  %v6678_v40 = vld [vmem:[%s10249_s3 + $0x2b0] sm:$0x1] }
  0x3c   : > { %778 = vmatpush1.msra.mxu0 %v6623_v39  ;;  %695 = vmatprep.subr.mxu1 %v7985_v0  ;;  %v6650_v39 = vld [vmem:[%s10249_s3 + $0x1d0] sm:$0xff] }
  0x3d   : > { %779 = vmatprep.subr.mxu0 %v7985_v0  ;;  %6614 = vmatpush2.msk.msra.mxu1 %vm653_vm2, %v648_v42  ;;  %v6676_v42 = vld [vmem:[%s10249_s3 + $0x2a0] sm:$0xff] }
  0x3e   : > { %780 = vmatpush1.msra.mxu0 %v6622_v41  ;;  %697 = vmatprep.subr.mxu1 %v7985_v0  ;;  %v6677_v41 = vld [vmem:[%s10249_s3 + $0x2a8] sm:$0xff] }
  0x3f   : > { %781 = vmatprep.subr.mxu0 %v7985_v0  ;;  %698 = vmatpush2.msra.mxu1 %v647_v44  ;;  %v6674_v44 = vld [vmem:[%s10249_s3 + $0x290] sm:$0xff] }
  0x40   : > { %782 = vmatpush1.msra.mxu0 %v6621_v43  ;;  %699 = vmatprep.subr.mxu1 %v7985_v0  ;;  %v6675_v43 = vld [vmem:[%s10249_s3 + $0x298] sm:$0xff] }
  0x41   : > { %783 = vmatprep.subr.mxu0 %v7985_v0  ;;  %700 = vmatpush2.msra.mxu1 %v646_v46  ;;  %v6672_v46 = vld [vmem:[%s10249_s3 + $0x280] sm:$0xff] }
  0x42   : > { %784 = vmatpush1.msra.mxu0 %v6620_v45  ;;  %701 = vmatprep.subr.mxu1 %v7985_v0  ;;  %v6673_v45 = vld [vmem:[%s10249_s3 + $0x288] sm:$0xff] }
  0x43   : > { %785 = vmatprep.subr.mxu0 %v7985_v0  ;;  %702 = vmatpush2.msra.mxu1 %v645_v48  ;;  %v6670_v48 = vld [vmem:[%s10249_s3 + $0x270] sm:$0xff] }
  0x44   : > { %786 = vmatpush1.msra.mxu0 %v6619_v47  ;;  %703 = vmatprep.subr.mxu1 %v7985_v0  ;;  %v6671_v47 = vld [vmem:[%s10249_s3 + $0x278] sm:$0xff] }
  0x45   : > { %787 = vmatprep.subr.mxu0 %v7985_v0  ;;  %704 = vmatpush2.msra.mxu1 %v644_v50  ;;  %v6668_v50 = vld [vmem:[%s10249_s3 + $0x260] sm:$0xff] }
  0x46   : > { %788 = vmatpush1.msra.mxu0 %v6618_v49  ;;  %705 = vmatprep.subr.mxu1 %v7985_v0  ;;  %v6669_v49 = vld [vmem:[%s10249_s3 + $0x268] sm:$0xff] }
  0x47   : > { %789 = vmatprep.subr.mxu0 %v7985_v0  ;;  %706 = vmatpush2.msra.mxu1 %v643_v52  ;;  %v6666_v52 = vld [vmem:[%s10249_s3 + $0x250] sm:$0xff] }
  0x48   : > { %790 = vmatpush1.msra.mxu0 %v6617_v51  ;;  %707 = vmatprep.subr.mxu1 %v7985_v0  ;;  %v6667_v51 = vld [vmem:[%s10249_s3 + $0x258] sm:$0xff] }
  0x49   : > { %791 = vmatprep.subr.mxu0 %v7985_v0  ;;  %708 = vmatpush2.msra.mxu1 %v642_v54 }
  0x4a   : > { %792 = vmatpush1.msra.mxu0 %v6616_v53  ;;  %709 = vmatprep.subr.mxu1 %v7985_v0 }
  0x4b   : > { %799 = vmatprep.subr.mxu0 %v7985_v0  ;;  %710 = vmatpush2.msra.mxu1 %v641_v56 }
  0x4c   : > { %6645 = vmatpush2.msk.msra.mxu0 %vm653_vm2, %v6644_v55  ;;  %711 = vmatprep.subr.mxu1 %v7985_v0 }
  0x4d   : > { %801 = vmatprep.subr.mxu0 %v7985_v0  ;;  %712 = vmatpush2.msra.mxu1 %v640_v58  ;;  %v6681_v58 = vld [vmem:[%s10250_s4 + $0x10] sm:$0xff] }
  0x4e   : > { %802 = vmatpush2.msra.mxu0 %v6643_v57  ;;  %713 = vmatprep.subr.mxu1 %v7985_v0 }
  0x4f   : > { %803 = vmatprep.subr.mxu0 %v7985_v0  ;;  %714 = vmatpush2.msra.mxu1 %v639_v3  ;;  %v6693_v3 = vld [vmem:[%s10249_s3 + $0x308] sm:$0xff] }
  0x50   : > { %804 = vmatpush2.msra.mxu0 %v6642_v59  ;;  %715 = vmatprep.subr.mxu1 %v7985_v0 }
  0x51   : > { %805 = vmatprep.subr.mxu0 %v7985_v0  ;;  %716 = vmatpush2.msra.mxu1 %v638_v5  ;;  %v6691_v5 = vld [vmem:[%s10249_s3 + $0x2f8] sm:$0xff] }
  0x52   : > { %806 = vmatpush2.msra.mxu0 %v6641_v60  ;;  %717 = vmatprep.subr.mxu1 %v7985_v0  ;;  %v6698_v60 = vld [vmem:[%s10249_s3 + $0x330] sm:$0xff] }
  0x53   : > { %807 = vmatprep.subr.mxu0 %v7985_v0  ;;  %718 = vmatpush2.msra.mxu1 %v637_v7  ;;  %v6689_v7 = vld [vmem:[%s10249_s3 + $0x2e8] sm:$0xff] }
  0x54   : > { %808 = vmatpush2.msra.mxu0 %v6640_v61  ;;  %719 = vmatprep.subr.mxu1 %v7985_v0 }
  0x55   : > { %809 = vmatprep.subr.mxu0 %v7985_v0  ;;  %720 = vmatpush2.msra.mxu1 %v636_v9  ;;  %v6687_v9 = vld [vmem:[%s10249_s3 + $0x2d8] sm:$0xff] }
  0x56   : > { %810 = vmatpush2.msra.mxu0 %v6639_v62  ;;  %7359 = vmatprep.subr.mxu1 %v7985_v0  ;;  %v6697_v62 = vld [vmem:[%s10249_s3 + $0x328] sm:$0xff] }
  0x57   : > { %811 = vmatprep.subr.mxu0 %v7985_v0 }
  0x58   : > { %812 = vmatpush2.msra.mxu0 %v6638_v63  ;;  %v6696_v63 = vld [vmem:[%s10249_s3 + $0x320] sm:$0xff] }
  0x59   : > { %813 = vmatprep.subr.mxu0 %v7985_v0 }
  0x5a   : > { %814 = vmatpush2.msra.mxu0 %v6637_v1  ;;  %v6695_v1 = vld [vmem:[%s10249_s3 + $0x318] sm:$0xff] }
  0x5b   : > { %815 = vmatprep.subr.mxu0 %v7985_v0 }
  0x5c   : > { %816 = vmatpush2.msra.mxu0 %v6636_v2  ;;  %v6694_v2 = vld [vmem:[%s10249_s3 + $0x310] sm:$0xff] }
  0x5d   : > { %817 = vmatprep.subr.mxu0 %v7985_v0 }
  0x5e   : > { %818 = vmatpush2.msra.mxu0 %v6635_v4  ;;  %v6692_v4 = vld [vmem:[%s10249_s3 + $0x300] sm:$0xff] }
  0x5f   : > { %819 = vmatprep.subr.mxu0 %v7985_v0 }
  0x60   : > { %820 = vmatpush2.msra.mxu0 %v6634_v6  ;;  %v6690_v6 = vld [vmem:[%s10249_s3 + $0x2f0] sm:$0xff] }
  0x61   : > { %821 = vmatprep.subr.mxu0 %v7985_v0 }
  0x62   : > { %822 = vmatpush2.msra.mxu0 %v6633_v8  ;;  %v6688_v8 = vld [vmem:[%s10249_s3 + $0x2e0] sm:$0xff] }
  0x63   : > { %823 = vmatprep.subr.mxu0 %v7985_v0 }
  0x64   : > { %824 = vmatpush2.msra.mxu0 %v6632_v10  ;;  %v6686_v10 = vld [vmem:[%s10249_s3 + $0x2d0] sm:$0xff] }
  0x65   : > { %7369 = vmatprep.subr.mxu0 %v7985_v0 }
  0x96   : > { %v534_v12 = vpop.permute.xlu0 %533 }
  0xea   : > { %v613_v11 = vpop.f32.mrf.mxu0 }
  0xeb   : > { %v614_v13 = vadd.f32 %v613_v11, %v534_v12  ;;  %v6685_v11 = vld [vmem:[%s10249_s3 + $0x2c8] sm:$0xff] }
  0xec   : > { %v615_v14 = vpop.f32.mrf.mxu0 }
  0xed   : > { %v616_v15 = vadd.f32 %v615_v14, %v534_v12  ;;  %v8391_v17 = vmax.f32 %v614_v13, 0.0  ;;  %v6684_v12 = vld [vmem:[%s10249_s3 + $0x2c0] sm:$0xff]  ;;  %v6683_v13 = vld [vmem:[%s10249_s3 + $0x2b8] sm:$0xff] }
  0xee   : > { %v6711_v14 = vld [vmem:[%s10249_s3 + $0x398] sm:$0x1] }
  0xef   : > { %v8389_v16 = vmax.f32 %v616_v15, 0.0  ;;  %v6710_v15 = vld [vmem:[%s10249_s3 + $0x390] sm:$0xff] }
  0xf1   : > { %6615 = vmatprep.mubr.msk.f32.mxu1 %vm649_vm3, %v8389_v16  ;;  %6646 = vmatprep.mubr.msk.f32.mxu0 %vm649_vm3, %v8389_v16 }
  0xf2   : > { %722 = vmatmul.mubr.f32.vlgmr.msra.gmra.mxu1 %v8391_v17  ;;  %826 = vmatmul.mubr.f32.vlgmr.msra.gmra.mxu0 %v8391_v17 }
  0xf3   : > { %7361 = vmatprep.mubr.msk.f32.mxu1 %vm7987_vm4, %v7985_v0  ;;  %7371 = vmatprep.mubr.msk.f32.mxu0 %vm7987_vm4, %v7985_v0 }
 0x1b2   : > { %v723_v19 = vpop.f32.mrf.mxu1  ;;  %v827_v20 = vpop.f32.mrf.mxu0 }
 0x1b3   : > { %7360 = vmatpush3.msra.mxu1 %v827_v20  ;;  %v6707_v20 = vld [vmem:[%s10249_s3 + $0x378] sm:$0xff] }
 0x1b4   : > { %v725_v21 = vpop.f32.mrf.mxu1  ;;  %v829_v22 = vpop.f32.mrf.mxu0  ;;  %7362 = vmatmul.mubr.msk.f32.vlgmr.msra.gmra.mxu1 %vm833_vm5, %v6647_v18  ;;  %7364 = vmatprep.subr.mxu1 %v7985_v0  ;;  %v6709_v18 = vld [vmem:[%s10249_s3 + $0x388] sm:$0xff] }
 0x1b5   : > { %7365 = vmatpush3.msra.mxu1 %v723_v19  ;;  %7366 = vmatprep.mubr.msk.f32.mxu1 %vm7987_vm4, %v7985_v0  ;;  %v6708_v19 = vld [vmem:[%s10249_s3 + $0x380] sm:$0xff]  ;;  %v6706_v21 = vld [vmem:[%s10249_s3 + $0x370] sm:$0xff]  ;;  %v6705_v22 = vld [vmem:[%s10249_s3 + $0x368] sm:$0xff] }
 0x1b6   : > { %1013 = vmatprep.subr.mxu1 %v7985_v0 }
 0x1b8   : > { %7367 = vmatmul.mubr.msk.f32.vlgmr.msra.gmra.mxu1 %vm833_vm5, %v727_v23  ;;  %v6704_v23 = vld [vmem:[%s10249_s3 + $0x360] sm:$0xff] }
 0x1b9   : > { %1014 = vmatpush1.msra.mxu1 %v6665_v24  ;;  %6680 = vmatprep.mubr.msk.f32.mxu1 %vm649_vm3, %v8389_v16  ;;  %v6703_v24 = vld [vmem:[%s10249_s3 + $0x358] sm:$0xff] }
 0x1ba   : > { %1015 = vmatprep.subr.mxu1 %v7985_v0 }
 0x1bb   : > { %1016 = vmatpush1.msra.mxu1 %v6664_v25  ;;  %v6702_v25 = vld [vmem:[%s10249_s3 + $0x350] sm:$0xff] }
 0x1bc   : > { %1017 = vmatprep.subr.mxu1 %v7985_v0 }
 0x1bd   : > { %1018 = vmatpush1.msra.mxu1 %v6663_v26  ;;  %v6701_v26 = vld [vmem:[%s10249_s3 + $0x348] sm:$0xff] }
 0x1be   : > { %1019 = vmatprep.subr.mxu1 %v7985_v0 }
 0x1bf   : > { %1020 = vmatpush1.msra.mxu1 %v6662_v27  ;;  %v6700_v27 = vld [vmem:[%s10249_s3 + $0x340] sm:$0xff] }
 0x1c0   : > { %1021 = vmatprep.subr.mxu1 %v7985_v0 }
 0x1c1   : > { %1022 = vmatpush1.msra.mxu1 %v6661_v28  ;;  %v6699_v28 = vld [vmem:[%s10249_s3 + $0x338] sm:$0xff] }
 0x1c2   : > { %1023 = vmatprep.subr.mxu1 %v7985_v0 }
 0x1c3   : > { %1024 = vmatpush1.msra.mxu1 %v6660_v29 }
 0x1c4   : > { %1025 = vmatprep.subr.mxu1 %v7985_v0 }
 0x1c5   : > { %1026 = vmatpush1.msra.mxu1 %v6659_v30 }
 0x1c6   : > { %1027 = vmatprep.subr.mxu1 %v7985_v0 }
 0x1c7   : > { %1028 = vmatpush1.msra.mxu1 %v6658_v31 }
 0x1c8   : > { %1029 = vmatprep.subr.mxu1 %v7985_v0 }
 0x1c9   : > { %1030 = vmatpush1.msra.mxu1 %v6657_v32  ;;  %v6714_v32 = vld [vmem:[%s10250_s4 + $0x18] sm:$0xff] }
 0x1ca   : > { %1031 = vmatprep.subr.mxu1 %v7985_v0 }
 0x1cb   : > { %1032 = vmatpush1.msra.mxu1 %v6656_v33 }
 0x1cc   : > { %1033 = vmatprep.subr.mxu1 %v7985_v0 }
 0x1cd   : > { %1034 = vmatpush1.msra.mxu1 %v6655_v34  ;;  %v6731_v34 = vld [vmem:[%s10249_s3 + $0x418] sm:$0xff] }
 0x1ce   : > { %1035 = vmatprep.subr.mxu1 %v7985_v0 }
 0x1cf   : > { %1036 = vmatpush1.msra.mxu1 %v6654_v35 }
 0x1d0   : > { %1037 = vmatprep.subr.mxu1 %v7985_v0 }
 0x1d1   : > { %1038 = vmatpush1.msra.mxu1 %v6653_v36  ;;  %v6730_v36 = vld [vmem:[%s10249_s3 + $0x410] sm:$0xff] }
 0x1d2   : > { %1039 = vmatprep.subr.mxu1 %v7985_v0 }
 0x1d3   : > { %1040 = vmatpush1.msra.mxu1 %v6652_v37  ;;  %v6729_v37 = vld [vmem:[%s10249_s3 + $0x408] sm:$0xff] }
 0x1d4   : > { %1041 = vmatprep.subr.mxu1 %v7985_v0 }
 0x1d5   : > { %1042 = vmatpush1.msra.mxu1 %v6651_v38  ;;  %v6728_v38 = vld [vmem:[%s10249_s3 + $0x400] sm:$0xff] }
 0x1d6   : > { %1043 = vmatprep.subr.mxu1 %v7985_v0 }
 0x1d7   : > { %1044 = vmatpush1.msra.mxu1 %v6650_v39  ;;  %v6727_v39 = vld [vmem:[%s10249_s3 + $0x3f8] sm:$0xff] }
 0x1d8   : > { %1051 = vmatprep.subr.mxu1 %v7985_v0 }
 0x1d9   : > { %6679 = vmatpush2.msk.msra.mxu1 %vm653_vm2, %v6678_v40  ;;  %v6726_v40 = vld [vmem:[%s10249_s3 + $0x3f0] sm:$0xff] }
 0x1da   : > { %1053 = vmatprep.subr.mxu1 %v7985_v0 }
 0x1db   : > { %1054 = vmatpush2.msra.mxu1 %v6677_v41  ;;  %v6725_v41 = vld [vmem:[%s10249_s3 + $0x3e8] sm:$0xff] }
 0x1dc   : > { %1055 = vmatprep.subr.mxu1 %v7985_v0 }
 0x1dd   : > { %1056 = vmatpush2.msra.mxu1 %v6676_v42  ;;  %v6724_v42 = vld [vmem:[%s10249_s3 + $0x3e0] sm:$0xff] }
 0x1de   : > { %1057 = vmatprep.subr.mxu1 %v7985_v0 }
 0x1df   : > { %1058 = vmatpush2.msra.mxu1 %v6675_v43  ;;  %v6723_v43 = vld [vmem:[%s10249_s3 + $0x3d8] sm:$0xff] }
 0x1e0   : > { %1059 = vmatprep.subr.mxu1 %v7985_v0 }
 0x1e1   : > { %1060 = vmatpush2.msra.mxu1 %v6674_v44  ;;  %v6722_v44 = vld [vmem:[%s10249_s3 + $0x3d0] sm:$0xff] }
 0x1e2   : > { %1061 = vmatprep.subr.mxu1 %v7985_v0 }
 0x1e3   : > { %1062 = vmatpush2.msra.mxu1 %v6673_v45  ;;  %v6721_v45 = vld [vmem:[%s10249_s3 + $0x3c8] sm:$0xff] }
 0x1e4   : > { %1063 = vmatprep.subr.mxu1 %v7985_v0 }
 0x1e5   : > { %1064 = vmatpush2.msra.mxu1 %v6672_v46  ;;  %v6720_v46 = vld [vmem:[%s10249_s3 + $0x3c0] sm:$0xff] }
 0x1e6   : > { %1065 = vmatprep.subr.mxu1 %v7985_v0 }
 0x1e7   : > { %1066 = vmatpush2.msra.mxu1 %v6671_v47  ;;  %v6719_v47 = vld [vmem:[%s10249_s3 + $0x3b8] sm:$0xff] }
 0x1e8   : > { %1067 = vmatprep.subr.mxu1 %v7985_v0 }
 0x1e9   : > { %1068 = vmatpush2.msra.mxu1 %v6670_v48  ;;  %v6718_v48 = vld [vmem:[%s10249_s3 + $0x3b0] sm:$0xff] }
 0x1ea   : > { %1069 = vmatprep.subr.mxu1 %v7985_v0 }
 0x1eb   : > { %1070 = vmatpush2.msra.mxu1 %v6669_v49  ;;  %v6717_v49 = vld [vmem:[%s10249_s3 + $0x3a8] sm:$0xff] }
 0x1ec   : > { %1071 = vmatprep.subr.mxu1 %v7985_v0 }
 0x1ed   : > { %1072 = vmatpush2.msra.mxu1 %v6668_v50  ;;  %v6716_v50 = vld [vmem:[%s10249_s3 + $0x3a0] sm:$0xff] }
 0x1ee   : > { %1073 = vmatprep.subr.mxu1 %v7985_v0 }
 0x1ef   : > { %1074 = vmatpush2.msra.mxu1 %v6667_v51  ;;  %v6744_v51 = vld [vmem:[%s10249_s3 + $0x480] sm:$0x1] }
 0x1f0   : > { %1075 = vmatprep.subr.mxu1 %v7985_v0 }
 0x1f1   : > { %1076 = vmatpush2.msra.mxu1 %v6666_v52  ;;  %v6743_v52 = vld [vmem:[%s10249_s3 + $0x478] sm:$0xff] }
 0x1f2   : > { %1078 = vmatmul.mubr.f32.vlgmr.msra.gmra.mxu1 %v8391_v17  ;;  %7374 = vmatprep.subr.mxu1 %v7985_v0 }
 0x1f3   : > { %7376 = vmatprep.mubr.msk.f32.mxu1 %vm7987_vm4, %v7985_v0 }
 0x274   : > { %v903_v53 = vpop.f32.mrf.mxu1 }
 0x276   : > { %v7363_v54 = vpop.f32.mrf.mxu1 }
 0x277   : > { %v6741_v54 = vld [vmem:[%s10249_s3 + $0x468] sm:$0xff] }
 0x278   : > { %v976_v55 = vpop.f32.mrf.mxu1 }
 0x279   : > { %v8537_v56 = vadd.f32 %v976_v55, %v903_v53  ;;  %v6742_v53 = vld [vmem:[%s10249_s3 + $0x470] sm:$0xff]  ;;  %v6740_v55 = vld [vmem:[%s10249_s3 + $0x460] sm:$0xff] }
 0x27a   : > { %v7368_v57 = vpop.f32.mrf.mxu1 }
 0x27b   : > { %v6738_v57 = vld [vmem:[%s10249_s3 + $0x450] sm:$0xff] }
 0x2b2   : > { %v1079_v59 = vpop.f32.mrf.mxu1 }
 0x2b3   : > { %7370 = vmatpush3.msra.mxu0 %v1079_v59  ;;  %v6736_v59 = vld [vmem:[%s10249_s3 + $0x440] sm:$0xff] }
 0x2b4   : > { %v1081_v61 = vpop.f32.mrf.mxu1  ;;  %7372 = vmatmul.mubr.msk.f32.vlgmr.msra.gmra.mxu0 %vm833_vm5, %v6681_v58  ;;  %1192 = vmatprep.subr.mxu0 %v7985_v0  ;;  %v6737_v58 = vld [vmem:[%s10249_s3 + $0x448] sm:$0xff] }
 0x2b5   : > { %1193 = vmatpush1.msra.mxu0 %v6698_v60  ;;  %6713 = vmatprep.mubr.msk.f32.mxu0 %vm649_vm3, %v8389_v16  ;;  %v6735_v60 = vld [vmem:[%s10249_s3 + $0x438] sm:$0xff]  ;;  %v6734_v61 = vld [vmem:[%s10249_s3 + $0x430] sm:$0xff] }
 0x2b6   : > { %1194 = vmatprep.subr.mxu0 %v7985_v0 }
 0x2b7   : > { %1195 = vmatpush1.msra.mxu0 %v6697_v62  ;;  %v6733_v62 = vld [vmem:[%s10249_s3 + $0x428] sm:$0xff] }
 0x2b8   : > { %1196 = vmatprep.subr.mxu0 %v7985_v0 }
 0x2b9   : > { %1197 = vmatpush1.msra.mxu0 %v6696_v63  ;;  %v6732_v63 = vld [vmem:[%s10249_s3 + $0x420] sm:$0xff] }
 0x2ba   : > { %1198 = vmatprep.subr.mxu0 %v7985_v0 }
 0x2bb   : > { %1199 = vmatpush1.msra.mxu0 %v6695_v1 }
 0x2bc   : > { %1200 = vmatprep.subr.mxu0 %v7985_v0 }
 0x2bd   : > { %1201 = vmatpush1.msra.mxu0 %v6694_v2 }
 0x2be   : > { %1202 = vmatprep.subr.mxu0 %v7985_v0 }
 0x2bf   : > { %1203 = vmatpush1.msra.mxu0 %v6693_v3 }
 0x2c0   : > { %1204 = vmatprep.subr.mxu0 %v7985_v0 }
 0x2c1   : > { %1205 = vmatpush1.msra.mxu0 %v6692_v4  ;;  %v6747_v4 = vld [vmem:[%s10250_s4 + $0x20] sm:$0xff] }
 0x2c2   : > { %1206 = vmatprep.subr.mxu0 %v7985_v0 }
 0x2c3   : > { %1207 = vmatpush1.msra.mxu0 %v6691_v5 }
 0x2c4   : > { %1208 = vmatprep.subr.mxu0 %v7985_v0 }
 0x2c5   : > { %1209 = vmatpush1.msra.mxu0 %v6690_v6  ;;  %v6764_v6 = vld [vmem:[%s10249_s3 + $0x500] sm:$0xff] }
 0x2c6   : > { %1210 = vmatprep.subr.mxu0 %v7985_v0 }
 0x2c7   : > { %1211 = vmatpush1.msra.mxu0 %v6689_v7 }
 0x2c8   : > { %1212 = vmatprep.subr.mxu0 %v7985_v0 }
 0x2c9   : > { %1213 = vmatpush1.msra.mxu0 %v6688_v8  ;;  %v6763_v8 = vld [vmem:[%s10249_s3 + $0x4f8] sm:$0xff] }
 0x2ca   : > { %1214 = vmatprep.subr.mxu0 %v7985_v0 }
 0x2cb   : > { %1215 = vmatpush1.msra.mxu0 %v6687_v9  ;;  %v6762_v9 = vld [vmem:[%s10249_s3 + $0x4f0] sm:$0xff] }
 0x2cc   : > { %1216 = vmatprep.subr.mxu0 %v7985_v0 }
 0x2cd   : > { %1217 = vmatpush1.msra.mxu0 %v6686_v10  ;;  %v6761_v10 = vld [vmem:[%s10249_s3 + $0x4e8] sm:$0xff] }
 0x2ce   : > { %1218 = vmatprep.subr.mxu0 %v7985_v0 }
 0x2cf   : > { %1219 = vmatpush1.msra.mxu0 %v6685_v11  ;;  %v6760_v11 = vld [vmem:[%s10249_s3 + $0x4e0] sm:$0xff] }
 0x2d0   : > { %1220 = vmatprep.subr.mxu0 %v7985_v0 }
 0x2d1   : > { %1221 = vmatpush1.msra.mxu0 %v6684_v12  ;;  %v6759_v12 = vld [vmem:[%s10249_s3 + $0x4d8] sm:$0xff] }
 0x2d2   : > { %1222 = vmatprep.subr.mxu0 %v7985_v0 }
 0x2d3   : > { %1223 = vmatpush1.msra.mxu0 %v6683_v13  ;;  %v6758_v13 = vld [vmem:[%s10249_s3 + $0x4d0] sm:$0xff] }
 0x2d4   : > { %1230 = vmatprep.subr.mxu0 %v7985_v0 }
 0x2d5   : > { %6712 = vmatpush2.msk.msra.mxu0 %vm653_vm2, %v6711_v14  ;;  %v6757_v14 = vld [vmem:[%s10249_s3 + $0x4c8] sm:$0xff] }
 0x2d6   : > { %1232 = vmatprep.subr.mxu0 %v7985_v0 }
 0x2d7   : > { %1233 = vmatpush2.msra.mxu0 %v6710_v15  ;;  %v6756_v15 = vld [vmem:[%s10249_s3 + $0x4c0] sm:$0xff] }
 0x2d8   : > { %1234 = vmatprep.subr.mxu0 %v7985_v0 }
 0x2d9   : > { %1235 = vmatpush2.msra.mxu0 %v6709_v18  ;;  %v6755_v18 = vld [vmem:[%s10249_s3 + $0x4b8] sm:$0xff] }
 0x2da   : > { %1236 = vmatprep.subr.mxu0 %v7985_v0 }
 0x2db   : > { %1237 = vmatpush2.msra.mxu0 %v6708_v19  ;;  %v6754_v19 = vld [vmem:[%s10249_s3 + $0x4b0] sm:$0xff] }
 0x2dc   : > { %1238 = vmatprep.subr.mxu0 %v7985_v0 }
 0x2dd   : > { %1239 = vmatpush2.msra.mxu0 %v6707_v20  ;;  %v6753_v20 = vld [vmem:[%s10249_s3 + $0x4a8] sm:$0xff] }
 0x2de   : > { %1240 = vmatprep.subr.mxu0 %v7985_v0 }
 0x2df   : > { %1241 = vmatpush2.msra.mxu0 %v6706_v21  ;;  %v6752_v21 = vld [vmem:[%s10249_s3 + $0x4a0] sm:$0xff] }
 0x2e0   : > { %1242 = vmatprep.subr.mxu0 %v7985_v0 }
 0x2e1   : > { %1243 = vmatpush2.msra.mxu0 %v6705_v22  ;;  %v6751_v22 = vld [vmem:[%s10249_s3 + $0x498] sm:$0xff] }
 0x2e2   : > { %1244 = vmatprep.subr.mxu0 %v7985_v0 }
 0x2e3   : > { %1245 = vmatpush2.msra.mxu0 %v6704_v23  ;;  %v6750_v23 = vld [vmem:[%s10249_s3 + $0x490] sm:$0xff] }
 0x2e4   : > { %1246 = vmatprep.subr.mxu0 %v7985_v0 }
 0x2e5   : > { %1247 = vmatpush2.msra.mxu0 %v6703_v24  ;;  %v6749_v24 = vld [vmem:[%s10249_s3 + $0x488] sm:$0xff] }
 0x2e6   : > { %1248 = vmatprep.subr.mxu0 %v7985_v0 }
 0x2e7   : > { %1249 = vmatpush2.msra.mxu0 %v6702_v25  ;;  %v6777_v25 = vld [vmem:[%s10249_s3 + $0x568] sm:$0x1] }
 0x2e8   : > { %1250 = vmatprep.subr.mxu0 %v7985_v0 }
 0x2e9   : > { %1251 = vmatpush2.msra.mxu0 %v6701_v26  ;;  %v6776_v26 = vld [vmem:[%s10249_s3 + $0x560] sm:$0xff] }
 0x2ea   : > { %1252 = vmatprep.subr.mxu0 %v7985_v0 }
 0x2eb   : > { %1253 = vmatpush2.msra.mxu0 %v6700_v27  ;;  %v6775_v27 = vld [vmem:[%s10249_s3 + $0x558] sm:$0xff] }
 0x2ec   : > { %1254 = vmatprep.subr.mxu0 %v7985_v0 }
 0x2ed   : > { %1255 = vmatpush2.msra.mxu0 %v6699_v28  ;;  %v6774_v28 = vld [vmem:[%s10249_s3 + $0x550] sm:$0xff] }
 0x2ee   : > { %1257 = vmatmul.mubr.f32.vlgmr.msra.gmra.mxu0 %v8391_v17  ;;  %7379 = vmatprep.subr.mxu0 %v7985_v0 }
 0x2ef   : > { %7381 = vmatprep.mubr.msk.f32.mxu0 %vm7987_vm4, %v7985_v0 }
 0x374   : > { %v1154_v29 = vpop.f32.mrf.mxu0 }
 0x375   : > { %v8667_v30 = vadd.f32 %v1154_v29, %v8537_v56  ;;  %v6739_v56 = vld [vmem:[%s10249_s3 + $0x458] sm:$0xff]  ;;  %v6773_v29 = vld [vmem:[%s10249_s3 + $0x548] sm:$0xff] }
 0x376   : > { %v7373_v31 = vpop.f32.mrf.mxu0 }
 0x377   : > { %v6771_v31 = vld [vmem:[%s10249_s3 + $0x538] sm:$0xff] }
 0x3ae   : > { %v1258_v33 = vpop.f32.mrf.mxu0 }
 0x3af   : > { %7375 = vmatpush3.msra.mxu1 %v1258_v33  ;;  %v6769_v33 = vld [vmem:[%s10249_s3 + $0x528] sm:$0xff] }
 0x3b0   : > { %v1260_v35 = vpop.f32.mrf.mxu0  ;;  %7377 = vmatmul.mubr.msk.f32.vlgmr.msra.gmra.mxu1 %vm833_vm5, %v6714_v32  ;;  %1371 = vmatprep.subr.mxu1 %v7985_v0  ;;  %v6770_v32 = vld [vmem:[%s10249_s3 + $0x530] sm:$0xff] }
 0x3b1   : > { %1372 = vmatpush1.msra.mxu1 %v6731_v34  ;;  %6746 = vmatprep.mubr.msk.f32.mxu1 %vm649_vm3, %v8389_v16  ;;  %v6768_v34 = vld [vmem:[%s10249_s3 + $0x520] sm:$0xff]  ;;  %v6767_v35 = vld [vmem:[%s10249_s3 + $0x518] sm:$0xff] }
 0x3b2   : > { %1373 = vmatprep.subr.mxu1 %v7985_v0 }
 0x3b3   : > { %1374 = vmatpush1.msra.mxu1 %v6730_v36  ;;  %v6766_v36 = vld [vmem:[%s10249_s3 + $0x510] sm:$0xff] }
 0x3b4   : > { %1375 = vmatprep.subr.mxu1 %v7985_v0 }
 0x3b5   : > { %1376 = vmatpush1.msra.mxu1 %v6729_v37  ;;  %v6765_v37 = vld [vmem:[%s10249_s3 + $0x508] sm:$0xff] }
 0x3b6   : > { %1377 = vmatprep.subr.mxu1 %v7985_v0 }
 0x3b7   : > { %1378 = vmatpush1.msra.mxu1 %v6728_v38 }
 0x3b8   : > { %1379 = vmatprep.subr.mxu1 %v7985_v0 }
 0x3b9   : > { %1380 = vmatpush1.msra.mxu1 %v6727_v39 }
 0x3ba   : > { %1381 = vmatprep.subr.mxu1 %v7985_v0 }
 0x3bb   : > { %1382 = vmatpush1.msra.mxu1 %v6726_v40 }
 0x3bc   : > { %1383 = vmatprep.subr.mxu1 %v7985_v0 }
 0x3bd   : > { %1384 = vmatpush1.msra.mxu1 %v6725_v41  ;;  %v6780_v41 = vld [vmem:[%s10250_s4 + $0x28] sm:$0xff] }
 0x3be   : > { %1385 = vmatprep.subr.mxu1 %v7985_v0 }
 0x3bf   : > { %1386 = vmatpush1.msra.mxu1 %v6724_v42 }
 0x3c0   : > { %1387 = vmatprep.subr.mxu1 %v7985_v0 }
 0x3c1   : > { %1388 = vmatpush1.msra.mxu1 %v6723_v43  ;;  %v6797_v43 = vld [vmem:[%s10249_s3 + $0x5e8] sm:$0xff] }
 0x3c2   : > { %1389 = vmatprep.subr.mxu1 %v7985_v0 }
 0x3c3   : > { %1390 = vmatpush1.msra.mxu1 %v6722_v44 }
 0x3c4   : > { %1391 = vmatprep.subr.mxu1 %v7985_v0 }
 0x3c5   : > { %1392 = vmatpush1.msra.mxu1 %v6721_v45  ;;  %v6796_v45 = vld [vmem:[%s10249_s3 + $0x5e0] sm:$0xff] }
 0x3c6   : > { %1393 = vmatprep.subr.mxu1 %v7985_v0 }
 0x3c7   : > { %1394 = vmatpush1.msra.mxu1 %v6720_v46  ;;  %v6795_v46 = vld [vmem:[%s10249_s3 + $0x5d8] sm:$0xff] }
 0x3c8   : > { %1395 = vmatprep.subr.mxu1 %v7985_v0 }
 0x3c9   : > { %1396 = vmatpush1.msra.mxu1 %v6719_v47  ;;  %v6794_v47 = vld [vmem:[%s10249_s3 + $0x5d0] sm:$0xff] }
 0x3ca   : > { %1397 = vmatprep.subr.mxu1 %v7985_v0 }
 0x3cb   : > { %1398 = vmatpush1.msra.mxu1 %v6718_v48  ;;  %v6793_v48 = vld [vmem:[%s10249_s3 + $0x5c8] sm:$0xff] }
 0x3cc   : > { %1399 = vmatprep.subr.mxu1 %v7985_v0 }
 0x3cd   : > { %1400 = vmatpush1.msra.mxu1 %v6717_v49  ;;  %v6792_v49 = vld [vmem:[%s10249_s3 + $0x5c0] sm:$0xff] }
 0x3ce   : > { %1401 = vmatprep.subr.mxu1 %v7985_v0 }
 0x3cf   : > { %1402 = vmatpush1.msra.mxu1 %v6716_v50  ;;  %v6791_v50 = vld [vmem:[%s10249_s3 + $0x5b8] sm:$0xff] }
 0x3d0   : > { %1409 = vmatprep.subr.mxu1 %v7985_v0 }
 0x3d1   : > { %6745 = vmatpush2.msk.msra.mxu1 %vm653_vm2, %v6744_v51  ;;  %v6790_v51 = vld [vmem:[%s10249_s3 + $0x5b0] sm:$0xff] }
 0x3d2   : > { %1411 = vmatprep.subr.mxu1 %v7985_v0 }
 0x3d3   : > { %1412 = vmatpush2.msra.mxu1 %v6743_v52  ;;  %v6789_v52 = vld [vmem:[%s10249_s3 + $0x5a8] sm:$0xff] }
 0x3d4   : > { %1413 = vmatprep.subr.mxu1 %v7985_v0 }
 0x3d5   : > { %1414 = vmatpush2.msra.mxu1 %v6742_v53  ;;  %v6788_v53 = vld [vmem:[%s10249_s3 + $0x5a0] sm:$0xff] }
 0x3d6   : > { %1415 = vmatprep.subr.mxu1 %v7985_v0 }
 0x3d7   : > { %1416 = vmatpush2.msra.mxu1 %v6741_v54  ;;  %v6787_v54 = vld [vmem:[%s10249_s3 + $0x598] sm:$0xff] }
 0x3d8   : > { %1417 = vmatprep.subr.mxu1 %v7985_v0 }
 0x3d9   : > { %1418 = vmatpush2.msra.mxu1 %v6740_v55  ;;  %v6786_v55 = vld [vmem:[%s10249_s3 + $0x590] sm:$0xff] }
 0x3da   : > { %1419 = vmatprep.subr.mxu1 %v7985_v0 }
 0x3db   : > { %1420 = vmatpush2.msra.mxu1 %v6739_v56  ;;  %v6785_v56 = vld [vmem:[%s10249_s3 + $0x588] sm:$0xff] }
 0x3dc   : > { %1421 = vmatprep.subr.mxu1 %v7985_v0 }
 0x3dd   : > { %1422 = vmatpush2.msra.mxu1 %v6738_v57  ;;  %v6784_v57 = vld [vmem:[%s10249_s3 + $0x580] sm:$0xff] }
 0x3de   : > { %1423 = vmatprep.subr.mxu1 %v7985_v0 }
 0x3df   : > { %1424 = vmatpush2.msra.mxu1 %v6737_v58  ;;  %v6783_v58 = vld [vmem:[%s10249_s3 + $0x578] sm:$0xff] }
 0x3e0   : > { %1425 = vmatprep.subr.mxu1 %v7985_v0 }
 0x3e1   : > { %1426 = vmatpush2.msra.mxu1 %v6736_v59  ;;  %v6782_v59 = vld [vmem:[%s10249_s3 + $0x570] sm:$0xff] }
 0x3e2   : > { %1427 = vmatprep.subr.mxu1 %v7985_v0 }
 0x3e3   : > { %1428 = vmatpush2.msra.mxu1 %v6735_v60  ;;  %v6810_v60 = vld [vmem:[%s10249_s3 + $0x650] sm:$0x1] }
 0x3e4   : > { %1429 = vmatprep.subr.mxu1 %v7985_v0 }
 0x3e5   : > { %1430 = vmatpush2.msra.mxu1 %v6734_v61  ;;  %v6809_v61 = vld [vmem:[%s10249_s3 + $0x648] sm:$0xff] }
 0x3e6   : > { %1431 = vmatprep.subr.mxu1 %v7985_v0 }
 0x3e7   : > { %1432 = vmatpush2.msra.mxu1 %v6733_v62  ;;  %v6808_v62 = vld [vmem:[%s10249_s3 + $0x640] sm:$0xff] }
 0x3e8   : > { %1433 = vmatprep.subr.mxu1 %v7985_v0 }
 0x3e9   : > { %1434 = vmatpush2.msra.mxu1 %v6732_v63  ;;  %v6807_v63 = vld [vmem:[%s10249_s3 + $0x638] sm:$0xff] }
 0x3ea   : > { %1436 = vmatmul.mubr.f32.vlgmr.msra.gmra.mxu1 %v8391_v17  ;;  %7384 = vmatprep.subr.mxu1 %v7985_v0 }
 0x3eb   : > { %7386 = vmatprep.mubr.msk.f32.mxu1 %vm7987_vm4, %v7985_v0 }
 0x470   : > { %v1333_v1 = vpop.f32.mrf.mxu1 }
 0x471   : > { %v8797_v2 = vadd.f32 %v1333_v1, %v8667_v30  ;;  %v6772_v30 = vld [vmem:[%s10249_s3 + $0x540] sm:$0xff]  ;;  %v6806_v1 = vld [vmem:[%s10249_s3 + $0x630] sm:$0xff] }
 0x472   : > { %v7378_v3 = vpop.f32.mrf.mxu1 }
 0x473   : > { %v6804_v3 = vld [vmem:[%s10249_s3 + $0x620] sm:$0xff] }
 0x4aa   : > { %v1437_v5 = vpop.f32.mrf.mxu1 }
 0x4ab   : > { %7380 = vmatpush3.msra.mxu0 %v1437_v5  ;;  %v6802_v5 = vld [vmem:[%s10249_s3 + $0x610] sm:$0xff] }
 0x4ac   : > { %v1439_v7 = vpop.f32.mrf.mxu1  ;;  %7382 = vmatmul.mubr.msk.f32.vlgmr.msra.gmra.mxu0 %vm833_vm5, %v6747_v4  ;;  %1550 = vmatprep.subr.mxu0 %v7985_v0  ;;  %v6803_v4 = vld [vmem:[%s10249_s3 + $0x618] sm:$0xff] }
 0x4ad   : > { %1551 = vmatpush1.msra.mxu0 %v6764_v6  ;;  %6779 = vmatprep.mubr.msk.f32.mxu0 %vm649_vm3, %v8389_v16  ;;  %v6801_v6 = vld [vmem:[%s10249_s3 + $0x608] sm:$0xff]  ;;  %v6800_v7 = vld [vmem:[%s10249_s3 + $0x600] sm:$0xff] }
 0x4ae   : > { %1552 = vmatprep.subr.mxu0 %v7985_v0 }
 0x4af   : > { %1553 = vmatpush1.msra.mxu0 %v6763_v8  ;;  %v6799_v8 = vld [vmem:[%s10249_s3 + $0x5f8] sm:$0xff] }
 0x4b0   : > { %1554 = vmatprep.subr.mxu0 %v7985_v0 }
 0x4b1   : > { %1555 = vmatpush1.msra.mxu0 %v6762_v9  ;;  %v6798_v9 = vld [vmem:[%s10249_s3 + $0x5f0] sm:$0xff] }
 0x4b2   : > { %1556 = vmatprep.subr.mxu0 %v7985_v0 }
 0x4b3   : > { %1557 = vmatpush1.msra.mxu0 %v6761_v10 }
 0x4b4   : > { %1558 = vmatprep.subr.mxu0 %v7985_v0 }
 0x4b5   : > { %1559 = vmatpush1.msra.mxu0 %v6760_v11 }
 0x4b6   : > { %1560 = vmatprep.subr.mxu0 %v7985_v0 }
 0x4b7   : > { %1561 = vmatpush1.msra.mxu0 %v6759_v12 }
 0x4b8   : > { %1562 = vmatprep.subr.mxu0 %v7985_v0 }
 0x4b9   : > { %1563 = vmatpush1.msra.mxu0 %v6758_v13  ;;  %v6813_v13 = vld [vmem:[%s10250_s4 + $0x30] sm:$0xff] }
 0x4ba   : > { %1564 = vmatprep.subr.mxu0 %v7985_v0 }
 0x4bb   : > { %1565 = vmatpush1.msra.mxu0 %v6757_v14 }
 0x4bc   : > { %1566 = vmatprep.subr.mxu0 %v7985_v0 }
 0x4bd   : > { %1567 = vmatpush1.msra.mxu0 %v6756_v15  ;;  %v6830_v15 = vld [vmem:[%s10249_s3 + $0x6d0] sm:$0xff] }
 0x4be   : > { %1568 = vmatprep.subr.mxu0 %v7985_v0 }
 0x4bf   : > { %1569 = vmatpush1.msra.mxu0 %v6755_v18 }
 0x4c0   : > { %1570 = vmatprep.subr.mxu0 %v7985_v0 }
 0x4c1   : > { %1571 = vmatpush1.msra.mxu0 %v6754_v19  ;;  %v6829_v19 = vld [vmem:[%s10249_s3 + $0x6c8] sm:$0xff] }
 0x4c2   : > { %1572 = vmatprep.subr.mxu0 %v7985_v0 }
 0x4c3   : > { %1573 = vmatpush1.msra.mxu0 %v6753_v20  ;;  %v6828_v20 = vld [vmem:[%s10249_s3 + $0x6c0] sm:$0xff] }
 0x4c4   : > { %1574 = vmatprep.subr.mxu0 %v7985_v0 }
 0x4c5   : > { %1575 = vmatpush1.msra.mxu0 %v6752_v21  ;;  %v6827_v21 = vld [vmem:[%s10249_s3 + $0x6b8] sm:$0xff] }
 0x4c6   : > { %1576 = vmatprep.subr.mxu0 %v7985_v0 }
 0x4c7   : > { %1577 = vmatpush1.msra.mxu0 %v6751_v22  ;;  %v6826_v22 = vld [vmem:[%s10249_s3 + $0x6b0] sm:$0xff] }
 0x4c8   : > { %1578 = vmatprep.subr.mxu0 %v7985_v0 }
 0x4c9   : > { %1579 = vmatpush1.msra.mxu0 %v6750_v23  ;;  %v6825_v23 = vld [vmem:[%s10249_s3 + $0x6a8] sm:$0xff] }
 0x4ca   : > { %1580 = vmatprep.subr.mxu0 %v7985_v0 }
 0x4cb   : > { %1581 = vmatpush1.msra.mxu0 %v6749_v24  ;;  %v6824_v24 = vld [vmem:[%s10249_s3 + $0x6a0] sm:$0xff] }
 0x4cc   : > { %1588 = vmatprep.subr.mxu0 %v7985_v0 }
 0x4cd   : > { %6778 = vmatpush2.msk.msra.mxu0 %vm653_vm2, %v6777_v25  ;;  %v6823_v25 = vld [vmem:[%s10249_s3 + $0x698] sm:$0xff] }
 0x4ce   : > { %1590 = vmatprep.subr.mxu0 %v7985_v0 }
 0x4cf   : > { %1591 = vmatpush2.msra.mxu0 %v6776_v26  ;;  %v6822_v26 = vld [vmem:[%s10249_s3 + $0x690] sm:$0xff] }
 0x4d0   : > { %1592 = vmatprep.subr.mxu0 %v7985_v0 }
 0x4d1   : > { %1593 = vmatpush2.msra.mxu0 %v6775_v27  ;;  %v6821_v27 = vld [vmem:[%s10249_s3 + $0x688] sm:$0xff] }
 0x4d2   : > { %1594 = vmatprep.subr.mxu0 %v7985_v0 }
 0x4d3   : > { %1595 = vmatpush2.msra.mxu0 %v6774_v28  ;;  %v6820_v28 = vld [vmem:[%s10249_s3 + $0x680] sm:$0xff] }
 0x4d4   : > { %1596 = vmatprep.subr.mxu0 %v7985_v0 }
 0x4d5   : > { %1597 = vmatpush2.msra.mxu0 %v6773_v29  ;;  %v6819_v29 = vld [vmem:[%s10249_s3 + $0x678] sm:$0xff] }
 0x4d6   : > { %1598 = vmatprep.subr.mxu0 %v7985_v0 }
 0x4d7   : > { %1599 = vmatpush2.msra.mxu0 %v6772_v30  ;;  %v6818_v30 = vld [vmem:[%s10249_s3 + $0x670] sm:$0xff] }
 0x4d8   : > { %1600 = vmatprep.subr.mxu0 %v7985_v0 }
 0x4d9   : > { %1601 = vmatpush2.msra.mxu0 %v6771_v31  ;;  %v6817_v31 = vld [vmem:[%s10249_s3 + $0x668] sm:$0xff] }
 0x4da   : > { %1602 = vmatprep.subr.mxu0 %v7985_v0 }
 0x4db   : > { %1603 = vmatpush2.msra.mxu0 %v6770_v32  ;;  %v6816_v32 = vld [vmem:[%s10249_s3 + $0x660] sm:$0xff] }
 0x4dc   : > { %1604 = vmatprep.subr.mxu0 %v7985_v0 }
 0x4dd   : > { %1605 = vmatpush2.msra.mxu0 %v6769_v33  ;;  %v6815_v33 = vld [vmem:[%s10249_s3 + $0x658] sm:$0xff] }
 0x4de   : > { %1606 = vmatprep.subr.mxu0 %v7985_v0 }
 0x4df   : > { %1607 = vmatpush2.msra.mxu0 %v6768_v34  ;;  %v6843_v34 = vld [vmem:[%s10249_s3 + $0x738] sm:$0x1] }
 0x4e0   : > { %1608 = vmatprep.subr.mxu0 %v7985_v0 }
 0x4e1   : > { %1609 = vmatpush2.msra.mxu0 %v6767_v35  ;;  %v6842_v35 = vld [vmem:[%s10249_s3 + $0x730] sm:$0xff] }
 0x4e2   : > { %1610 = vmatprep.subr.mxu0 %v7985_v0 }
 0x4e3   : > { %1611 = vmatpush2.msra.mxu0 %v6766_v36  ;;  %v6841_v36 = vld [vmem:[%s10249_s3 + $0x728] sm:$0xff] }
 0x4e4   : > { %1612 = vmatprep.subr.mxu0 %v7985_v0 }
 0x4e5   : > { %1613 = vmatpush2.msra.mxu0 %v6765_v37  ;;  %v6840_v37 = vld [vmem:[%s10249_s3 + $0x720] sm:$0xff] }
 0x4e6   : > { %1615 = vmatmul.mubr.f32.vlgmr.msra.gmra.mxu0 %v8391_v17  ;;  %7389 = vmatprep.subr.mxu0 %v7985_v0 }
 0x4e7   : > { %7391 = vmatprep.mubr.msk.f32.mxu0 %vm7987_vm4, %v7985_v0 }
 0x56c   : > { %v1512_v38 = vpop.f32.mrf.mxu0 }
 0x56d   : > { %v8927_v39 = vadd.f32 %v1512_v38, %v8797_v2  ;;  %v6805_v2 = vld [vmem:[%s10249_s3 + $0x628] sm:$0xff]  ;;  %v6839_v38 = vld [vmem:[%s10249_s3 + $0x718] sm:$0xff] }
 0x56e   : > { %v7383_v40 = vpop.f32.mrf.mxu0 }
 0x56f   : > { %v6837_v40 = vld [vmem:[%s10249_s3 + $0x708] sm:$0xff] }
 0x5a6   : > { %v1616_v42 = vpop.f32.mrf.mxu0 }
 0x5a7   : > { %7385 = vmatpush3.msra.mxu1 %v1616_v42  ;;  %v6835_v42 = vld [vmem:[%s10249_s3 + $0x6f8] sm:$0xff] }
 0x5a8   : > { %v1618_v44 = vpop.f32.mrf.mxu0  ;;  %7387 = vmatmul.mubr.msk.f32.vlgmr.msra.gmra.mxu1 %vm833_vm5, %v6780_v41  ;;  %1729 = vmatprep.subr.mxu1 %v7985_v0  ;;  %v6836_v41 = vld [vmem:[%s10249_s3 + $0x700] sm:$0xff] }
 0x5a9   : > { %1730 = vmatpush1.msra.mxu1 %v6797_v43  ;;  %6812 = vmatprep.mubr.msk.f32.mxu1 %vm649_vm3, %v8389_v16  ;;  %v6834_v43 = vld [vmem:[%s10249_s3 + $0x6f0] sm:$0xff]  ;;  %v6833_v44 = vld [vmem:[%s10249_s3 + $0x6e8] sm:$0xff] }
 0x5aa   : > { %1731 = vmatprep.subr.mxu1 %v7985_v0 }
 0x5ab   : > { %1732 = vmatpush1.msra.mxu1 %v6796_v45  ;;  %v6832_v45 = vld [vmem:[%s10249_s3 + $0x6e0] sm:$0xff] }
 0x5ac   : > { %1733 = vmatprep.subr.mxu1 %v7985_v0 }
 0x5ad   : > { %1734 = vmatpush1.msra.mxu1 %v6795_v46  ;;  %v6831_v46 = vld [vmem:[%s10249_s3 + $0x6d8] sm:$0xff] }
 0x5ae   : > { %1735 = vmatprep.subr.mxu1 %v7985_v0 }
 0x5af   : > { %1736 = vmatpush1.msra.mxu1 %v6794_v47 }
 0x5b0   : > { %1737 = vmatprep.subr.mxu1 %v7985_v0 }
 0x5b1   : > { %1738 = vmatpush1.msra.mxu1 %v6793_v48 }
 0x5b2   : > { %1739 = vmatprep.subr.mxu1 %v7985_v0 }
 0x5b3   : > { %1740 = vmatpush1.msra.mxu1 %v6792_v49 }
 0x5b4   : > { %1741 = vmatprep.subr.mxu1 %v7985_v0 }
 0x5b5   : > { %1742 = vmatpush1.msra.mxu1 %v6791_v50  ;;  %v6846_v50 = vld [vmem:[%s10250_s4 + $0x38] sm:$0xff] }
 0x5b6   : > { %1743 = vmatprep.subr.mxu1 %v7985_v0 }
 0x5b7   : > { %1744 = vmatpush1.msra.mxu1 %v6790_v51 }
 0x5b8   : > { %1745 = vmatprep.subr.mxu1 %v7985_v0 }
 0x5b9   : > { %1746 = vmatpush1.msra.mxu1 %v6789_v52  ;;  %v6863_v52 = vld [vmem:[%s10249_s3 + $0x7b8] sm:$0xff] }
 0x5ba   : > { %1747 = vmatprep.subr.mxu1 %v7985_v0 }
 0x5bb   : > { %1748 = vmatpush1.msra.mxu1 %v6788_v53 }
 0x5bc   : > { %1749 = vmatprep.subr.mxu1 %v7985_v0 }
 0x5bd   : > { %1750 = vmatpush1.msra.mxu1 %v6787_v54  ;;  %v6862_v54 = vld [vmem:[%s10249_s3 + $0x7b0] sm:$0xff] }
 0x5be   : > { %1751 = vmatprep.subr.mxu1 %v7985_v0 }
 0x5bf   : > { %1752 = vmatpush1.msra.mxu1 %v6786_v55  ;;  %v6861_v55 = vld [vmem:[%s10249_s3 + $0x7a8] sm:$0xff] }
 0x5c0   : > { %1753 = vmatprep.subr.mxu1 %v7985_v0 }
 0x5c1   : > { %1754 = vmatpush1.msra.mxu1 %v6785_v56  ;;  %v6860_v56 = vld [vmem:[%s10249_s3 + $0x7a0] sm:$0xff] }
 0x5c2   : > { %1755 = vmatprep.subr.mxu1 %v7985_v0 }
 0x5c3   : > { %1756 = vmatpush1.msra.mxu1 %v6784_v57  ;;  %v6858_v57 = vld [vmem:[%s10249_s3 + $0x790] sm:$0xff] }
 0x5c4   : > { %1757 = vmatprep.subr.mxu1 %v7985_v0 }
 0x5c5   : > { %1758 = vmatpush1.msra.mxu1 %v6783_v58  ;;  %v6857_v58 = vld [vmem:[%s10249_s3 + $0x788] sm:$0xff] }
 0x5c6   : > { %1759 = vmatprep.subr.mxu1 %v7985_v0 }
 0x5c7   : > { %1760 = vmatpush1.msra.mxu1 %v6782_v59  ;;  %v6856_v59 = vld [vmem:[%s10249_s3 + $0x780] sm:$0xff] }
 0x5c8   : > { %1767 = vmatprep.subr.mxu1 %v7985_v0 }
 0x5c9   : > { %6811 = vmatpush2.msk.msra.mxu1 %vm653_vm2, %v6810_v60  ;;  %v6855_v60 = vld [vmem:[%s10249_s3 + $0x778] sm:$0xff] }
 0x5ca   : > { %1769 = vmatprep.subr.mxu1 %v7985_v0 }
 0x5cb   : > { %1770 = vmatpush2.msra.mxu1 %v6809_v61  ;;  %v6854_v61 = vld [vmem:[%s10249_s3 + $0x770] sm:$0xff] }
 0x5cc   : > { %1771 = vmatprep.subr.mxu1 %v7985_v0 }
 0x5cd   : > { %1772 = vmatpush2.msra.mxu1 %v6808_v62  ;;  %v6853_v62 = vld [vmem:[%s10249_s3 + $0x768] sm:$0xff] }
 0x5ce   : > { %1773 = vmatprep.subr.mxu1 %v7985_v0 }
 0x5cf   : > { %1774 = vmatpush2.msra.mxu1 %v6807_v63  ;;  %v6852_v63 = vld [vmem:[%s10249_s3 + $0x760] sm:$0xff] }
 0x5d0   : > { %1775 = vmatprep.subr.mxu1 %v7985_v0 }
 0x5d1   : > { %1776 = vmatpush2.msra.mxu1 %v6806_v1  ;;  %v6851_v1 = vld [vmem:[%s10249_s3 + $0x758] sm:$0xff] }
 0x5d2   : > { %1777 = vmatprep.subr.mxu1 %v7985_v0 }
 0x5d3   : > { %1778 = vmatpush2.msra.mxu1 %v6805_v2  ;;  %v6850_v2 = vld [vmem:[%s10249_s3 + $0x750] sm:$0xff] }
 0x5d4   : > { %1779 = vmatprep.subr.mxu1 %v7985_v0 }
 0x5d5   : > { %1780 = vmatpush2.msra.mxu1 %v6804_v3  ;;  %v6849_v3 = vld [vmem:[%s10249_s3 + $0x748] sm:$0xff] }
 0x5d6   : > { %1781 = vmatprep.subr.mxu1 %v7985_v0 }
 0x5d7   : > { %1782 = vmatpush2.msra.mxu1 %v6803_v4  ;;  %v6848_v4 = vld [vmem:[%s10249_s3 + $0x740] sm:$0xff] }
 0x5d8   : > { %1783 = vmatprep.subr.mxu1 %v7985_v0 }
 0x5d9   : > { %1784 = vmatpush2.msra.mxu1 %v6802_v5  ;;  %v6876_v5 = vld [vmem:[%s10249_s3 + $0x820] sm:$0x1] }
 0x5da   : > { %1785 = vmatprep.subr.mxu1 %v7985_v0 }
 0x5db   : > { %1786 = vmatpush2.msra.mxu1 %v6801_v6  ;;  %v6875_v6 = vld [vmem:[%s10249_s3 + $0x818] sm:$0xff] }
 0x5dc   : > { %1787 = vmatprep.subr.mxu1 %v7985_v0 }
 0x5dd   : > { %1788 = vmatpush2.msra.mxu1 %v6800_v7  ;;  %v6874_v7 = vld [vmem:[%s10249_s3 + $0x810] sm:$0xff] }
 0x5de   : > { %1789 = vmatprep.subr.mxu1 %v7985_v0 }
 0x5df   : > { %1790 = vmatpush2.msra.mxu1 %v6799_v8  ;;  %v6873_v8 = vld [vmem:[%s10249_s3 + $0x808] sm:$0xff] }
 0x5e0   : > { %1791 = vmatprep.subr.mxu1 %v7985_v0 }
 0x5e1   : > { %1792 = vmatpush2.msra.mxu1 %v6798_v9  ;;  %v6872_v9 = vld [vmem:[%s10249_s3 + $0x800] sm:$0xff] }
 0x5e2   : > { %1794 = vmatmul.mubr.f32.vlgmr.msra.gmra.mxu1 %v8391_v17  ;;  %7394 = vmatprep.subr.mxu1 %v7985_v0 }
 0x5e3   : > { %7396 = vmatprep.mubr.msk.f32.mxu1 %vm7987_vm4, %v7985_v0 }
 0x668   : > { %v1691_v10 = vpop.f32.mrf.mxu1 }
 0x669   : > { %v9057_v11 = vadd.f32 %v1691_v10, %v8927_v39  ;;  %v6838_v39 = vld [vmem:[%s10249_s3 + $0x710] sm:$0xff]  ;;  %v6871_v10 = vld [vmem:[%s10249_s3 + $0x7f8] sm:$0xff] }
 0x66a   : > { %v7388_v12 = vpop.f32.mrf.mxu1 }
 0x66b   : > { %v6869_v12 = vld [vmem:[%s10249_s3 + $0x7e8] sm:$0xff] }
 0x6a2   : > { %v1795_v14 = vpop.f32.mrf.mxu1 }
 0x6a3   : > { %7390 = vmatpush3.msra.mxu0 %v1795_v14  ;;  %v6867_v14 = vld [vmem:[%s10249_s3 + $0x7d8] sm:$0xff] }
 0x6a4   : > { %v1797_v18 = vpop.f32.mrf.mxu1  ;;  %7392 = vmatmul.mubr.msk.f32.vlgmr.msra.gmra.mxu0 %vm833_vm5, %v6813_v13  ;;  %1908 = vmatprep.subr.mxu0 %v7985_v0  ;;  %v6868_v13 = vld [vmem:[%s10249_s3 + $0x7e0] sm:$0xff] }
 0x6a5   : > { %1909 = vmatpush1.msra.mxu0 %v6830_v15  ;;  %6845 = vmatprep.mubr.msk.f32.mxu0 %vm649_vm3, %v8389_v16  ;;  %v6866_v15 = vld [vmem:[%s10249_s3 + $0x7d0] sm:$0xff]  ;;  %v6865_v18 = vld [vmem:[%s10249_s3 + $0x7c8] sm:$0xff] }
 0x6a6   : > { %1910 = vmatprep.subr.mxu0 %v7985_v0 }
 0x6a7   : > { %1911 = vmatpush1.msra.mxu0 %v6829_v19  ;;  %v6864_v19 = vld [vmem:[%s10249_s3 + $0x7c0] sm:$0xff] }
 0x6a8   : > { %1912 = vmatprep.subr.mxu0 %v7985_v0 }
 0x6a9   : > { %1913 = vmatpush1.msra.mxu0 %v6828_v20  ;;  %v6912_v20 = vld [vmem:[%s10252_s6 + $0xd8] sm:$0x1] }
 0x6aa   : > { %1914 = vmatprep.subr.mxu0 %v7985_v0 }
 0x6ab   : > { %1915 = vmatpush1.msra.mxu0 %v6827_v21  ;;  %v6911_v21 = vld [vmem:[%s10252_s6 + $0xd0] sm:$0xff] }
 0x6ac   : > { %1916 = vmatprep.subr.mxu0 %v7985_v0 }
 0x6ad   : > { %1917 = vmatpush1.msra.mxu0 %v6826_v22 }
 0x6ae   : > { %1918 = vmatprep.subr.mxu0 %v7985_v0 }
 0x6af   : > { %1919 = vmatpush1.msra.mxu0 %v6825_v23 }
 0x6b0   : > { %1920 = vmatprep.subr.mxu0 %v7985_v0 }
 0x6b1   : > { %1921 = vmatpush1.msra.mxu0 %v6824_v24 }
 0x6b2   : > { %1922 = vmatprep.subr.mxu0 %v7985_v0 }
 0x6b3   : > { %1923 = vmatpush1.msra.mxu0 %v6823_v25  ;;  %v6879_v25 = vld [vmem:[%s10250_s4 + $0x40] sm:$0xff] }
 0x6b4   : > { %1924 = vmatprep.subr.mxu0 %v7985_v0 }
 0x6b5   : > { %1925 = vmatpush1.msra.mxu0 %v6822_v26 }
 0x6b6   : > { %1926 = vmatprep.subr.mxu0 %v7985_v0 }
 0x6b7   : > { %1927 = vmatpush1.msra.mxu0 %v6821_v27  ;;  %v2247_v27 = vld [vmem:[%s10252_s6 + $0x30] sm:$0x1] }
 0x6b8   : > { %1928 = vmatprep.subr.mxu0 %v7985_v0 }
 0x6b9   : > { %1929 = vmatpush1.msra.mxu0 %v6820_v28 }
 0x6ba   : > { %1930 = vmatprep.subr.mxu0 %v7985_v0 }
 0x6bb   : > { %1931 = vmatpush1.msra.mxu0 %v6819_v29  ;;  %v2246_v29 = vld [vmem:[%s10252_s6 + $0x28] sm:$0xff] }
 0x6bc   : > { %1932 = vmatprep.subr.mxu0 %v7985_v0 }
 0x6bd   : > { %1933 = vmatpush1.msra.mxu0 %v6818_v30  ;;  %v2245_v30 = vld [vmem:[%s10252_s6 + $0x20] sm:$0xff] }
 0x6be   : > { %1934 = vmatprep.subr.mxu0 %v7985_v0 }
 0x6bf   : > { %1935 = vmatpush1.msra.mxu0 %v6817_v31  ;;  %v2244_v31 = vld [vmem:[%s10252_s6 + $0x18] sm:$0xff] }
 0x6c0   : > { %1936 = vmatprep.subr.mxu0 %v7985_v0 }
 0x6c1   : > { %1937 = vmatpush1.msra.mxu0 %v6816_v32  ;;  %v6909_v32 = vld [vmem:[%s10252_s6 + $0xc0] sm:$0xff] }
 0x6c2   : > { %1938 = vmatprep.subr.mxu0 %v7985_v0 }
 0x6c3   : > { %1939 = vmatpush1.msra.mxu0 %v6815_v33  ;;  %v2243_v33 = vld [vmem:[%s10252_s6 + $0x10] sm:$0xff] }
 0x6c4   : > { %1946 = vmatprep.subr.mxu0 %v7985_v0 }
 0x6c5   : > { %6844 = vmatpush2.msk.msra.mxu0 %vm653_vm2, %v6843_v34  ;;  %v6908_v34 = vld [vmem:[%s10252_s6 + $0xb8] sm:$0xff] }
 0x6c6   : > { %1948 = vmatprep.subr.mxu0 %v7985_v0 }
 0x6c7   : > { %1949 = vmatpush2.msra.mxu0 %v6842_v35  ;;  %v2242_v35 = vld [vmem:[%s10252_s6 + $0x8] sm:$0xff] }
 0x6c8   : > { %1950 = vmatprep.subr.mxu0 %v7985_v0 }
 0x6c9   : > { %1951 = vmatpush2.msra.mxu0 %v6841_v36  ;;  %v6907_v36 = vld [vmem:[%s10252_s6 + $0xb0] sm:$0xff] }
 0x6ca   : > { %1952 = vmatprep.subr.mxu0 %v7985_v0 }
 0x6cb   : > { %1953 = vmatpush2.msra.mxu0 %v6840_v37  ;;  %v2241_v37 = vld [vmem:[%s10252_s6] sm:$0xff] }
 0x6cc   : > { %1954 = vmatprep.subr.mxu0 %v7985_v0 }
 0x6cd   : > { %1955 = vmatpush2.msra.mxu0 %v6839_v38  ;;  %v6906_v38 = vld [vmem:[%s10252_s6 + $0xa8] sm:$0xff] }
 0x6ce   : > { %1956 = vmatprep.subr.mxu0 %v7985_v0 }
 0x6cf   : > { %1957 = vmatpush2.msra.mxu0 %v6838_v39 }
 0x6d0   : > { %1958 = vmatprep.subr.mxu0 %v7985_v0 }
 0x6d1   : > { %1959 = vmatpush2.msra.mxu0 %v6837_v40 }
 0x6d2   : > { %1960 = vmatprep.subr.mxu0 %v7985_v0 }
 0x6d3   : > { %1961 = vmatpush2.msra.mxu0 %v6836_v41  ;;  %v2237_v41 = vpop.permute.xlu0 %2236 }
 0x6d4   : > { %1962 = vmatprep.subr.mxu0 %v7985_v0 }
 0x6d5   : > { %1963 = vmatpush2.msra.mxu0 %v6835_v42 }
 0x6d6   : > { %1964 = vmatprep.subr.mxu0 %v7985_v0 }
 0x6d7   : > { %1965 = vmatpush2.msra.mxu0 %v6834_v43 }
 0x6d8   : > { %1966 = vmatprep.subr.mxu0 %v7985_v0 }
 0x6d9   : > { %1967 = vmatpush2.msra.mxu0 %v6833_v44 }
 0x6da   : > { %1968 = vmatprep.subr.mxu0 %v7985_v0 }
 0x6db   : > { %1969 = vmatpush2.msra.mxu0 %v6832_v45  ;;  %v6889_v45 = vld [vmem:[%s10252_s6 + $0x68] sm:$0x1] }
 0x6dc   : > { %1970 = vmatprep.subr.mxu0 %v7985_v0 }
 0x6dd   : > { %1971 = vmatpush2.msra.mxu0 %v6831_v46  ;;  %v6888_v46 = vld [vmem:[%s10252_s6 + $0x60] sm:$0xff] }
 0x6de   : > { %1973 = vmatmul.mubr.f32.vlgmr.msra.gmra.mxu0 %v8391_v17  ;;  %7399 = vmatprep.subr.mxu0 %v7985_v0 }
 0x6df   : > { %7401 = vmatprep.mubr.msk.f32.mxu0 %vm7987_vm4, %v7985_v0 }
 0x764   : > { %v1870_v47 = vpop.f32.mrf.mxu0 }
 0x765   : > { %v9187_v48 = vadd.f32 %v1870_v47, %v9057_v11  ;;  %v6870_v11 = vld [vmem:[%s10249_s3 + $0x7f0] sm:$0xff]  ;;  %v6887_v47 = vld [vmem:[%s10252_s6 + $0x58] sm:$0xff] }
 0x766   : > { %v7393_v49 = vpop.f32.mrf.mxu0 }
 0x767   : > { %v6885_v49 = vld [vmem:[%s10252_s6 + $0x48] sm:$0xff] }
 0x79e   : > { %v1974_v51 = vpop.f32.mrf.mxu0 }
 0x79f   : > { %7395 = vmatpush3.msra.mxu1 %v1974_v51  ;;  %v6883_v51 = vld [vmem:[%s10252_s6 + $0x38] sm:$0xff] }
 0x7a0   : > { %v1976_v53 = vpop.f32.mrf.mxu0  ;;  %7397 = vmatmul.mubr.msk.f32.vlgmr.msra.gmra.mxu1 %vm833_vm5, %v6846_v50  ;;  %2087 = vmatprep.subr.mxu1 %v7985_v0  ;;  %v6884_v50 = vld [vmem:[%s10252_s6 + $0x40] sm:$0xff] }
 0x7a1   : > { %2088 = vmatpush1.msra.mxu1 %v6863_v52  ;;  %6878 = vmatprep.mubr.msk.f32.mxu1 %vm649_vm3, %v8389_v16  ;;  %v6859_v16 = vld [vmem:[%s10249_s3 + $0x798] sm:$0xff] }
 0x7a2   : > { %2089 = vmatprep.subr.mxu1 %v7985_v0 }
 0x7a3   : > { %2090 = vmatpush1.msra.mxu1 %v6862_v54 }
 0x7a4   : > { %2091 = vmatprep.subr.mxu1 %v7985_v0 }
 0x7a5   : > { %2092 = vmatpush1.msra.mxu1 %v6861_v55 }
 0x7a6   : > { %2093 = vmatprep.subr.mxu1 %v7985_v0 }
 0x7a7   : > { %2094 = vmatpush1.msra.mxu1 %v6860_v56  ;;  %v6892_v56 = vld [vmem:[%s10253_s7 + $0x8] sm:$0xff] }
 0x7a8   : > { %2095 = vmatprep.subr.mxu1 %v7985_v0 }
 0x7a9   : > { %2096 = vmatpush1.msra.mxu1 %v6859_v16 }
 0x7aa   : > { %2097 = vmatprep.subr.mxu1 %v7985_v0 }
 0x7ab   : > { %2098 = vmatpush1.msra.mxu1 %v6858_v57 }
 0x7ac   : > { %2099 = vmatprep.subr.mxu1 %v7985_v0 }
 0x7ad   : > { %2100 = vmatpush1.msra.mxu1 %v6857_v58  ;;  %v2325_v58 = vld [vmem:[%s10253_s7] sm:$0xff] }
 0x7ae   : > { %2101 = vmatprep.subr.mxu1 %v7985_v0 }
 0x7af   : > { %2102 = vmatpush1.msra.mxu1 %v6856_v59  ;;  %v6901_v59 = vld [vmem:[%s10252_s6 + $0xa0] sm:$0x1] }
 0x7b0   : > { %2103 = vmatprep.subr.mxu1 %v7985_v0 }
 0x7b1   : > { %2104 = vmatpush1.msra.mxu1 %v6855_v60  ;;  %v6900_v60 = vld [vmem:[%s10252_s6 + $0x98] sm:$0xff] }
 0x7b2   : > { %2105 = vmatprep.subr.mxu1 %v7985_v0 }
 0x7b3   : > { %2106 = vmatpush1.msra.mxu1 %v6854_v61  ;;  %v6899_v61 = vld [vmem:[%s10252_s6 + $0x90] sm:$0xff] }
 0x7b4   : > { %2107 = vmatprep.subr.mxu1 %v7985_v0 }
 0x7b5   : > { %2108 = vmatpush1.msra.mxu1 %v6853_v62  ;;  %v6898_v62 = vld [vmem:[%s10252_s6 + $0x88] sm:$0xff] }
 0x7b6   : > { %2109 = vmatprep.subr.mxu1 %v7985_v0 }
 0x7b7   : > { %2110 = vmatpush1.msra.mxu1 %v6852_v63  ;;  %v6897_v63 = vld [vmem:[%s10252_s6 + $0x80] sm:$0xff] }
 0x7b8   : > { %2111 = vmatprep.subr.mxu1 %v7985_v0 }
 0x7b9   : > { %2112 = vmatpush1.msra.mxu1 %v6851_v1  ;;  %v6896_v1 = vld [vmem:[%s10252_s6 + $0x78] sm:$0xff] }
 0x7ba   : > { %2113 = vmatprep.subr.mxu1 %v7985_v0 }
 0x7bb   : > { %2114 = vmatpush1.msra.mxu1 %v6850_v2  ;;  %v6895_v2 = vld [vmem:[%s10252_s6 + $0x70] sm:$0xff] }
 0x7bc   : > { %2115 = vmatprep.subr.mxu1 %v7985_v0 }
 0x7bd   : > { %2116 = vmatpush1.msra.mxu1 %v6849_v3 }
 0x7be   : > { %2117 = vmatprep.subr.mxu1 %v7985_v0 }
 0x7bf   : > { %2118 = vmatpush1.msra.mxu1 %v6848_v4 }
 0x7c0   : > { %2125 = vmatprep.subr.mxu1 %v7985_v0 }
 0x7c1   : > { %6877 = vmatpush2.msk.msra.mxu1 %vm653_vm2, %v6876_v5 }
 0x7c2   : > { %2127 = vmatprep.subr.mxu1 %v7985_v0 }
 0x7c3   : > { %2128 = vmatpush2.msra.mxu1 %v6875_v6 }
 0x7c4   : > { %2129 = vmatprep.subr.mxu1 %v7985_v0 }
 0x7c5   : > { %2130 = vmatpush2.msra.mxu1 %v6874_v7 }
 0x7c6   : > { %2131 = vmatprep.subr.mxu1 %v7985_v0 }
 0x7c7   : > { %2132 = vmatpush2.msra.mxu1 %v6873_v8  ;;  %v6904_v8 = vld [vmem:[%s10253_s7 + $0x10] sm:$0xff] }
 0x7c8   : > { %2133 = vmatprep.subr.mxu1 %v7985_v0 }
 0x7c9   : > { %2134 = vmatpush2.msra.mxu1 %v6872_v9 }
 0x7ca   : > { %2135 = vmatprep.subr.mxu1 %v7985_v0 }
 0x7cb   : > { %2136 = vmatpush2.msra.mxu1 %v6871_v10 }
 0x7cc   : > { %2137 = vmatprep.subr.mxu1 %v7985_v0 }
 0x7cd   : > { %2138 = vmatpush2.msra.mxu1 %v6870_v11  ;;  %v6915_v11 = vld [vmem:[%s10253_s7 + $0x18] sm:$0xff] }
 0x7ce   : > { %2139 = vmatprep.subr.mxu1 %v7985_v0 }
 0x7cf   : > { %2140 = vmatpush2.msra.mxu1 %v6869_v12  ;;  %v6923_v12 = vld [vmem:[%s10252_s6 + $0x110] sm:$0x1] }
 0x7d0   : > { %2141 = vmatprep.subr.mxu1 %v7985_v0 }
 0x7d1   : > { %2142 = vmatpush2.msra.mxu1 %v6868_v13  ;;  %v6922_v13 = vld [vmem:[%s10252_s6 + $0x108] sm:$0xff] }
 0x7d2   : > { %2143 = vmatprep.subr.mxu1 %v7985_v0 }
 0x7d3   : > { %2144 = vmatpush2.msra.mxu1 %v6867_v14  ;;  %v6921_v14 = vld [vmem:[%s10252_s6 + $0x100] sm:$0xff] }
 0x7d4   : > { %2145 = vmatprep.subr.mxu1 %v7985_v0 }
 0x7d5   : > { %2146 = vmatpush2.msra.mxu1 %v6866_v15  ;;  %v6920_v15 = vld [vmem:[%s10252_s6 + $0xf8] sm:$0xff] }
 0x7d6   : > { %2147 = vmatprep.subr.mxu1 %v7985_v0 }
 0x7d7   : > { %2148 = vmatpush2.msra.mxu1 %v6865_v18  ;;  %v6919_v18 = vld [vmem:[%s10252_s6 + $0xf0] sm:$0xff] }
 0x7d8   : > { %2149 = vmatprep.subr.mxu1 %v7985_v0 }
 0x7d9   : > { %2150 = vmatpush2.msra.mxu1 %v6864_v19  ;;  %v6918_v19 = vld [vmem:[%s10252_s6 + $0xe8] sm:$0xff] }
 0x7da   : > { %2152 = vmatmul.mubr.f32.vlgmr.msra.gmra.mxu1 %v8391_v17  ;;  %7470 = vmatprep.subr.mxu1 %v7985_v0  ;;  %v6910_v17 = vld [vmem:[%s10252_s6 + $0xc8] sm:$0xff] }
 0x7db   : > { %7484 = vmatprep.mubr.msk.f32.mxu1 %vm7987_vm4, %v7985_v0  ;;  %7471 = vmatpush3.msk.msra.mxu1 %vm653_vm2, %v6912_v20  ;;  %v6917_v20 = vld [vmem:[%s10252_s6 + $0xe0] sm:$0xff] }
 0x7dc   : > { %7472 = vmatprep.subr.mxu1 %v7985_v0 }
 0x7dd   : > { %7473 = vmatpush3.msra.mxu1 %v6911_v21 }
 0x7de   : > { %7474 = vmatprep.subr.mxu1 %v7985_v0 }
 0x7df   : > { %7475 = vmatpush3.msra.mxu1 %v6910_v17 }
 0x7e0   : > { %7476 = vmatprep.subr.mxu1 %v7985_v0 }
 0x7e1   : > { %7477 = vmatpush3.msra.mxu1 %v6909_v32  ;;  %v6931_v32 = vld [vmem:[%s10252_s6 + $0x130] sm:$0xff] }
 0x7e2   : > { %7478 = vmatprep.subr.mxu1 %v7985_v0 }
 0x7e3   : > { %7479 = vmatpush3.msra.mxu1 %v6908_v34  ;;  %v6929_v34 = vld [vmem:[%s10252_s6 + $0x120] sm:$0xff] }
 0x7e4   : > { %7480 = vmatprep.subr.mxu1 %v7985_v0 }
 0x7e5   : > { %7481 = vmatpush3.msra.mxu1 %v6907_v36 }
 0x7e6   : > { %7482 = vmatprep.subr.mxu1 %v7985_v0 }
 0x7e7   : > { %7483 = vmatpush3.msra.mxu1 %v6906_v38 }
 0x7e8   : > { %7509 = vmatprep.subr.mxu1 %v7985_v0 }
 0x860   : > { %v2049_v22 = vpop.f32.mrf.mxu1 }
 0x861   : > { %v2053_v23 = vadd.f32 %v2049_v22, %v9187_v48  ;;  %v6886_v48 = vld [vmem:[%s10252_s6 + $0x50] sm:$0xff] }
 0x862   : > { %v7398_v24 = vpop.f32.mrf.mxu1 }
 0x89a   : > { %v2153_v26 = vpop.f32.mrf.mxu1 }
 0x89b   : > { %7400 = vmatpush3.msra.mxu0 %v2153_v26  ;;  %v6926_v26 = vld [vmem:[%s10253_s7 + $0x20] sm:$0xff] }
 0x89c   : > { %v2155_v28 = vpop.f32.mrf.mxu1  ;;  %7402 = vmatmul.mubr.msk.f32.vlgmr.msra.gmra.mxu0 %vm833_vm5, %v6879_v25  ;;  %7404 = vmatprep.subr.mxu0 %v7985_v0 }
 0x89d   : > { %7405 = vmatpush3.msk.msra.mxu0 %vm653_vm2, %v2247_v27  ;;  %7418 = vmatprep.mubr.msk.f32.mxu0 %vm7987_vm4, %v7985_v0  ;;  %v6934_v28 = vld [vmem:[%s10252_s6 + $0x148] sm:$0x1] }
 0x89e   : > { %7406 = vmatprep.subr.mxu0 %v7985_v0 }
 0x89f   : > { %7407 = vmatpush3.msra.mxu0 %v2246_v29 }
 0x8a0   : > { %7408 = vmatprep.subr.mxu0 %v7985_v0 }
 0x8a1   : > { %7409 = vmatpush3.msra.mxu0 %v2245_v30  ;;  %v6933_v30 = vld [vmem:[%s10252_s6 + $0x140] sm:$0xff] }
 0x8a2   : > { %7410 = vmatprep.subr.mxu0 %v7985_v0 }
 0x8a3   : > { %7411 = vmatpush3.msra.mxu0 %v2244_v31  ;;  %v6932_v31 = vld [vmem:[%s10252_s6 + $0x138] sm:$0xff] }
 0x8a4   : > { %7412 = vmatprep.subr.mxu0 %v7985_v0 }
 0x8a5   : > { %7413 = vmatpush3.msra.mxu0 %v2243_v33  ;;  %v6930_v33 = vld [vmem:[%s10252_s6 + $0x128] sm:$0xff] }
 0x8a6   : > { %7414 = vmatprep.subr.mxu0 %v7985_v0 }
 0x8a7   : > { %7415 = vmatpush3.msra.mxu0 %v2242_v35  ;;  %v6928_v35 = vld [vmem:[%s10252_s6 + $0x118] sm:$0xff] }
 0x8a8   : > { %7416 = vmatprep.subr.mxu0 %v7985_v0 }
 0x8a9   : > { %7417 = vmatpush3.msra.mxu0 %v2241_v37 }
 0x8aa   : > { %7421 = vmatprep.subr.mxu0 %v7985_v0 }
 0x95c   : > { %v2228_v39 = vpop.f32.mrf.mxu0 }
 0x95d   : > { %v2232_v40 = vadd.f32 %v2228_v39, %v2053_v23  ;;  %v6937_v39 = vld [vmem:[%s10253_s7 + $0x28] sm:$0xff] }
 0x95e   : > { %v7403_v42 = vpop.f32.mrf.mxu0 }
 0x95f   : > { %v2239_v43 = vadd.f32 %v2237_v41, %v2232_v40  ;;  %v6945_v41 = vld [vmem:[%s10252_s6 + $0x180] sm:$0x1] }
 0x961   : > { %v9382_v44 = vmax.f32 %v2239_v43, 0.0  ;;  %v6944_v43 = vld [vmem:[%s10252_s6 + $0x178] sm:$0xff] }
 0x963   : > { %7419 = vmatmul.mubr.msk.f32.vlgmr.msra.gmra.mxu0 %vm2248_vm6, %v9382_v44  ;;  %7485 = vmatmul.mubr.msk.f32.vlgmr.msra.gmra.mxu1 %vm2248_vm6, %v9382_v44 }
 0x964   : > { %7422 = vmatpush3.msk.msra.mxu0 %vm653_vm2, %v6889_v45  ;;  %7435 = vmatprep.mubr.msk.f32.mxu0 %vm7987_vm4, %v7985_v0  ;;  %v6943_v45 = vld [vmem:[%s10252_s6 + $0x170] sm:$0xff] }
 0x965   : > { %7423 = vmatprep.subr.mxu0 %v7985_v0  ;;  %7511 = vmatprep.mubr.msk.f32.mxu1 %vm7987_vm4, %v7985_v0 }
 0x966   : > { %7424 = vmatpush3.msra.mxu0 %v6888_v46  ;;  %v6942_v46 = vld [vmem:[%s10252_s6 + $0x168] sm:$0xff] }
 0x967   : > { %7425 = vmatprep.subr.mxu0 %v7985_v0 }
 0x968   : > { %7426 = vmatpush3.msra.mxu0 %v6887_v47  ;;  %v6941_v47 = vld [vmem:[%s10252_s6 + $0x160] sm:$0xff] }
 0x969   : > { %7427 = vmatprep.subr.mxu0 %v7985_v0 }
 0x96a   : > { %7428 = vmatpush3.msra.mxu0 %v6886_v48  ;;  %v6940_v48 = vld [vmem:[%s10252_s6 + $0x158] sm:$0xff] }
 0x96b   : > { %7429 = vmatprep.subr.mxu0 %v7985_v0 }
 0x96c   : > { %7430 = vmatpush3.msra.mxu0 %v6885_v49  ;;  %v6939_v49 = vld [vmem:[%s10252_s6 + $0x150] sm:$0xff] }
 0x96d   : > { %7431 = vmatprep.subr.mxu0 %v7985_v0 }
 0x96e   : > { %7432 = vmatpush3.msra.mxu0 %v6884_v50 }
 0x96f   : > { %7433 = vmatprep.subr.mxu0 %v7985_v0 }
 0x970   : > { %7434 = vmatpush3.msra.mxu0 %v6883_v51 }
 0x971   : > { %7436 = vmatmul.mubr.msk.f32.vlgmr.msra.gmra.mxu0 %vm2248_vm6, %v9382_v44  ;;  %7438 = vmatprep.subr.mxu0 %v7985_v0 }
 0x972   : > { %7440 = vmatprep.mubr.msk.f32.mxu0 %vm7987_vm4, %v7985_v0 }
 0xa23   : > { %v2321_v52 = vpop.f32.mrf.mxu0  ;;  %v2789_v53 = vpop.f32.mrf.mxu1 }
 0xa25   : > { %v7420_v54 = vpop.f32.mrf.mxu0  ;;  %v7486_v55 = vpop.f32.mrf.mxu1 }
 0xa26   : > { %v6956_v55 = vld [vmem:[%s10252_s6 + $0x1b8] sm:$0x1] }
 0xa31   : > { %v2403_v16 = vpop.f32.mrf.mxu0 }
 0xa32   : > { %7439 = vmatpush3.msra.mxu0 %v2403_v16  ;;  %v6955_v16 = vld [vmem:[%s10252_s6 + $0x1b0] sm:$0xff] }
 0xa33   : > { %v7437_v57 = vpop.f32.mrf.mxu0  ;;  %7441 = vmatmul.mubr.msk.f32.vlgmr.msra.gmra.mxu0 %vm833_vm5, %v6892_v56  ;;  %7443 = vmatprep.subr.mxu0 %v7985_v0 }
 0xa34   : > { %7444 = vmatpush3.msra.mxu0 %v2321_v52  ;;  %7445 = vmatprep.mubr.msk.f32.mxu0 %vm7987_vm4, %v7985_v0  ;;  %v6954_v57 = vld [vmem:[%s10252_s6 + $0x1a8] sm:$0xff] }
 0xa35   : > { %7448 = vmatprep.subr.mxu0 %v7985_v0 }
 0xa37   : > { %7446 = vmatmul.mubr.msk.f32.vlgmr.msra.gmra.mxu0 %vm833_vm5, %v2325_v58  ;;  %v6953_v58 = vld [vmem:[%s10252_s6 + $0x1a0] sm:$0xff] }
 0xa38   : > { %7449 = vmatpush3.msk.msra.mxu0 %vm653_vm2, %v6901_v59  ;;  %7462 = vmatprep.mubr.msk.f32.mxu0 %vm7987_vm4, %v7985_v0  ;;  %v6952_v59 = vld [vmem:[%s10252_s6 + $0x198] sm:$0xff] }
 0xa39   : > { %7450 = vmatprep.subr.mxu0 %v7985_v0 }
 0xa3a   : > { %7451 = vmatpush3.msra.mxu0 %v6900_v60  ;;  %v6951_v60 = vld [vmem:[%s10252_s6 + $0x190] sm:$0xff] }
 0xa3b   : > { %7452 = vmatprep.subr.mxu0 %v7985_v0 }
 0xa3c   : > { %7453 = vmatpush3.msra.mxu0 %v6899_v61  ;;  %v6950_v61 = vld [vmem:[%s10252_s6 + $0x188] sm:$0xff] }
 0xa3d   : > { %7454 = vmatprep.subr.mxu0 %v7985_v0 }
 0xa3e   : > { %7455 = vmatpush3.msra.mxu0 %v6898_v62 }
 0xa3f   : > { %7456 = vmatprep.subr.mxu0 %v7985_v0 }
 0xa40   : > { %7457 = vmatpush3.msra.mxu0 %v6897_v63 }
 0xa41   : > { %7458 = vmatprep.subr.mxu0 %v7985_v0 }
 0xa42   : > { %7459 = vmatpush3.msra.mxu0 %v6896_v1 }
 0xa43   : > { %7460 = vmatprep.subr.mxu0 %v7985_v0 }
 0xa44   : > { %7461 = vmatpush3.msra.mxu0 %v6895_v2  ;;  %v6959_v2 = vld [vmem:[%s10253_s7 + $0x38] sm:$0xff] }
 0xa45   : > { %7463 = vmatmul.mubr.msk.f32.vlgmr.msra.gmra.mxu0 %vm2248_vm6, %v9382_v44  ;;  %7465 = vmatprep.subr.mxu0 %v7985_v0 }
 0xa46   : > { %7467 = vmatprep.mubr.msk.f32.mxu0 %vm7987_vm4, %v7985_v0 }
 0xaf3   : > { %v2478_v3 = vpop.f32.mrf.mxu0 }
 0xaf5   : > { %v7442_v4 = vpop.f32.mrf.mxu0 }
 0xaf6   : > { %v6967_v4 = vld [vmem:[%s10252_s6 + $0x1f0] sm:$0x1] }
 0xaf7   : > { %v2551_v5 = vpop.f32.mrf.mxu0 }
 0xaf8   : > { %v2552_v6 = vadd.f32 %v2551_v5, %v2478_v3 }
 0xaf9   : > { %v7447_v7 = vpop.f32.mrf.mxu0 }
 0xafa   : > { %v6965_v7 = vld [vmem:[%s10252_s6 + $0x1e0] sm:$0xff] }
 0xb05   : > { %v2632_v9 = vpop.f32.mrf.mxu0 }
 0xb06   : > { %7466 = vmatpush3.msra.mxu0 %v2632_v9  ;;  %v6963_v9 = vld [vmem:[%s10252_s6 + $0x1d0] sm:$0xff] }
 0xb07   : > { %v7464_v10 = vpop.f32.mrf.mxu0  ;;  %7468 = vmatmul.mubr.msk.f32.vlgmr.msra.gmra.mxu0 %vm833_vm5, %v6904_v8  ;;  %7487 = vmatprep.subr.mxu0 %v7985_v0  ;;  %v6964_v8 = vld [vmem:[%s10252_s6 + $0x1d8] sm:$0xff] }
 0xb08   : > { %7488 = vmatpush3.msra.mxu0 %v2789_v53  ;;  %7489 = vmatprep.mubr.msk.f32.mxu0 %vm7987_vm4, %v7985_v0  ;;  %v6948_v53 = vld [vmem:[%s10253_s7 + $0x30] sm:$0xff]  ;;  %v6962_v10 = vld [vmem:[%s10252_s6 + $0x1c8] sm:$0xff] }
 0xb09   : > { %7492 = vmatprep.subr.mxu0 %v7985_v0 }
 0xb0b   : > { %7490 = vmatmul.mubr.msk.f32.vlgmr.msra.gmra.mxu0 %vm833_vm5, %v6915_v11  ;;  %v6961_v11 = vld [vmem:[%s10252_s6 + $0x1c0] sm:$0xff] }
 0xb0c   : > { %7493 = vmatpush3.msk.msra.mxu0 %vm653_vm2, %v6923_v12  ;;  %7506 = vmatprep.mubr.msk.f32.mxu0 %vm7987_vm4, %v7985_v0  ;;  %v3654_v12 = vld [vmem:[%s10254_s8] sm:$0xff] }
 0xb0d   : > { %7494 = vmatprep.subr.mxu0 %v7985_v0  ;;  %3657 = vperm.xlu1 %7922, %v3654_v12  }
 0xb0e   : > { %7495 = vmatpush3.msra.mxu0 %v6922_v13  ;;  %v5136_v13 = vld [vmem:[%s10257_s11] sm:$0xff] }
 0xb0f   : > { %7496 = vmatprep.subr.mxu0 %v7985_v0 }
 0xb10   : > { %7497 = vmatpush3.msra.mxu0 %v6921_v14 }
 0xb11   : > { %7498 = vmatprep.subr.mxu0 %v7985_v0  ;;  %5140 = vperm.xlu1 %7922, %v5136_v13  }
 0xb12   : > { %7499 = vmatpush3.msra.mxu0 %v6920_v15 }
 0xb13   : > { %7500 = vmatprep.subr.mxu0 %v7985_v0 }
 0xb14   : > { %7501 = vmatpush3.msra.mxu0 %v6919_v18 }
 0xb15   : > { %7502 = vmatprep.subr.mxu0 %v7985_v0 }
 0xb16   : > { %7503 = vmatpush3.msra.mxu0 %v6918_v19  ;;  %v6970_v19 = vld [vmem:[%s10253_s7 + $0x40] sm:$0xff] }
 0xb17   : > { %7504 = vmatprep.subr.mxu0 %v7985_v0 }
 0xb18   : > { %7505 = vmatpush3.msra.mxu0 %v6917_v20 }
 0xb19   : > { %7507 = vmatmul.mubr.msk.f32.vlgmr.msra.gmra.mxu0 %vm2248_vm6, %v9382_v44  ;;  %7531 = vmatprep.subr.mxu0 %v7985_v0 }
 0xb1a   : > { %7533 = vmatprep.mubr.msk.f32.mxu0 %vm7987_vm4, %v7985_v0 }
 0xbc7   : > { %v2707_v21 = vpop.f32.mrf.mxu0 }
 0xbc8   : > { %v2711_v17 = vadd.f32 %v2707_v21, %v2552_v6  ;;  %v6966_v6 = vld [vmem:[%s10252_s6 + $0x1e8] sm:$0xff] }
 0xbc9   : > { %v7469_v22 = vpop.f32.mrf.mxu0 }
 0xbca   : > { %v3663_v22 = vld [vmem:[%s10255_s9 + $0x8] sm:$0xff] }
 0xbcb   : > { %v2864_v23 = vpop.f32.mrf.mxu0 }
 0xbcc   : > { %v2868_v24 = vadd.f32 %v2864_v23, %v2711_v17  ;;  %v3664_v17 = vld [vmem:[%s10255_s9 + $0x10] sm:$0xff]  ;;  %v3662_v23 = vld [vmem:[%s10255_s9] sm:$0xff] }
 0xbcd   : > { %v7491_v25 = vpop.f32.mrf.mxu0 }
 0xbd9   : > { %v2946_v27 = vpop.f32.mrf.mxu0 }
 0xbda   : > { %7510 = vmatpush3.msra.mxu1 %v2946_v27 }
 0xbdb   : > { %v7508_v29 = vpop.f32.mrf.mxu0  ;;  %7512 = vmatmul.mubr.msk.f32.vlgmr.msra.gmra.mxu1 %vm833_vm5, %v6926_v26  ;;  %7514 = vmatprep.subr.mxu1 %v7985_v0  ;;  %v3658_v26 = vpop.permute.xlu1 %3657 }
 0xbdc   : > { %7515 = vmatpush3.msk.msra.mxu1 %vm653_vm2, %v6934_v28  ;;  %7528 = vmatprep.mubr.msk.f32.mxu1 %vm7987_vm4, %v7985_v0 }
 0xbdd   : > { %7516 = vmatprep.subr.mxu1 %v7985_v0 }
 0xbde   : > { %7517 = vmatpush3.msra.mxu1 %v6933_v30  ;;  %v6977_v30 = vld [vmem:[%s10255_s9 + $0x38] sm:$0x1] }
 0xbdf   : > { %7518 = vmatprep.subr.mxu1 %v7985_v0 }
 0xbe0   : > { %7519 = vmatpush3.msra.mxu1 %v6932_v31  ;;  %v6976_v31 = vld [vmem:[%s10255_s9 + $0x30] sm:$0xff] }
 0xbe1   : > { %7520 = vmatprep.subr.mxu1 %v7985_v0 }
 0xbe2   : > { %7521 = vmatpush3.msra.mxu1 %v6931_v32  ;;  %v6975_v32 = vld [vmem:[%s10255_s9 + $0x28] sm:$0xff] }
 0xbe3   : > { %7522 = vmatprep.subr.mxu1 %v7985_v0 }
 0xbe4   : > { %7523 = vmatpush3.msra.mxu1 %v6930_v33  ;;  %v6974_v33 = vld [vmem:[%s10255_s9 + $0x20] sm:$0xff] }
 0xbe5   : > { %7524 = vmatprep.subr.mxu1 %v7985_v0 }
 0xbe6   : > { %7525 = vmatpush3.msra.mxu1 %v6929_v34  ;;  %v6980_v34 = vld [vmem:[%s10256_s10 + $0x10] sm:$0xff] }
 0xbe7   : > { %7526 = vmatprep.subr.mxu1 %v7985_v0 }
 0xbe8   : > { %7527 = vmatpush3.msra.mxu1 %v6928_v35  ;;  %v3743_v35 = vld [vmem:[%s10256_s10] sm:$0xff] }
 0xbe9   : > { %7529 = vmatmul.mubr.msk.f32.vlgmr.msra.gmra.mxu1 %vm2248_vm6, %v9382_v44  ;;  %7553 = vmatprep.subr.mxu1 %v7985_v0 }
 0xbea   : > { %7555 = vmatprep.mubr.msk.f32.mxu1 %vm7987_vm4, %v7985_v0 }
 0xc9b   : > { %v3021_v36 = vpop.f32.mrf.mxu1 }
 0xc9c   : > { %v3025_v37 = vadd.f32 %v3021_v36, %v2868_v24 }
 0xc9d   : > { %v7513_v38 = vpop.f32.mrf.mxu1 }
 0xca9   : > { %v3103_v40 = vpop.f32.mrf.mxu1 }
 0xcaa   : > { %7532 = vmatpush3.msra.mxu0 %v3103_v40  ;;  %v6981_v40 = vld [vmem:[%s10256_s10 + $0x18] sm:$0xff] }
 0xcab   : > { %v7530_v42 = vpop.f32.mrf.mxu1  ;;  %7534 = vmatmul.mubr.msk.f32.vlgmr.msra.gmra.mxu0 %vm833_vm5, %v6937_v39  ;;  %7536 = vmatprep.subr.mxu0 %v7985_v0 }
 0xcac   : > { %7537 = vmatpush3.msk.msra.mxu0 %vm653_vm2, %v6945_v41  ;;  %7550 = vmatprep.mubr.msk.f32.mxu0 %vm7987_vm4, %v7985_v0  ;;  %v6989_v41 = vld [vmem:[%s10255_s9 + $0x58] sm:$0x1] }
 0xcad   : > { %7538 = vmatprep.subr.mxu0 %v7985_v0 }
 0xcae   : > { %7539 = vmatpush3.msra.mxu0 %v6944_v43  ;;  %v6988_v43 = vld [vmem:[%s10255_s9 + $0x50] sm:$0xff] }
 0xcaf   : > { %7540 = vmatprep.subr.mxu0 %v7985_v0 }
 0xcb0   : > { %7541 = vmatpush3.msra.mxu0 %v6943_v45  ;;  %v6987_v45 = vld [vmem:[%s10255_s9 + $0x48] sm:$0xff] }
 0xcb1   : > { %7542 = vmatprep.subr.mxu0 %v7985_v0 }
 0xcb2   : > { %7543 = vmatpush3.msra.mxu0 %v6942_v46  ;;  %v6986_v46 = vld [vmem:[%s10255_s9 + $0x40] sm:$0xff] }
 0xcb3   : > { %7544 = vmatprep.subr.mxu0 %v7985_v0 }
 0xcb4   : > { %7545 = vmatpush3.msra.mxu0 %v6941_v47  ;;  %v6992_v47 = vld [vmem:[%s10256_s10 + $0x20] sm:$0xff] }
 0xcb5   : > { %7546 = vmatprep.subr.mxu0 %v7985_v0 }
 0xcb6   : > { %7547 = vmatpush3.msra.mxu0 %v6940_v48 }
 0xcb7   : > { %7548 = vmatprep.subr.mxu0 %v7985_v0 }
 0xcb8   : > { %7549 = vmatpush3.msra.mxu0 %v6939_v49 }
 0xcb9   : > { %7551 = vmatmul.mubr.msk.f32.vlgmr.msra.gmra.mxu0 %vm2248_vm6, %v9382_v44  ;;  %7575 = vmatprep.subr.mxu0 %v7985_v0 }
 0xcba   : > { %7577 = vmatprep.mubr.msk.f32.mxu0 %vm7987_vm4, %v7985_v0 }
 0xd6b   : > { %v3178_v50 = vpop.f32.mrf.mxu0 }
 0xd6c   : > { %v3182_v51 = vadd.f32 %v3178_v50, %v3025_v37  ;;  %v3744_v37 = vld [vmem:[%s10256_s10 + $0x8] sm:$0xff] }
 0xd6d   : > { %v7535_v52 = vpop.f32.mrf.mxu0 }
 0xd79   : > { %v3260_v54 = vpop.f32.mrf.mxu0 }
 0xd7a   : > { %7554 = vmatpush3.msra.mxu1 %v3260_v54  ;;  %v6999_v54 = vld [vmem:[%s10255_s9 + $0x78] sm:$0x1] }
 0xd7b   : > { %v7552_v56 = vpop.f32.mrf.mxu0  ;;  %7556 = vmatmul.mubr.msk.f32.vlgmr.msra.gmra.mxu1 %vm833_vm5, %v6948_v53  ;;  %7558 = vmatprep.subr.mxu1 %v7985_v0  ;;  %v6993_v53 = vld [vmem:[%s10256_s10 + $0x28] sm:$0xff] }
 0xd7c   : > { %7559 = vmatpush3.msk.msra.mxu1 %vm653_vm2, %v6956_v55  ;;  %7572 = vmatprep.mubr.msk.f32.mxu1 %vm7987_vm4, %v7985_v0  ;;  %v6998_v56 = vld [vmem:[%s10255_s9 + $0x70] sm:$0xff] }
 0xd7d   : > { %7560 = vmatprep.subr.mxu1 %v7985_v0 }
 0xd7e   : > { %7561 = vmatpush3.msra.mxu1 %v6955_v16  ;;  %v6997_v16 = vld [vmem:[%s10255_s9 + $0x68] sm:$0xff] }
 0xd7f   : > { %7562 = vmatprep.subr.mxu1 %v7985_v0 }
 0xd80   : > { %7563 = vmatpush3.msra.mxu1 %v6954_v57  ;;  %v6996_v57 = vld [vmem:[%s10255_s9 + $0x60] sm:$0xff] }
 0xd81   : > { %7564 = vmatprep.subr.mxu1 %v7985_v0 }
 0xd82   : > { %7565 = vmatpush3.msra.mxu1 %v6953_v58  ;;  %v7002_v58 = vld [vmem:[%s10256_s10 + $0x30] sm:$0xff] }
 0xd83   : > { %7566 = vmatprep.subr.mxu1 %v7985_v0 }
 0xd84   : > { %7567 = vmatpush3.msra.mxu1 %v6952_v59 }
 0xd85   : > { %7568 = vmatprep.subr.mxu1 %v7985_v0 }
 0xd86   : > { %7569 = vmatpush3.msra.mxu1 %v6951_v60 }
 0xd87   : > { %7570 = vmatprep.subr.mxu1 %v7985_v0 }
 0xd88   : > { %7571 = vmatpush3.msra.mxu1 %v6950_v61 }
 0xd89   : > { %7573 = vmatmul.mubr.msk.f32.vlgmr.msra.gmra.mxu1 %vm2248_vm6, %v9382_v44  ;;  %7597 = vmatprep.subr.mxu1 %v7985_v0 }
 0xd8a   : > { %7599 = vmatprep.mubr.msk.f32.mxu1 %vm7987_vm4, %v7985_v0 }
 0xe3b   : > { %v3335_v62 = vpop.f32.mrf.mxu1 }
 0xe3c   : > { %v3339_v63 = vadd.f32 %v3335_v62, %v3182_v51 }
 0xe3d   : > { %v7557_v1 = vpop.f32.mrf.mxu1 }
 0xe49   : > { %v3417_v3 = vpop.f32.mrf.mxu1 }
 0xe4a   : > { %7576 = vmatpush3.msra.mxu0 %v3417_v3  ;;  %v7003_v3 = vld [vmem:[%s10256_s10 + $0x38] sm:$0xff] }
 0xe4b   : > { %v7574_v5 = vpop.f32.mrf.mxu1  ;;  %7578 = vmatmul.mubr.msk.f32.vlgmr.msra.gmra.mxu0 %vm833_vm5, %v6959_v2  ;;  %7580 = vmatprep.subr.mxu0 %v7985_v0 }
 0xe4c   : > { %7581 = vmatpush3.msk.msra.mxu0 %vm653_vm2, %v6967_v4  ;;  %7594 = vmatprep.mubr.msk.f32.mxu0 %vm7987_vm4, %v7985_v0  ;;  %v7009_v4 = vld [vmem:[%s10255_s9 + $0x98] sm:$0x1] }
 0xe4d   : > { %7582 = vmatprep.subr.mxu0 %v7985_v0 }
 0xe4e   : > { %7583 = vmatpush3.msra.mxu0 %v6966_v6  ;;  %v7008_v6 = vld [vmem:[%s10255_s9 + $0x90] sm:$0xff] }
 0xe4f   : > { %7584 = vmatprep.subr.mxu0 %v7985_v0 }
 0xe50   : > { %7585 = vmatpush3.msra.mxu0 %v6965_v7  ;;  %v7007_v7 = vld [vmem:[%s10255_s9 + $0x88] sm:$0xff] }
 0xe51   : > { %7586 = vmatprep.subr.mxu0 %v7985_v0 }
 0xe52   : > { %7587 = vmatpush3.msra.mxu0 %v6964_v8  ;;  %v7006_v8 = vld [vmem:[%s10255_s9 + $0x80] sm:$0xff] }
 0xe53   : > { %7588 = vmatprep.subr.mxu0 %v7985_v0 }
 0xe54   : > { %7589 = vmatpush3.msra.mxu0 %v6963_v9  ;;  %v7012_v9 = vld [vmem:[%s10256_s10 + $0x40] sm:$0xff] }
 0xe55   : > { %7590 = vmatprep.subr.mxu0 %v7985_v0 }
 0xe56   : > { %7591 = vmatpush3.msra.mxu0 %v6962_v10 }
 0xe57   : > { %7592 = vmatprep.subr.mxu0 %v7985_v0 }
 0xe58   : > { %7593 = vmatpush3.msra.mxu0 %v6961_v11 }
 0xe59   : > { %7595 = vmatmul.mubr.msk.f32.vlgmr.msra.gmra.mxu0 %vm2248_vm6, %v9382_v44  ;;  %v3665_v44 = vld [vmem:[%s10255_s9 + $0x18] sm:$0x1] }
 0xe5a   : > { %7631 = vmatprep.mubr.msk.f32.mxu0 %vm833_vm5, %v3743_v35 }
 0xf0b   : > { %v3492_v14 = vpop.f32.mrf.mxu0 }
 0xf0c   : > { %v3496_v15 = vadd.f32 %v3492_v14, %v3339_v63 }
 0xf0d   : > { %v7579_v18 = vpop.f32.mrf.mxu0 }
 0xf0e   : > { %v7019_v18 = vld [vmem:[%s10255_s9 + $0xb8] sm:$0x1] }
 0xf19   : > { %v3574_v20 = vpop.f32.mrf.mxu0 }
 0xf1a   : > { %7598 = vmatpush3.msra.mxu1 %v3574_v20  ;;  %v7018_v20 = vld [vmem:[%s10255_s9 + $0xb0] sm:$0xff] }
 0xf1b   : > { %v7596_v21 = vpop.f32.mrf.mxu0  ;;  %7600 = vmatmul.mubr.msk.f32.vlgmr.msra.gmra.mxu1 %vm833_vm5, %v6970_v19  ;;  %7602 = vmatprep.subr.mxu1 %v7985_v0 }
 0xf1c   : > { %7603 = vmatpush3.msk.msra.mxu1 %vm653_vm2, %v3665_v44  ;;  %7610 = vmatprep.mubr.msk.f32.mxu1 %vm7987_vm4, %v7985_v0  ;;  %v7017_v44 = vld [vmem:[%s10255_s9 + $0xa8] sm:$0xff]  ;;  %v7016_v21 = vld [vmem:[%s10255_s9 + $0xa0] sm:$0xff] }
 0xf1d   : > { %7604 = vmatprep.subr.mxu1 %v7985_v0 }
 0xf1e   : > { %7605 = vmatpush3.msra.mxu1 %v3664_v17  ;;  %v7022_v17 = vld [vmem:[%s10256_s10 + $0x50] sm:$0xff] }
 0xf1f   : > { %7606 = vmatprep.subr.mxu1 %v7985_v0 }
 0xf20   : > { %7607 = vmatpush3.msra.mxu1 %v3663_v22 }
 0xf21   : > { %7608 = vmatprep.subr.mxu1 %v7985_v0 }
 0xf22   : > { %7609 = vmatpush3.msra.mxu1 %v3662_v23 }
 0xf23   : > { %7613 = vmatprep.subr.mxu1 %v7985_v0 }
 0xfdb   : > { %v3649_v24 = vpop.f32.mrf.mxu1 }
 0xfdc   : > { %v3653_v25 = vadd.f32 %v3649_v24, %v3496_v15  ;;  %v7013_v15 = vld [vmem:[%s10256_s10 + $0x48] sm:$0xff] }
 0xfdd   : > { %v7601_v27 = vpop.f32.mrf.mxu1 }
 0xfde   : > { %v3660_v28 = vadd.f32 %v3658_v26, %v3653_v25  ;;  %v7023_v27 = vld [vmem:[%s10256_s10 + $0x58] sm:$0xff] }
 0xfe0   : > { %v9706_v29 = vmax.f32 %v3660_v28, 0.0  ;;  %v7029_v28 = vld [vmem:[%s10255_s9 + $0xd8] sm:$0x1] }
 0xfe2   : > { %7611 = vmatmul.mubr.msk.f32.vlgmr.msra.gmra.mxu1 %vm3666_vm7, %v9706_v29 }
 0xfe3   : > { %7614 = vmatpush3.msk.msra.mxu1 %vm653_vm2, %v6977_v30  ;;  %7621 = vmatprep.mubr.msk.f32.mxu1 %vm7987_vm4, %v7985_v0 }
 0xfe4   : > { %7615 = vmatprep.subr.mxu1 %v7985_v0 }
 0xfe5   : > { %7616 = vmatpush3.msra.mxu1 %v6976_v31  ;;  %v7028_v31 = vld [vmem:[%s10255_s9 + $0xd0] sm:$0xff] }
 0xfe6   : > { %7617 = vmatprep.subr.mxu1 %v7985_v0 }
 0xfe7   : > { %7618 = vmatpush3.msra.mxu1 %v6975_v32  ;;  %v7027_v32 = vld [vmem:[%s10255_s9 + $0xc8] sm:$0xff] }
 0xfe8   : > { %7619 = vmatprep.subr.mxu1 %v7985_v0 }
 0xfe9   : > { %7620 = vmatpush3.msra.mxu1 %v6974_v33  ;;  %v7026_v33 = vld [vmem:[%s10255_s9 + $0xc0] sm:$0xff] }
 0xfea   : > { %7622 = vmatmul.mubr.msk.f32.vlgmr.msra.gmra.mxu1 %vm3666_vm7, %v9706_v29 }
 0xfeb   : > { %7626 = vmatprep.mubr.msk.f32.mxu1 %vm833_vm5, %v6980_v34  ;;  %v7032_v34 = vld [vmem:[%s10256_s10 + $0x60] sm:$0xff] }
0x10a2   : > { %v3739_v36 = vpop.f32.mrf.mxu1 }
0x10a3   : > { %7629 = vmatprep.subr.mxu0 %v3739_v36 }
0x10a4   : > { %v7612_v38 = vpop.f32.mrf.mxu1  ;;  %7630 = vmatpush3.msra.mxu0 %v3739_v36 }
0x10a5   : > { %7632 = vmatmul.mubr.msk.f32.vlgmr.msra.gmra.mxu0 %vm833_vm5, %v3744_v37 }
0x10a6   : > { %7647 = vmatprep.mubr.msk.f32.mxu0 %vm833_vm5, %v6992_v47  ;;  %v7042_v47 = vld [vmem:[%s10256_s10 + $0x70] sm:$0xff] }
0x10aa   : > { %v3819_v39 = vpop.f32.mrf.mxu1 }
0x10ab   : > { %7624 = vmatprep.subr.mxu1 %v3819_v39 }
0x10ac   : > { %v7623_v42 = vpop.f32.mrf.mxu1  ;;  %7625 = vmatpush3.msra.mxu1 %v3819_v39 }
0x10ad   : > { %7627 = vmatmul.mubr.msk.f32.vlgmr.msra.gmra.mxu1 %vm833_vm5, %v6981_v40  ;;  %7634 = vmatprep.subr.mxu1 %v7985_v0  ;;  %v7033_v40 = vld [vmem:[%s10256_s10 + $0x68] sm:$0xff] }
0x10ae   : > { %7635 = vmatpush3.msk.msra.mxu1 %vm653_vm2, %v6989_v41  ;;  %7642 = vmatprep.mubr.msk.f32.mxu1 %vm7987_vm4, %v7985_v0  ;;  %v7039_v41 = vld [vmem:[%s10255_s9 + $0xf8] sm:$0x1] }
0x10af   : > { %7636 = vmatprep.subr.mxu1 %v7985_v0 }
0x10b0   : > { %7637 = vmatpush3.msra.mxu1 %v6988_v43  ;;  %v7038_v43 = vld [vmem:[%s10255_s9 + $0xf0] sm:$0xff] }
0x10b1   : > { %7638 = vmatprep.subr.mxu1 %v7985_v0 }
0x10b2   : > { %7639 = vmatpush3.msra.mxu1 %v6987_v45  ;;  %v7037_v45 = vld [vmem:[%s10255_s9 + $0xe8] sm:$0xff] }
0x10b3   : > { %7640 = vmatprep.subr.mxu1 %v7985_v0 }
0x10b4   : > { %7641 = vmatpush3.msra.mxu1 %v6986_v46  ;;  %v7036_v46 = vld [vmem:[%s10255_s9 + $0xe0] sm:$0xff] }
0x10b5   : > { %7643 = vmatmul.mubr.msk.f32.vlgmr.msra.gmra.mxu1 %vm3666_vm7, %v9706_v29 }
0x10b6   : > { %7663 = vmatprep.mubr.msk.f32.mxu1 %vm833_vm5, %v7002_v58  ;;  %v7052_v58 = vld [vmem:[%s10256_s10 + $0x80] sm:$0xff] }
0x1165   : > { %v7633_v48 = vpop.f32.mrf.mxu0 }
0x1167   : > { %v3979_v59 = vpop.f32.mrf.mxu0 }
0x116d   : > { %v7628_v49 = vpop.f32.mrf.mxu1 }
0x116e   : > { %v3985_v50 = vadd.f32 %v7633_v48, %v7628_v49 }
0x116f   : > { %v3898_v51 = vpop.f32.mrf.mxu1 }
0x1170   : > { %v3980_v61 = vadd.f32 %v3979_v59, %v3898_v51 }
0x1175   : > { %v4062_v52 = vpop.f32.mrf.mxu1 }
0x1176   : > { %7645 = vmatprep.subr.mxu0 %v4062_v52 }
0x1177   : > { %v7644_v55 = vpop.f32.mrf.mxu1  ;;  %7646 = vmatpush3.msra.mxu0 %v4062_v52 }
0x1178   : > { %7648 = vmatmul.mubr.msk.f32.vlgmr.msra.gmra.mxu0 %vm833_vm5, %v6993_v53  ;;  %7650 = vmatprep.subr.mxu0 %v7985_v0  ;;  %v7043_v53 = vld [vmem:[%s10256_s10 + $0x78] sm:$0xff] }
0x1179   : > { %7651 = vmatpush3.msk.msra.mxu0 %vm653_vm2, %v6999_v54  ;;  %7658 = vmatprep.mubr.msk.f32.mxu0 %vm7987_vm4, %v7985_v0  ;;  %v7049_v54 = vld [vmem:[%s10255_s9 + $0x118] sm:$0x1] }
0x117a   : > { %7652 = vmatprep.subr.mxu0 %v7985_v0 }
0x117b   : > { %7653 = vmatpush3.msra.mxu0 %v6998_v56  ;;  %v7048_v56 = vld [vmem:[%s10255_s9 + $0x110] sm:$0xff] }
0x117c   : > { %7654 = vmatprep.subr.mxu0 %v7985_v0 }
0x117d   : > { %7655 = vmatpush3.msra.mxu0 %v6997_v16  ;;  %v7047_v16 = vld [vmem:[%s10255_s9 + $0x108] sm:$0xff] }
0x117e   : > { %7656 = vmatprep.subr.mxu0 %v7985_v0 }
0x117f   : > { %7657 = vmatpush3.msra.mxu0 %v6996_v57  ;;  %v7046_v57 = vld [vmem:[%s10255_s9 + $0x100] sm:$0xff] }
0x1180   : > { %7659 = vmatmul.mubr.msk.f32.vlgmr.msra.gmra.mxu0 %vm3666_vm7, %v9706_v29 }
0x1181   : > { %7679 = vmatprep.mubr.msk.f32.mxu0 %vm833_vm5, %v7012_v9  ;;  %v5141_v9 = vpop.permute.xlu1 %5140 }
0x1238   : > { %v7649_v60 = vpop.f32.mrf.mxu0 }
0x1239   : > { %v4151_v62 = vadd.f32 %v7649_v60, %v3985_v50 }
0x123a   : > { %v4141_v63 = vpop.f32.mrf.mxu0 }
0x123b   : > { %v4150_v1 = vadd.f32 %v4141_v63, %v3980_v61 }
0x1240   : > { %v4226_v2 = vpop.f32.mrf.mxu0 }
0x1241   : > { %7661 = vmatprep.subr.mxu1 %v4226_v2 }
0x1242   : > { %v7660_v5 = vpop.f32.mrf.mxu0  ;;  %7662 = vmatpush3.msra.mxu1 %v4226_v2  ;;  %v5154_v2 = vld [vmem:[%s10258_s12 + $0x8] sm:$0x1] }
0x1243   : > { %7664 = vmatmul.mubr.msk.f32.vlgmr.msra.gmra.mxu1 %vm833_vm5, %v7003_v3  ;;  %7666 = vmatprep.subr.mxu1 %v7985_v0  ;;  %v5153_v3 = vld [vmem:[%s10258_s12] sm:$0xff]  ;;  %v7058_v5 = vld [vmem:[%s10258_s12 + $0x10] sm:$0xff] }
0x1244   : > { %7667 = vmatpush3.msk.msra.mxu1 %vm653_vm2, %v7009_v4  ;;  %7674 = vmatprep.mubr.msk.f32.mxu1 %vm7987_vm4, %v7985_v0  ;;  %v7059_v4 = vld [vmem:[%s10258_s12 + $0x18] sm:$0x1] }
0x1245   : > { %7668 = vmatprep.subr.mxu1 %v7985_v0 }
0x1246   : > { %7669 = vmatpush3.msra.mxu1 %v7008_v6 }
0x1247   : > { %7670 = vmatprep.subr.mxu1 %v7985_v0 }
0x1248   : > { %7671 = vmatpush3.msra.mxu1 %v7007_v7 }
0x1249   : > { %7672 = vmatprep.subr.mxu1 %v7985_v0 }
0x124a   : > { %7673 = vmatpush3.msra.mxu1 %v7006_v8 }
0x124b   : > { %7675 = vmatmul.mubr.msk.f32.vlgmr.msra.gmra.mxu1 %vm3666_vm7, %v9706_v29 }
0x124c   : > { %7695 = vmatprep.mubr.msk.f32.mxu1 %vm833_vm5, %v7022_v17  ;;  %v7075_v17 = vld [vmem:[%s10258_s12 + $0x58] sm:$0x1] }
0x1303   : > { %v7665_v10 = vpop.f32.mrf.mxu1 }
0x1304   : > { %v4315_v11 = vadd.f32 %v7665_v10, %v4151_v62 }
0x1305   : > { %v4305_v12 = vpop.f32.mrf.mxu1 }
0x1306   : > { %v4314_v13 = vadd.f32 %v4305_v12, %v4150_v1  ;;  %v7063_v12 = vld [vmem:[%s10258_s12 + $0x28] sm:$0x1] }
0x130b   : > { %v4390_v14 = vpop.f32.mrf.mxu1 }
0x130c   : > { %7677 = vmatprep.subr.mxu0 %v4390_v14 }
0x130d   : > { %v7676_v19 = vpop.f32.mrf.mxu1  ;;  %7678 = vmatpush3.msra.mxu0 %v4390_v14  ;;  %v7062_v14 = vld [vmem:[%s10258_s12 + $0x20] sm:$0xff] }
0x130e   : > { %7680 = vmatmul.mubr.msk.f32.vlgmr.msra.gmra.mxu0 %vm833_vm5, %v7013_v15  ;;  %7682 = vmatprep.subr.mxu0 %v7985_v0  ;;  %v7067_v15 = vld [vmem:[%s10258_s12 + $0x38] sm:$0x1]  ;;  %v7066_v19 = vld [vmem:[%s10258_s12 + $0x30] sm:$0xff] }
0x130f   : > { %7683 = vmatpush3.msk.msra.mxu0 %vm653_vm2, %v7019_v18  ;;  %7690 = vmatprep.mubr.msk.f32.mxu0 %vm7987_vm4, %v7985_v0 }
0x1310   : > { %7684 = vmatprep.subr.mxu0 %v7985_v0 }
0x1311   : > { %7685 = vmatpush3.msra.mxu0 %v7018_v20  ;;  %v7071_v20 = vld [vmem:[%s10258_s12 + $0x48] sm:$0x1] }
0x1312   : > { %7686 = vmatprep.subr.mxu0 %v7985_v0 }
0x1313   : > { %7687 = vmatpush3.msra.mxu0 %v7017_v44 }
0x1314   : > { %7688 = vmatprep.subr.mxu0 %v7985_v0 }
0x1315   : > { %7689 = vmatpush3.msra.mxu0 %v7016_v21  ;;  %v7070_v21 = vld [vmem:[%s10258_s12 + $0x40] sm:$0xff] }
0x1316   : > { %7691 = vmatmul.mubr.msk.f32.vlgmr.msra.gmra.mxu0 %vm3666_vm7, %v9706_v29 }
0x1317   : > { %7711 = vmatprep.mubr.msk.f32.mxu0 %vm833_vm5, %v7032_v34  ;;  %v7087_v34 = vld [vmem:[%s10258_s12 + $0x88] sm:$0x1] }
0x13ce   : > { %v7681_v22 = vpop.f32.mrf.mxu0 }
0x13cf   : > { %v4479_v23 = vadd.f32 %v7681_v22, %v4315_v11 }
0x13d0   : > { %v4469_v24 = vpop.f32.mrf.mxu0 }
0x13d1   : > { %v4478_v25 = vadd.f32 %v4469_v24, %v4314_v13  ;;  %v7079_v24 = vld [vmem:[%s10258_s12 + $0x68] sm:$0x1] }
0x13d6   : > { %v4554_v26 = vpop.f32.mrf.mxu0 }
0x13d7   : > { %7693 = vmatprep.subr.mxu1 %v4554_v26 }
0x13d8   : > { %v7692_v30 = vpop.f32.mrf.mxu0  ;;  %7694 = vmatpush3.msra.mxu1 %v4554_v26 }
0x13d9   : > { %7696 = vmatmul.mubr.msk.f32.vlgmr.msra.gmra.mxu1 %vm833_vm5, %v7023_v27  ;;  %7698 = vmatprep.subr.mxu1 %v7985_v0  ;;  %v7078_v27 = vld [vmem:[%s10258_s12 + $0x60] sm:$0xff]  ;;  %v5146_v30 = vpop.permute.xlu0 %5145 }
0x13da   : > { %7699 = vmatpush3.msk.msra.mxu1 %vm653_vm2, %v7029_v28  ;;  %7706 = vmatprep.mubr.msk.f32.mxu1 %vm7987_vm4, %v7985_v0  ;;  %v7083_v28 = vld [vmem:[%s10258_s12 + $0x78] sm:$0x1] }
0x13db   : > { %7700 = vmatprep.subr.mxu1 %v7985_v0 }
0x13dc   : > { %7701 = vmatpush3.msra.mxu1 %v7028_v31 }
0x13dd   : > { %7702 = vmatprep.subr.mxu1 %v7985_v0 }
0x13de   : > { %7703 = vmatpush3.msra.mxu1 %v7027_v32  ;;  %v7082_v32 = vld [vmem:[%s10258_s12 + $0x70] sm:$0xff] }
0x13df   : > { %7704 = vmatprep.subr.mxu1 %v7985_v0 }
0x13e0   : > { %7705 = vmatpush3.msra.mxu1 %v7026_v33 }
0x13e1   : > { %7707 = vmatmul.mubr.msk.f32.vlgmr.msra.gmra.mxu1 %vm3666_vm7, %v9706_v29 }
0x13e2   : > { %7727 = vmatprep.mubr.msk.f32.mxu1 %vm833_vm5, %v7042_v47  ;;  %v7103_v47 = vld [vmem:[%s10258_s12 + $0xc8] sm:$0x1] }
0x1499   : > { %v7697_v35 = vpop.f32.mrf.mxu1 }
0x149a   : > { %v4643_v36 = vadd.f32 %v7697_v35, %v4479_v23  ;;  %v7074_v23 = vld [vmem:[%s10258_s12 + $0x50] sm:$0xff] }
0x149b   : > { %v4633_v37 = vpop.f32.mrf.mxu1 }
0x149c   : > { %v4642_v38 = vadd.f32 %v4633_v37, %v4478_v25  ;;  %v7091_v37 = vld [vmem:[%s10258_s12 + $0x98] sm:$0x1] }
0x14a1   : > { %v4718_v39 = vpop.f32.mrf.mxu1 }
0x14a2   : > { %7709 = vmatprep.subr.mxu0 %v4718_v39 }
0x14a3   : > { %v7708_v42 = vpop.f32.mrf.mxu1  ;;  %7710 = vmatpush3.msra.mxu0 %v4718_v39  ;;  %v7090_v39 = vld [vmem:[%s10258_s12 + $0x90] sm:$0xff] }
0x14a4   : > { %7712 = vmatmul.mubr.msk.f32.vlgmr.msra.gmra.mxu0 %vm833_vm5, %v7033_v40  ;;  %7714 = vmatprep.subr.mxu0 %v7985_v0  ;;  %v7095_v40 = vld [vmem:[%s10258_s12 + $0xa8] sm:$0x1]  ;;  %v7094_v42 = vld [vmem:[%s10258_s12 + $0xa0] sm:$0xff] }
0x14a5   : > { %7715 = vmatpush3.msk.msra.mxu0 %vm653_vm2, %v7039_v41  ;;  %7722 = vmatprep.mubr.msk.f32.mxu0 %vm7987_vm4, %v7985_v0 }
0x14a6   : > { %7716 = vmatprep.subr.mxu0 %v7985_v0 }
0x14a7   : > { %7717 = vmatpush3.msra.mxu0 %v7038_v43  ;;  %v7099_v43 = vld [vmem:[%s10258_s12 + $0xb8] sm:$0x1] }
0x14a8   : > { %7718 = vmatprep.subr.mxu0 %v7985_v0 }
0x14a9   : > { %7719 = vmatpush3.msra.mxu0 %v7037_v45 }
0x14aa   : > { %7720 = vmatprep.subr.mxu0 %v7985_v0 }
0x14ab   : > { %7721 = vmatpush3.msra.mxu0 %v7036_v46  ;;  %v7098_v46 = vld [vmem:[%s10258_s12 + $0xb0] sm:$0xff] }
0x14ac   : > { %7723 = vmatmul.mubr.msk.f32.vlgmr.msra.gmra.mxu0 %vm3666_vm7, %v9706_v29 }
0x14ad   : > { %7743 = vmatprep.mubr.msk.f32.mxu0 %vm833_vm5, %v7052_v58 }
0x1564   : > { %v7713_v48 = vpop.f32.mrf.mxu0 }
0x1565   : > { %v4807_v49 = vadd.f32 %v7713_v48, %v4643_v36  ;;  %v7086_v36 = vld [vmem:[%s10258_s12 + $0x80] sm:$0xff] }
0x1566   : > { %v4797_v50 = vpop.f32.mrf.mxu0 }
0x1567   : > { %v4806_v51 = vadd.f32 %v4797_v50, %v4642_v38  ;;  %v7107_v50 = vld [vmem:[%s10258_s12 + $0xd8] sm:$0x1] }
0x156c   : > { %v4882_v52 = vpop.f32.mrf.mxu0 }
0x156d   : > { %7725 = vmatprep.subr.mxu1 %v4882_v52 }
0x156e   : > { %v7724_v55 = vpop.f32.mrf.mxu0  ;;  %7726 = vmatpush3.msra.mxu1 %v4882_v52  ;;  %v7106_v52 = vld [vmem:[%s10258_s12 + $0xd0] sm:$0xff] }
0x156f   : > { %7728 = vmatmul.mubr.msk.f32.vlgmr.msra.gmra.mxu1 %vm833_vm5, %v7043_v53  ;;  %7730 = vmatprep.subr.mxu1 %v7985_v0  ;;  %v7111_v53 = vld [vmem:[%s10258_s12 + $0xe8] sm:$0x1]  ;;  %v7110_v55 = vld [vmem:[%s10258_s12 + $0xe0] sm:$0xff] }
0x1570   : > { %7731 = vmatpush3.msk.msra.mxu1 %vm653_vm2, %v7049_v54  ;;  %7738 = vmatprep.mubr.msk.f32.mxu1 %vm7987_vm4, %v7985_v0 }
0x1571   : > { %7732 = vmatprep.subr.mxu1 %v7985_v0 }
0x1572   : > { %7733 = vmatpush3.msra.mxu1 %v7048_v56  ;;  %v7115_v56 = vld [vmem:[%s10258_s12 + $0xf8] sm:$0x1] }
0x1573   : > { %7734 = vmatprep.subr.mxu1 %v7985_v0 }
0x1574   : > { %7735 = vmatpush3.msra.mxu1 %v7047_v16 }
0x1575   : > { %7736 = vmatprep.subr.mxu1 %v7985_v0 }
0x1576   : > { %7737 = vmatpush3.msra.mxu1 %v7046_v57  ;;  %v7114_v57 = vld [vmem:[%s10258_s12 + $0xf0] sm:$0xff] }
0x1577   : > { %7739 = vmatmul.mubr.msk.f32.vlgmr.msra.gmra.mxu1 %vm3666_vm7, %v9706_v29  ;;  %7753 = vmatprep.subr.mxu1 %v7985_v0  ;;  %v7053_v29 = vld [vmem:[%s10256_s10 + $0x88] sm:$0xff] }
0x1578   : > { %7757 = vmatprep.mubr.msk.f32.mxu1 %vm7987_vm4, %v7985_v0  ;;  %7754 = vmatpush3.msk.msra.mxu1 %vm653_vm2, %v7059_v4 }
0x1579   : > { %7755 = vmatprep.subr.mxu1 %v7985_v0 }
0x157a   : > { %7756 = vmatpush3.msra.mxu1 %v7058_v5 }
0x157b   : > { %7767 = vmatprep.subr.mxu1 %v7985_v0 }
0x162f   : > { %v7729_v59 = vpop.f32.mrf.mxu1 }
0x1630   : > { %v9948_v60 = vadd.f32 %v7729_v59, %v4807_v49  ;;  %v7102_v49 = vld [vmem:[%s10258_s12 + $0xc0] sm:$0xff]  ;;  %v6441_v59 = vld [vmem:[%s10260_s14 + $0x38] sm:$0xff] }
0x1631   : > { %v4961_v61 = vpop.f32.mrf.mxu1 }
0x1632   : > { %v4970_v62 = vadd.f32 %v4961_v61, %v4806_v51  ;;  %v6439_v61 = vld [vmem:[%s10260_s14 + $0x28] sm:$0xff] }
0x1637   : > { %v5046_v63 = vpop.f32.mrf.mxu1 }
0x1638   : > { %7741 = vmatprep.subr.mxu0 %v5046_v63 }
0x1639   : > { %v7740_v1 = vpop.f32.mrf.mxu1  ;;  %7742 = vmatpush3.msra.mxu0 %v5046_v63  ;;  %v6437_v63 = vld [vmem:[%s10260_s14 + $0x18] sm:$0xff] }
0x163a   : > { %7744 = vmatmul.mubr.msk.f32.vlgmr.msra.gmra.mxu0 %vm833_vm5, %v7053_v29  ;;  %7746 = vmatprep.subr.mxu0 %v7985_v0  ;;  %v6436_v29 = vld [vmem:[%s10260_s14 + $0x10] sm:$0xff]  ;;  %v6435_v1 = vld [vmem:[%s10260_s14 + $0x8] sm:$0xff] }
0x163b   : > { %7750 = vmatprep.mubr.msk.f32.mxu0 %vm7987_vm4, %v7985_v0  ;;  %7747 = vmatpush3.msk.msra.mxu0 %vm653_vm2, %v5154_v2  ;;  %v6434_v2 = vld [vmem:[%s10260_s14] sm:$0xff] }
0x163c   : > { %7748 = vmatprep.subr.mxu0 %v7985_v0 }
0x163d   : > { %7749 = vmatpush3.msra.mxu0 %v5153_v3  ;;  %v5152_v3 = vld [vmem:[%s10259_s13] sm:$0x1] }
0x163e   : > { %7760 = vmatprep.subr.mxu0 %v7985_v0 }
0x16fa   : > { %v7745_v6 = vpop.f32.mrf.mxu0 }
0x16fb   : > { %v5135_v25 = vadd.f32 %v7745_v6, %v9948_v60  ;;  %v6440_v60 = vld [vmem:[%s10260_s14 + $0x30] sm:$0xff] }
0x16fc   : > { %v5125_v7 = vpop.f32.mrf.mxu0 }
0x16fd   : > { %v5134_v8 = vadd.f32 %v5125_v7, %v4970_v62  ;;  %v5149_v33 = vadd.f32 %v5146_v30, %v5135_v25  ;;  %v6438_v62 = vld [vmem:[%s10260_s14 + $0x20] sm:$0xff] }
0x16ff   : > { %v5148_v10 = vadd.f32 %v5141_v9, %v5134_v8  ;;  %v10068_v38 = vmax.f32 %v5149_v33, 0.0 }
0x1701   : > { %v9975_v11 = vmax.f32 %v5148_v10, 0.0  ;;  %v5876_v41 = vrot.slane %v10068_v38, 1  ;;  %v5956_v45 = vrot.slane %v10068_v38, 2  ;;  %v6036_v48 = vrot.slane %v10068_v38, 3 }
0x1702   : > { %v6116_v51 = vrot.slane %v10068_v38, 4  ;;  %v6196_v54 = vrot.slane %v10068_v38, 5  ;;  %v6276_v16 = vrot.slane %v10068_v38, 6  ;;  %v6356_v58 = vrot.slane %v10068_v38, 7 }
0x1703   : > { %7751 = vmatmul.mubr.msk.f32.vlgmr.msra.gmra.mxu0 %vm5155_vm8, %v9975_v11  ;;  %v5236_v13 = vrot.slane %v9975_v11, 1  ;;  %v5316_v18 = vrot.slane %v9975_v11, 2  ;;  %v5396_v44 = vrot.slane %v9975_v11, 3  ;;  %v5476_v22 = vrot.slane %v9975_v11, 4 }
0x1704   : > { %7761 = vmatpush3.msk.msra.mxu0 %vm653_vm2, %v7063_v12  ;;  %7764 = vmatprep.mubr.msk.f32.mxu0 %vm7987_vm4, %v7985_v0  ;;  %v5556_v26 = vrot.slane %v9975_v11, 5  ;;  %v5636_v31 = vrot.slane %v9975_v11, 6  ;;  %v5716_v35 = vrot.slane %v9975_v11, 7 }
0x1705   : > { %7758 = vmatmul.mubr.msk.f32.vlgmr.msra.gmra.mxu1 %vm5155_vm8, %v5236_v13  ;;  %7762 = vmatprep.subr.mxu0 %v7985_v0 }
0x1706   : > { %7763 = vmatpush3.msra.mxu0 %v7062_v14  ;;  %7768 = vmatpush3.msk.msra.mxu1 %vm653_vm2, %v7067_v15 }
0x1707   : > { %7765 = vmatmul.mubr.msk.f32.vlgmr.msra.gmra.mxu0 %vm5155_vm8, %v5316_v18  ;;  %7769 = vmatprep.subr.mxu1 %v7985_v0 }
0x1708   : > { %7774 = vmatprep.subr.mxu0 %v7985_v0  ;;  %7770 = vmatpush3.msra.mxu1 %v7066_v19 }
0x1709   : > { %7771 = vmatprep.mubr.msk.f32.mxu1 %vm7987_vm4, %v7985_v0  ;;  %7775 = vmatpush3.msk.msra.mxu0 %vm653_vm2, %v7071_v20 }
0x170a   : > { %7772 = vmatmul.mubr.msk.f32.vlgmr.msra.gmra.mxu1 %vm5155_vm8, %v5396_v44  ;;  %7776 = vmatprep.subr.mxu0 %v7985_v0 }
0x170b   : > { %7781 = vmatprep.subr.mxu1 %v7985_v0  ;;  %7777 = vmatpush3.msra.mxu0 %v7070_v21 }
0x170c   : > { %7778 = vmatprep.mubr.msk.f32.mxu0 %vm7987_vm4, %v7985_v0  ;;  %7782 = vmatpush3.msk.msra.mxu1 %vm653_vm2, %v7075_v17 }
0x170d   : > { %7779 = vmatmul.mubr.msk.f32.vlgmr.msra.gmra.mxu0 %vm5155_vm8, %v5476_v22  ;;  %7783 = vmatprep.subr.mxu1 %v7985_v0 }
0x170e   : > { %7788 = vmatprep.subr.mxu0 %v7985_v0  ;;  %7784 = vmatpush3.msra.mxu1 %v7074_v23 }
0x170f   : > { %7785 = vmatprep.mubr.msk.f32.mxu1 %vm7987_vm4, %v7985_v0  ;;  %7789 = vmatpush3.msk.msra.mxu0 %vm653_vm2, %v7079_v24 }
0x1710   : > { %7786 = vmatmul.mubr.msk.f32.vlgmr.msra.gmra.mxu1 %vm5155_vm8, %v5556_v26  ;;  %7790 = vmatprep.subr.mxu0 %v7985_v0 }
0x1711   : > { %7795 = vmatprep.subr.mxu1 %v7985_v0  ;;  %7791 = vmatpush3.msra.mxu0 %v7078_v27 }
0x1712   : > { %7792 = vmatprep.mubr.msk.f32.mxu0 %vm7987_vm4, %v7985_v0  ;;  %7796 = vmatpush3.msk.msra.mxu1 %vm653_vm2, %v7083_v28 }
0x1713   : > { %7793 = vmatmul.mubr.msk.f32.vlgmr.msra.gmra.mxu0 %vm5155_vm8, %v5636_v31  ;;  %7797 = vmatprep.subr.mxu1 %v7985_v0 }
0x1714   : > { %7802 = vmatprep.subr.mxu0 %v7985_v0  ;;  %7798 = vmatpush3.msra.mxu1 %v7082_v32 }
0x1715   : > { %7799 = vmatprep.mubr.msk.f32.mxu1 %vm7987_vm4, %v7985_v0  ;;  %7803 = vmatpush3.msk.msra.mxu0 %vm653_vm2, %v7087_v34 }
0x1716   : > { %7800 = vmatmul.mubr.msk.f32.vlgmr.msra.gmra.mxu1 %vm5155_vm8, %v5716_v35  ;;  %7804 = vmatprep.subr.mxu0 %v7985_v0 }
0x1717   : > { %7809 = vmatprep.subr.mxu1 %v7985_v0  ;;  %7805 = vmatpush3.msra.mxu0 %v7086_v36 }
0x1718   : > { %7806 = vmatprep.mubr.msk.f32.mxu0 %vm7987_vm4, %v7985_v0  ;;  %7810 = vmatpush3.msk.msra.mxu1 %vm653_vm2, %v7091_v37 }
0x1719   : > { %7807 = vmatmul.mubr.msk.f32.vlgmr.msra.gmra.mxu0 %vm5155_vm8, %v10068_v38  ;;  %7811 = vmatprep.subr.mxu1 %v7985_v0 }
0x171a   : > { %7816 = vmatprep.subr.mxu0 %v7985_v0  ;;  %7812 = vmatpush3.msra.mxu1 %v7090_v39 }
0x171b   : > { %7813 = vmatprep.mubr.msk.f32.mxu1 %vm7987_vm4, %v7985_v0  ;;  %7817 = vmatpush3.msk.msra.mxu0 %vm653_vm2, %v7095_v40 }
0x171c   : > { %7814 = vmatmul.mubr.msk.f32.vlgmr.msra.gmra.mxu1 %vm5155_vm8, %v5876_v41  ;;  %7818 = vmatprep.subr.mxu0 %v7985_v0 }
0x171d   : > { %7823 = vmatprep.subr.mxu1 %v7985_v0  ;;  %7819 = vmatpush3.msra.mxu0 %v7094_v42 }
0x171e   : > { %7820 = vmatprep.mubr.msk.f32.mxu0 %vm7987_vm4, %v7985_v0  ;;  %7824 = vmatpush3.msk.msra.mxu1 %vm653_vm2, %v7099_v43 }
0x171f   : > { %7821 = vmatmul.mubr.msk.f32.vlgmr.msra.gmra.mxu0 %vm5155_vm8, %v5956_v45  ;;  %7825 = vmatprep.subr.mxu1 %v7985_v0 }
0x1720   : > { %7830 = vmatprep.subr.mxu0 %v7985_v0  ;;  %7826 = vmatpush3.msra.mxu1 %v7098_v46 }
0x1721   : > { %7827 = vmatprep.mubr.msk.f32.mxu1 %vm7987_vm4, %v7985_v0  ;;  %7831 = vmatpush3.msk.msra.mxu0 %vm653_vm2, %v7103_v47 }
0x1722   : > { %7828 = vmatmul.mubr.msk.f32.vlgmr.msra.gmra.mxu1 %vm5155_vm8, %v6036_v48  ;;  %7832 = vmatprep.subr.mxu0 %v7985_v0 }
0x1723   : > { %7837 = vmatprep.subr.mxu1 %v7985_v0  ;;  %7833 = vmatpush3.msra.mxu0 %v7102_v49 }
0x1724   : > { %7834 = vmatprep.mubr.msk.f32.mxu0 %vm7987_vm4, %v7985_v0  ;;  %7838 = vmatpush3.msk.msra.mxu1 %vm653_vm2, %v7107_v50 }
0x1725   : > { %7835 = vmatmul.mubr.msk.f32.vlgmr.msra.gmra.mxu0 %vm5155_vm8, %v6116_v51  ;;  %7839 = vmatprep.subr.mxu1 %v7985_v0 }
0x1726   : > { %7844 = vmatprep.subr.mxu0 %v7985_v0  ;;  %7840 = vmatpush3.msra.mxu1 %v7106_v52 }
0x1727   : > { %7841 = vmatprep.mubr.msk.f32.mxu1 %vm7987_vm4, %v7985_v0  ;;  %7845 = vmatpush3.msk.msra.mxu0 %vm653_vm2, %v7111_v53 }
0x1728   : > { %7842 = vmatmul.mubr.msk.f32.vlgmr.msra.gmra.mxu1 %vm5155_vm8, %v6196_v54  ;;  %7846 = vmatprep.subr.mxu0 %v7985_v0  ;;  %v6442_v54 = vld [vmem:[%s10261_s15] sm:$0x1] }
0x1729   : > { %7851 = vmatprep.subr.mxu1 %v7985_v0  ;;  %7847 = vmatpush3.msra.mxu0 %v7110_v55 }
0x172a   : > { %7848 = vmatprep.mubr.msk.f32.mxu0 %vm7987_vm4, %v7985_v0  ;;  %7852 = vmatpush3.msk.msra.mxu1 %vm653_vm2, %v7115_v56 }
0x172b   : > { %7849 = vmatmul.mubr.msk.f32.vlgmr.msra.gmra.mxu0 %vm5155_vm8, %v6276_v16  ;;  %7853 = vmatprep.subr.mxu1 %v7985_v0 }
0x172c   : > { %7854 = vmatpush3.msra.mxu1 %v7114_v57  ;;  %7855 = vmatprep.mubr.msk.f32.mxu1 %vm7987_vm4, %v7985_v0 }
0x172d   : > { %7856 = vmatmul.mubr.msk.f32.vlgmr.msra.gmra.mxu1 %vm5155_vm8, %v6356_v58  ;;  %7858 = vmatprep.subr.mxu0 %v7985_v0 }
0x172e   : > { %7874 = vmatprep.mubr.msk.f32.mxu0 %vm7987_vm4, %v7985_v0  ;;  %7859 = vmatpush3.msra.mxu0 %v6441_v59 }
0x172f   : > { %7860 = vmatprep.subr.mxu0 %v7985_v0 }
0x1730   : > { %7861 = vmatpush3.msra.mxu0 %v6440_v60 }
0x1731   : > { %7862 = vmatprep.subr.mxu0 %v7985_v0 }
0x1732   : > { %7863 = vmatpush3.msra.mxu0 %v6439_v61 }
0x1733   : > { %7864 = vmatprep.subr.mxu0 %v7985_v0 }
0x1734   : > { %7865 = vmatpush3.msra.mxu0 %v6438_v62 }
0x1735   : > { %7866 = vmatprep.subr.mxu0 %v7985_v0 }
0x1736   : > { %7867 = vmatpush3.msra.mxu0 %v6437_v63 }
0x1737   : > { %7868 = vmatprep.subr.mxu0 %v7985_v0 }
0x1738   : > { %7869 = vmatpush3.msra.mxu0 %v6436_v29 }
0x1739   : > { %7870 = vmatprep.subr.mxu0 %v7985_v0 }
0x173a   : > { %7871 = vmatpush3.msra.mxu0 %v6435_v1 }
0x173b   : > { %7872 = vmatprep.subr.mxu0 %v7985_v0 }
0x173c   : > { %7873 = vmatpush3.msra.mxu0 %v6434_v2 }
0x17c3   : > { %v5228_v4 = vpop.f32.mrf.mxu0 }
0x17c4   : > { %v5232_v5 = vadd.f32 %v5228_v4, %v5152_v3 }
0x17c5   : > { %v7752_v6 = vpop.f32.mrf.mxu0  ;;  %v5308_v7 = vpop.f32.mrf.mxu1 }
0x17c6   : > { %v5312_v8 = vadd.f32 %v5308_v7, %v5232_v5 }
0x17c7   : > { %v7759_v9 = vpop.f32.mrf.mxu1  ;;  %v5388_v10 = vpop.f32.mrf.mxu0 }
0x17c8   : > { %v5392_v11 = vadd.f32 %v5388_v10, %v5312_v8 }
0x17c9   : > { %v7766_v12 = vpop.f32.mrf.mxu0 }
0x17ca   : > { %v5468_v13 = vpop.f32.mrf.mxu1 }
0x17cb   : > { %v5472_v0 = vadd.f32 %v5468_v13, %v5392_v11 }
0x17cc   : > { %v7773_v14 = vpop.f32.mrf.mxu1 }
0x17cd   : > { %v5548_v15 = vpop.f32.mrf.mxu0 }
0x17ce   : > { %v5552_v18 = vadd.f32 %v5548_v15, %v5472_v0 }
0x17cf   : > { %v7780_v19 = vpop.f32.mrf.mxu0 }
0x17d0   : > { %v5628_v20 = vpop.f32.mrf.mxu1 }
0x17d1   : > { %v5632_v44 = vadd.f32 %v5628_v20, %v5552_v18 }
0x17d2   : > { %v7787_v21 = vpop.f32.mrf.mxu1 }
0x17d3   : > { %v5708_v17 = vpop.f32.mrf.mxu0 }
0x17d4   : > { %v5712_v22 = vadd.f32 %v5708_v17, %v5632_v44 }
0x17d5   : > { %v7794_v23 = vpop.f32.mrf.mxu0 }
0x17d6   : > { %v5788_v24 = vpop.f32.mrf.mxu1 }
0x17d7   : > { %v5792_v25 = vadd.f32 %v5788_v24, %v5712_v22 }
0x17d8   : > { %v7801_v26 = vpop.f32.mrf.mxu1 }
0x17d9   : > { %v5868_v27 = vpop.f32.mrf.mxu0 }
0x17da   : > { %v5872_v28 = vadd.f32 %v5868_v27, %v5792_v25 }
0x17db   : > { %v7808_v30 = vpop.f32.mrf.mxu0 }
0x17dc   : > { %v5948_v31 = vpop.f32.mrf.mxu1 }
0x17dd   : > { %v5952_v32 = vadd.f32 %v5948_v31, %v5872_v28 }
0x17de   : > { %v7815_v33 = vpop.f32.mrf.mxu1 }
0x17df   : > { %v6028_v34 = vpop.f32.mrf.mxu0 }
0x17e0   : > { %v6032_v35 = vadd.f32 %v6028_v34, %v5952_v32 }
0x17e1   : > { %v7822_v36 = vpop.f32.mrf.mxu0 }
0x17e2   : > { %v6108_v37 = vpop.f32.mrf.mxu1 }
0x17e3   : > { %v6112_v38 = vadd.f32 %v6108_v37, %v6032_v35 }
0x17e4   : > { %v7829_v39 = vpop.f32.mrf.mxu1 }
0x17e5   : > { %v6188_v40 = vpop.f32.mrf.mxu0 }
0x17e6   : > { %v6192_v41 = vadd.f32 %v6188_v40, %v6112_v38 }
0x17e7   : > { %v7836_v42 = vpop.f32.mrf.mxu0 }
0x17e8   : > { %v6268_v43 = vpop.f32.mrf.mxu1 }
0x17e9   : > { %v6272_v45 = vadd.f32 %v6268_v43, %v6192_v41 }
0x17ea   : > { %v7843_v46 = vpop.f32.mrf.mxu1 }
0x17eb   : > { %v6348_v47 = vpop.f32.mrf.mxu0 }
0x17ec   : > { %v6352_v48 = vadd.f32 %v6348_v47, %v6272_v45 }
0x17ed   : > { %v7850_v49 = vpop.f32.mrf.mxu0  ;;  %v6428_v50 = vpop.f32.mrf.mxu1 }
0x17ee   : > { %v6432_v51 = vadd.f32 %v6428_v50, %v6352_v48 }
0x17ef   : > { %v7857_v52 = vpop.f32.mrf.mxu1 }
0x17f0   : > { %v6433_v53 = vmax.f32 %v6432_v51, 0.0 }
0x17f2   : > { %7875 = vmatmul.mubr.msk.f32.vlgmr.msra.gmra.mxu0 %vm6443_vm9, %v6433_v53 }
0x18b2   : > { %v6513_v55 = vpop.f32.mrf.mxu0 }
0x18b3   : > { %v6514_v56 = vadd.f32 %v6513_v55, %v6442_v54 }
0x18b4   : > { %v7876_v16 = vpop.f32.mrf.mxu0 }
0x18b5   : > { %6518 = vrot.lane.b32.xlu1 %v6514_v56, %s7988_s28 }
0x18b9   : > { %6529 = vperm.xlu1 %7922, %v6514_v56  }
0x1927   : > { %v6519_v57 = vpop.permute.xlu1 %6518 }
0x1928   : > { %v6522_v58 = vsel %vm6521_vm10, %v6519_v57, 0.0 }
0x1929   : > { %6523 = vadd.xlane.f32.xlu0 %v6522_v58 }
0x1934   : > { %v6530_v62 = vpop.permute.xlu1 %6529 }
0x19b2   : > { %v6524_v59 = vpop.xlane.xlu0 %6523 }
0x19b3   : > { %v6526_v60 = vmul.f32 0.125, %v6524_v59 }
0x19b5   : > { %v6527_v61 = vsub.f32 %v6514_v56, %v6526_v60 }
0x19b7   : > { %v6532_v63 = vadd.f32 %v6530_v62, %v6527_v61 }
0x19b9   : > { %6534 = vrot.lane.b32.xlu1 %v6532_v63, %s7988_s28  ;;  %s7927_s28 = sshll.u32 %s7989_s26, 4  ;;  %s7928_s28 = int_to_ptr.vmem [resolvable:$false] %s7927_s28 }
0x19ba   : > { %s7929_s25 = scalar_lea.vmem %s7928_s28, 32  ;;  %p7930_p0 = scmp.lt.s32.totalorder %s6552_s20, %s7928_s28 }
0x19bb   : > { %p7931_p1 = scmp.lt.s32.totalorder %s7929_s25, %s7923_s19 }
0x19bd   : > { %p7932_p2 = por %p7931_p1, %p7930_p0 }
0x19bf   : > { %p7933_p3 = pnand %p7932_p2, %p7926_p13 }
0x1a2b   : > { %v6535_v29 = vpop.permute.xlu1 %6534 }
0x1a2c   : > { %6537 = vst.msk [vmem:[%s513_s2] sm:$0x1] %vm6521_vm10, %v6535_v29 }
0x1a2d   : > { %7936 = shalt.err (!%p7933_p3)
}
0x1a2e   : > { %s7937_s27 = scalar_lea.hbm %s10210_s30, 16  ;;  %s7941_s17 = scalar_lea.hbm %s10262_s16, 32 }
0x1a2f   : > { %p7938_p4 = scmp.ne.s32.totalorder %s10210_s30, %s7937_s27  ;;  %p7942_p9 = scmp.lt.s32.totalorder %s10210_s30, %s10262_s16 }
0x1a30   : > { %p7943_p10 = scmp.lt.s32.totalorder %s7941_s17, %s7937_s27 }
0x1a31   : > { %p7939_p7 = pnand %p7938_p4, %p8113_p5 }
0x1a32   : > { %p7944_p11 = por %p7943_p10, %p7942_p9 }
0x1a33   : > { %p7940_p8 = pneg %p7939_p7 }
0x1a35   : > { %p7945_p12 = pnand %p7944_p11, %p7940_p8 }
0x1a37   : > { %7948 = shalt.err (!%p7945_p12)
}
0x1a38   : > { %7878 = dma.vmem_to_hbm [thread:$0]  (%p8113_p5), %s6552_s20, 16, %s10210_s30, %s6539_s18  }
0x1a39 PF: > { %p7884_p13 = scmp.ge.s32.totalorder %s7983_s24, 2  ;;  %s6563_s28 = sand.u32 1, %s7971_s21  }
0x1a3a   : > { %s6564_s25 = scalar_lea.sflag [#allocation3], %s6563_s28 }
0x1a3b   : > { %p7881_p0 = pnand %p7884_p13, %p8117_p6 }
0x1a3d   : > { %p7882_p1 = pneg %p7881_p0 }
0x1a3f   : > { %7966 = dma.done.wait (%p7882_p1), %s6564_s25, 16  }
0x1a40   : > { %7968 = vsyncadd (%p7882_p1), %s6564_s25, 4294967280  ;;  %s10278_s24 = sld [smem:[#allocation6_spill]]  ;;  %s10281_s21 = smov %s7975_s22 }
0x1a41   : > { %s10279_s27 = sld [smem:[#allocation5_spill]] }
0x1a42   : > { %s10280_s23 = sld [smem:[#allocation7_spill]] }
0x1a46   : > { %p26_p2 = scmp.ge.s32.totalorder %s10278_s24, 4  }
0x1a47   : > { %s10282_s22 = smov %s10279_s27 }
0x1a48   :  { %28 = sbr.rel (!%p26_p2) target bundleno = 6 (0x6), region = 182 }
0x1a4d   :  { %6568 = vsyncpa [#allocation3], 1 }
0x1a4e   :  { %6570 = vsyncpa [#allocation3 + $0x1], 1 }

</bundles_post_ra>
